<compile_context>
chip_gen: v6e
topology: v6e:2x2x1
jax: 0.10.0
libtpu: 0.0.40
codegen_flags: <defaults>
</compile_context>

<pallas_src>
import functools

import jax
import jax.numpy as jnp
from jax.experimental import pallas as pl
from jax.experimental.pallas import tpu as pltpu


def _round_up(x, m):
    return (x + m - 1) // m * m


# ------------------------------ fused kernel ---------------------------------

def _captioning_kernel(x_ref, img_ref, wimg_ref, bimg_ref, *rest,
                       num_layers, hidden_p, seq_len, batch_p, n_h_bufs,
                       unroll, compute_dtype):
    layer_refs = rest[:3 * num_layers]
    wout_ref = rest[3 * num_layers]
    bout_ref = rest[3 * num_layers + 1]
    out_ref = rest[3 * num_layers + 2]
    h_bufs = rest[3 * num_layers + 3: 3 * num_layers + 3 + n_h_bufs]
    xp_scr = rest[3 * num_layers + 3 + n_h_bufs]
    HP, S, BP = hidden_p, seq_len, batch_p

    # ---- recurrence: run once, results persist in VMEM scratch across the
    # ---- vocab-tile grid axis.
    @pl.when(pl.program_id(0) == 0)
    def _recurrence():
        # c_0 = Linear(img_features), image rows already repeated per caption
        # (matches torch h_0.repeat((num_layers, n_captions, 1))); h_0 = 0.
        c0 = (jnp.dot(img_ref[...].astype(compute_dtype), wimg_ref[...],
                      preferred_element_type=jnp.float32) + bimg_ref[...])
        h0 = jnp.zeros((BP, HP), jnp.float32)

        for l in range(num_layers):
            wih_ref, whh_ref, b_ref = layer_refs[3 * l: 3 * l + 3]
            src = x_ref if l == 0 else h_bufs[(l - 1) % n_h_bufs]
            dst = h_bufs[l % n_h_bufs]

            # Hoisted input projection for ALL timesteps in one MXU call.
            # TODO(synk): for v7x (64 MiB VMEM) chunk this over time (e.g. S/4
            # chunks) to shrink xp_scr 4x at production sizes.
            xp_scr[...] = (jnp.dot(src[...].astype(compute_dtype), wih_ref[...],
                                   preferred_element_type=jnp.float32)
                           + b_ref[...])

            def step(t, carry, whh_ref=whh_ref, dst=dst):
                h_prev, c_prev = carry
                row = pl.multiple_of(t * BP, BP)
                # TODO(synk): weight-stationary W_hh via pltpu.matmul_push_rhs/
                # matmul_acc_lhs/matmul_pop would avoid re-streaming W_hh every
                # timestep for small BP (biggest win on v5e).
                gates = (xp_scr[pl.ds(row, BP), :]
                         + jnp.dot(h_prev.astype(compute_dtype), whh_ref[...],
                                   preferred_element_type=jnp.float32))
                # PyTorch gate order (i, f, g, o); slices are 128-lane aligned.
                i_g = jax.nn.sigmoid(gates[:, 0 * HP:1 * HP])
                f_g = jax.nn.sigmoid(gates[:, 1 * HP:2 * HP])
                g_g = jnp.tanh(gates[:, 2 * HP:3 * HP])
                o_g = jax.nn.sigmoid(gates[:, 3 * HP:4 * HP])
                c_new = f_g * c_prev + i_g * g_g
                h_new = o_g * jnp.tanh(c_new)
                dst[pl.ds(row, BP), :] = h_new
                return h_new, c_new

            jax.lax.fori_loop(0, S, step, (h0, c0), unroll=unroll)

    # ---- vocab-tiled logits epilogue: one lane-dense tile per grid step.
    h_final = h_bufs[(num_layers - 1) % n_h_bufs]
    out_ref[...] = (jnp.dot(h_final[...].astype(compute_dtype), wout_ref[...],
                            preferred_element_type=jnp.float32)
                    + bout_ref[...]).astype(out_ref.dtype)
    # TODO(synk): emit logits in bf16 (out_shape dtype) when the consumer
    # tolerates it to halve the dominant HBM writeback.


# --------------------------- parameter lane padding ---------------------------

def _pad_rows(w, rows, rows_p):
    return jnp.pad(w, ((0, rows_p - rows), (0, 0)))


def _pad_gate_cols(w, hidden, hidden_p):
    """(K, 4*hidden) -> (K, 4*hidden_p); gate g occupies cols [g*hp, g*hp+H)."""
    parts = [jnp.pad(w[:, g * hidden:(g + 1) * hidden],
                     ((0, 0), (0, hidden_p - hidden))) for g in range(4)]
    return jnp.concatenate(parts, axis=1)


# --------------------------------- wrapper ------------------------------------

def captioning_forward(params, texts, img_features, *, n_captions, num_layers,
                       hidden, compute_dtype=jnp.float32, vocab_tile=2048):
    bs, cap, seq = texts.shape
    assert cap == n_captions
    B = bs * cap
    BP = _round_up(B, 8)          # sublane-aligned batch
    H = hidden
    HP = _round_up(H, 128)        # lane-aligned hidden (gate slices are free)
    E = params["embedding"].shape[1]
    V = params["W_out"].shape[1]
    TN = min(vocab_tile, _round_up(V, 128))   # lane-dense vocab tile
    VP = _round_up(V, TN)                     # padded vocab (multiple of TN)
    n_vtiles = VP // TN
    S = seq
    n_h = min(2, num_layers)      # ping-pong h buffers between layers

    # --- glue (plain JAX): embedding gather, caption repeat, batch padding ---
    # TODO(synk): img_fe (EfficientNet-B3 backbone) is not translated; its
    # output feature map `img_features` is an input of this function.
    emb = jnp.take(params["embedding"], texts, axis=0)          # (bs,cap,seq,E)
    x = emb.reshape(B, seq, E)                                  # row = b*cap+c
    if BP > B:
        x = jnp.concatenate([x, jnp.zeros((BP - B, seq, E), x.dtype)], axis=0)
    x2d = jnp.transpose(x, (1, 0, 2)).reshape(seq * BP, E)      # (S*BP, E)

    # torch: c0 = Linear(img).repeat((num_layers, n_captions, 1)) pairs text
    # row j = b*cap + c with image (j mod bs); repeating image rows reproduces
    # exactly that.
    img_rep = jnp.concatenate([img_features] * n_captions, axis=0)
    if BP > B:
        img_rep = jnp.concatenate(
            [img_rep, jnp.zeros((BP - B, img_rep.shape[1]), img_rep.dtype)],
            axis=0)

    # --- pad parameters to lane-aligned layout (zero pads are exact).  Weight
    # --- matrices optionally cast to compute_dtype (bf16 for v6e/v7x MXU);
    # --- biases and accumulation stay f32.
    wimg_p = jnp.pad(params["W_img"], ((0, 0), (0, HP - H))).astype(compute_dtype)
    bimg_p = jnp.pad(params["b_img"], ((0, 0), (0, HP - H)))
    layer_args = []
    for l in range(num_layers):
        wih = params["w_ih"][l]
        if l > 0:
            wih = _pad_rows(wih, H, HP)
        layer_args += [
            _pad_gate_cols(wih, H, HP).astype(compute_dtype),
            _pad_gate_cols(_pad_rows(params["w_hh"][l], H, HP),
                           H, HP).astype(compute_dtype),
            _pad_gate_cols(params["bias"][l], H, HP),
        ]
    wout_p = jnp.pad(_pad_rows(params["W_out"], H, HP),
                     ((0, 0), (0, VP - V))).astype(compute_dtype)
    bout_p = jnp.pad(params["b_out"], ((0, 0), (0, VP - V)))

    invariant_args = [x2d, img_rep, wimg_p, bimg_p] + layer_args
    # TODO(synk): once pl.Buffered(1) pipeline_mode is confirmed on this jax
    # version, single-buffer these grid-invariant blocks to halve their VMEM.
    in_specs = [pl.BlockSpec(a.shape, lambda j: (0, 0)) for a in invariant_args]
    in_specs += [pl.BlockSpec((HP, TN), lambda j: (0, j)),     # W_out tile
                 pl.BlockSpec((1, TN), lambda j: (0, j))]      # b_out tile
    args = invariant_args + [wout_p, bout_p]

    # --- explicit VMEM budget (double-buffer inputs, scratch, output tile) ---
    est = 0
    for a in invariant_args:
        est += 2 * a.size * a.dtype.itemsize
    est += 2 * (HP * TN * wout_p.dtype.itemsize + TN * 4)       # W_out/b_out
    est += 2 * (S * BP * TN * 4)                                # logits tile
    est += n_h * S * BP * HP * 4 + S * BP * 4 * HP * 4          # scratch
    vmem_limit = max(16 << 20, min(int(est * 1.5) + (1 << 20), 64 << 20))

    unroll = True if S <= 16 else 4   # bound unroll -> bounded vreg pressure

    kernel = functools.partial(_captioning_kernel, num_layers=num_layers,
                               hidden_p=HP, seq_len=S, batch_p=BP,
                               n_h_bufs=n_h, unroll=unroll,
                               compute_dtype=compute_dtype)

    out2d = pl.pallas_call(
        kernel,
        out_shape=jax.ShapeDtypeStruct((S * BP, VP), jnp.float32),
        grid_spec=pltpu.PrefetchScalarGridSpec(
            num_scalar_prefetch=0,
            grid=(n_vtiles,),
            in_specs=in_specs,
            out_specs=pl.BlockSpec((S * BP, TN), lambda j: (0, j)),
            scratch_shapes=[pltpu.VMEM((S * BP, HP), jnp.float32)] * n_h
                         + [pltpu.VMEM((S * BP, 4 * HP), jnp.float32)]),
        compiler_params=pltpu.CompilerParams(
            dimension_semantics=("arbitrary",),
            vmem_limit_bytes=vmem_limit),
        # TODO(synk): add a 'parallel' batch grid axis (per-core h scratch) to
        # light up v7x's second TensorCore on the recurrence.
    )(*args)

    out = out2d.reshape(S, BP, VP)[:, :B, :V]                   # drop pads
    return jnp.transpose(out, (1, 0, 2)).reshape(bs, cap, seq, V)


# ------------------------------ parameter init --------------------------------

def init_params(key, *, vocab_size, emb_dim, hidden, img_out_features,
                num_layers, pad_idx):
    ks = jax.random.split(key, 5 + 4 * num_layers)
    k_img = 1.0 / float(jnp.sqrt(img_out_features))
    k_h = 1.0 / float(jnp.sqrt(hidden))
    params = {}
    emb = jax.random.normal(ks[0], (vocab_size, emb_dim), jnp.float32)
    params["embedding"] = emb.at[pad_idx].set(0.0)              # padding_idx row
    params["W_img"] = jax.random.uniform(ks[1], (img_out_features, hidden),
                                         jnp.float32, -k_img, k_img)
    params["b_img"] = jax.random.uniform(ks[2], (1, hidden), jnp.float32,
                                         -k_img, k_img)
    params["W_out"] = jax.random.uniform(ks[3], (hidden, vocab_size),
                                         jnp.float32, -k_h, k_h)
    params["b_out"] = jax.random.uniform(ks[4], (1, vocab_size), jnp.float32,
                                         -k_h, k_h)
    w_ih, w_hh, bias = [], [], []
    for l in range(num_layers):
        in_size = emb_dim if l == 0 else hidden
        kk = ks[5 + 4 * l: 5 + 4 * (l + 1)]
        w_ih.append(jax.random.uniform(kk[0], (in_size, 4 * hidden),
                                       jnp.float32, -k_h, k_h))
        w_hh.append(jax.random.uniform(kk[1], (hidden, 4 * hidden),
                                       jnp.float32, -k_h, k_h))
        b_ih = jax.random.uniform(kk[2], (4 * hidden,), jnp.float32, -k_h, k_h)
        b_hh = jax.random.uniform(kk[3], (4 * hidden,), jnp.float32, -k_h, k_h)
        bias.append((b_ih + b_hh).reshape(1, 4 * hidden))
    params["w_ih"], params["w_hh"], params["bias"] = w_ih, w_hh, bias
    return params


# ------------------------------- pure-JAX ref ----------------------------------

def _ref_lstm_layer(x_bm, w_ih, w_hh, bias, c0, hidden):
    def step(carry, x_t):
        h, c = carry
        gates = x_t @ w_ih + h @ w_hh + bias[0]
        i_g = jax.nn.sigmoid(gates[:, :hidden])
        f_g = jax.nn.sigmoid(gates[:, hidden:2 * hidden])
        g_g = jnp.tanh(gates[:, 2 * hidden:3 * hidden])
        o_g = jax.nn.sigmoid(gates[:, 3 * hidden:])
        c_new = f_g * c + i_g * g_g
        h_new = o_g * jnp.tanh(c_new)
        return (h_new, c_new), h_new
    x_tm = jnp.transpose(x_bm, (1, 0, 2))
    _, ys = jax.lax.scan(step, (jnp.zeros_like(c0), c0), x_tm)
    return jnp.transpose(ys, (1, 0, 2))


def captioning_forward_ref(params, texts, img_features, *, n_captions,
                           num_layers, hidden):
    bs, cap, seq = texts.shape
    emb = jnp.take(params["embedding"], texts, axis=0)
    x = emb.reshape(bs * cap, seq, -1)
    h_map = img_features @ params["W_img"] + params["b_img"]
    c0_full = jnp.tile(h_map, (num_layers, n_captions, 1))      # torch .repeat
    layer_in = x
    for l in range(num_layers):
        layer_in = _ref_lstm_layer(layer_in, params["w_ih"][l],
                                   params["w_hh"][l], params["bias"][l],
                                   c0_full[l], hidden)
    logits = layer_in @ params["W_out"] + params["b_out"]
    return logits.reshape(bs, cap, seq, -1)


# ----------------------------------- main --------------------------------------

if __name__ == "__main__":
    key = jax.random.PRNGKey(0)
    bs, n_captions, seq = 2, 3, 8          # bs != n_captions exercises pairing
    emb_dim, hidden, num_layers = 16, 32, 2
    img_out_features = 64
    vocab_size, pad_idx = 50, 0

    k_p, k_t, k_i = jax.random.split(key, 3)
    params = init_params(k_p, vocab_size=vocab_size, emb_dim=emb_dim,
                         hidden=hidden, img_out_features=img_out_features,
                         num_layers=num_layers, pad_idx=pad_idx)
    texts = jax.random.randint(k_t, (bs, n_captions, seq), 0, vocab_size,
                               dtype=jnp.int32)
    img_features = jax.random.normal(k_i, (bs, img_out_features), jnp.float32)

    # compute_dtype=jnp.float32 here to match the f32 reference; use
    # jnp.bfloat16 for production on v6e/v7x (f32 accumulation is kept).
    out = captioning_forward(params, texts, img_features,
                             n_captions=n_captions, num_layers=num_layers,
                             hidden=hidden, compute_dtype=jnp.float32)
    out = jax.block_until_ready(out)
    assert out.shape == (bs, n_captions, seq, vocab_size), out.shape

    ref = captioning_forward_ref(params, texts, img_features,
                                 n_captions=n_captions, num_layers=num_layers,
                                 hidden=hidden)
    max_err = float(jnp.max(jnp.abs(out - ref)))
    assert jnp.allclose(out, ref, atol=2e-2, rtol=2e-2), max_err

    print("KERNEL_OK")
</pallas_src>

<mosaic_0001>
module attributes {stable_mosaic.version = 11 : i64} {
  func.func @_captioning_kernel(%arg0: i32, %arg1: memref<64x16xf32, #tpu.memory_space<vmem>>, %arg2: memref<8x64xf32, #tpu.memory_space<vmem>>, %arg3: memref<64x128xf32, #tpu.memory_space<vmem>>, %arg4: memref<1x128xf32, #tpu.memory_space<vmem>>, %arg5: memref<16x512xf32, #tpu.memory_space<vmem>>, %arg6: memref<128x512xf32, #tpu.memory_space<vmem>>, %arg7: memref<1x512xf32, #tpu.memory_space<vmem>>, %arg8: memref<128x512xf32, #tpu.memory_space<vmem>>, %arg9: memref<128x512xf32, #tpu.memory_space<vmem>>, %arg10: memref<1x512xf32, #tpu.memory_space<vmem>>, %arg11: memref<128x128xf32, #tpu.memory_space<vmem>>, %arg12: memref<1x128xf32, #tpu.memory_space<vmem>>, %arg13: memref<64x128xf32, #tpu.memory_space<vmem>>, %arg14: memref<64x128xf32, #tpu.memory_space<vmem>>, %arg15: memref<64x128xf32, #tpu.memory_space<vmem>>, %arg16: memref<64x512xf32, #tpu.memory_space<vmem>>) attributes {dimension_semantics = [#tpu.dimension_semantics<arbitrary>], iteration_bounds = array<i64: 1>, scalar_prefetch = 0 : i64, scratch_operands = 3 : i64, tpu.core_type = #tpu.core_type<tc>, window_params = [{pipeline_mode = #tpu.pipeline_mode<synchronous>, transform_indices = @transform_0, window_bounds = array<i64: 64, 16>}, {pipeline_mode = #tpu.pipeline_mode<synchronous>, transform_indices = @transform_1, window_bounds = array<i64: 8, 64>}, {pipeline_mode = #tpu.pipeline_mode<synchronous>, transform_indices = @transform_2, window_bounds = array<i64: 64, 128>}, {pipeline_mode = #tpu.pipeline_mode<synchronous>, transform_indices = @transform_3, window_bounds = array<i64: 1, 128>}, {pipeline_mode = #tpu.pipeline_mode<synchronous>, transform_indices = @transform_4, window_bounds = array<i64: 16, 512>}, {pipeline_mode = #tpu.pipeline_mode<synchronous>, transform_indices = @transform_5, window_bounds = array<i64: 128, 512>}, {pipeline_mode = #tpu.pipeline_mode<synchronous>, transform_indices = @transform_6, window_bounds = array<i64: 1, 512>}, {pipeline_mode = #tpu.pipeline_mode<synchronous>, transform_indices = @transform_7, window_bounds = array<i64: 128, 512>}, {pipeline_mode = #tpu.pipeline_mode<synchronous>, transform_indices = @transform_8, window_bounds = array<i64: 128, 512>}, {pipeline_mode = #tpu.pipeline_mode<synchronous>, transform_indices = @transform_9, window_bounds = array<i64: 1, 512>}, {transform_indices = @transform_10, window_bounds = array<i64: 128, 128>}, {transform_indices = @transform_11, window_bounds = array<i64: 1, 128>}, {transform_indices = @transform_12, window_bounds = array<i64: 64, 128>}]} {
    %c0_i32 = arith.constant 0 : i32
    %0 = arith.cmpi eq, %arg0, %c0_i32 : i32
    %1 = arith.extui %0 : i1 to i32
    %c0_i32_0 = arith.constant 0 : i32
    %2 = arith.cmpi ne, %1, %c0_i32_0 : i32
    scf.if %2 {
      %c0_8 = arith.constant 0 : index
      %c0_9 = arith.constant 0 : index
      %10 = vector.load %arg2[%c0_8, %c0_9] : memref<8x64xf32, #tpu.memory_space<vmem>>, vector<8x64xf32>
      %c0_10 = arith.constant 0 : index
      %c0_11 = arith.constant 0 : index
      %11 = vector.load %arg3[%c0_10, %c0_11] : memref<64x128xf32, #tpu.memory_space<vmem>>, vector<64x128xf32>
      %cst_12 = arith.constant dense<0.000000e+00> : vector<8x128xf32>
      %12 = tpu.matmul %10, %11, %cst_12 {dimension_numbers = #tpu.dot_dimension_numbers<[1], [0], [0], [1], [0, 0, 1, 1], [], []>} : vector<8x64xf32>, vector<64x128xf32>, vector<8x128xf32> -> vector<8x128xf32>
      %c0_13 = arith.constant 0 : index
      %c0_14 = arith.constant 0 : index
      %13 = vector.load %arg4[%c0_13, %c0_14] : memref<1x128xf32, #tpu.memory_space<vmem>>, vector<1x128xf32>
      %14 = vector.broadcast %13 : vector<1x128xf32> to vector<8x128xf32>
      %15 = arith.addf %12, %14 : vector<8x128xf32>
      %cst_15 = arith.constant 0.000000e+00 : f32
      %16 = vector.broadcast %cst_15 : f32 to vector<8x128xf32>
      %c0_16 = arith.constant 0 : index
      %c0_17 = arith.constant 0 : index
      %17 = vector.load %arg1[%c0_16, %c0_17] : memref<64x16xf32, #tpu.memory_space<vmem>>, vector<64x16xf32>
      %c0_18 = arith.constant 0 : index
      %c0_19 = arith.constant 0 : index
      %18 = vector.load %arg5[%c0_18, %c0_19] : memref<16x512xf32, #tpu.memory_space<vmem>>, vector<16x512xf32>
      %cst_20 = arith.constant dense<0.000000e+00> : vector<64x512xf32>
      %19 = tpu.matmul %17, %18, %cst_20 {dimension_numbers = #tpu.dot_dimension_numbers<[1], [0], [0], [1], [0, 0, 1, 1], [], []>} : vector<64x16xf32>, vector<16x512xf32>, vector<64x512xf32> -> vector<64x512xf32>
      %c0_21 = arith.constant 0 : index
      %c0_22 = arith.constant 0 : index
      %20 = vector.load %arg7[%c0_21, %c0_22] : memref<1x512xf32, #tpu.memory_space<vmem>>, vector<1x512xf32>
      %21 = vector.broadcast %20 : vector<1x512xf32> to vector<64x512xf32>
      %22 = arith.addf %19, %21 : vector<64x512xf32>
      %c0_23 = arith.constant 0 : index
      %c0_24 = arith.constant 0 : index
      %23 = vector.load %arg16[%c0_23, %c0_24] : memref<64x512xf32, #tpu.memory_space<vmem>>, vector<64x512xf32>
      tpu.vector_store %arg16[%c0_23, %c0_24], %22 {strides = array<i32>} : memref<64x512xf32, #tpu.memory_space<vmem>>, vector<64x512xf32>,
      %c0_i32_25 = arith.constant 0 : i32
      %c8_i32 = arith.constant 8 : i32
      %24 = arith.muli %c0_i32_25, %c8_i32 : i32
      %25 = tpu.assume_multiple %24, 8 : i32
      %26 = arith.index_cast %25 : i32 to index
      %c0_26 = arith.constant 0 : index
      %27 = vector.load %arg16[%26, %c0_26] : memref<64x512xf32, #tpu.memory_space<vmem>>, vector<8x512xf32>
      %c0_27 = arith.constant 0 : index
      %c0_28 = arith.constant 0 : index
      %28 = vector.load %arg6[%c0_27, %c0_28] : memref<128x512xf32, #tpu.memory_space<vmem>>, vector<128x512xf32>
      %cst_29 = arith.constant dense<0.000000e+00> : vector<8x512xf32>
      %29 = tpu.matmul %16, %28, %cst_29 {dimension_numbers = #tpu.dot_dimension_numbers<[1], [0], [0], [1], [0, 0, 1, 1], [], []>} : vector<8x128xf32>, vector<128x512xf32>, vector<8x512xf32> -> vector<8x512xf32>
      %30 = arith.addf %27, %29 : vector<8x512xf32>
      %31 = vector.extract_strided_slice %30 {offsets = [0, 0], sizes = [8, 128], strides = [1, 1]} : vector<8x512xf32> to vector<8x128xf32>
      %32 = arith.negf %31 : vector<8x128xf32>
      %33 = math.exp %32 : vector<8x128xf32>
      %cst_30 = arith.constant 1.000000e+00 : f32
      %34 = vector.broadcast %cst_30 : f32 to vector<8x128xf32>
      %35 = arith.addf %34, %33 : vector<8x128xf32>
      %36 = arith.divf %34, %35 : vector<8x128xf32>
      %37 = vector.extract_strided_slice %30 {offsets = [0, 128], sizes = [8, 128], strides = [1, 1]} : vector<8x512xf32> to vector<8x128xf32>
      %38 = arith.negf %37 : vector<8x128xf32>
      %39 = math.exp %38 : vector<8x128xf32>
      %cst_31 = arith.constant 1.000000e+00 : f32
      %40 = vector.broadcast %cst_31 : f32 to vector<8x128xf32>
      %41 = arith.addf %40, %39 : vector<8x128xf32>
      %42 = arith.divf %40, %41 : vector<8x128xf32>
      %43 = vector.extract_strided_slice %30 {offsets = [0, 256], sizes = [8, 128], strides = [1, 1]} : vector<8x512xf32> to vector<8x128xf32>
      %44 = math.tanh %43 : vector<8x128xf32>
      %45 = vector.extract_strided_slice %30 {offsets = [0, 384], sizes = [8, 128], strides = [1, 1]} : vector<8x512xf32> to vector<8x128xf32>
      %46 = arith.negf %45 : vector<8x128xf32>
      %47 = math.exp %46 : vector<8x128xf32>
      %cst_32 = arith.constant 1.000000e+00 : f32
      %48 = vector.broadcast %cst_32 : f32 to vector<8x128xf32>
      %49 = arith.addf %48, %47 : vector<8x128xf32>
      %50 = arith.divf %48, %49 : vector<8x128xf32>
      %51 = arith.mulf %42, %15 : vector<8x128xf32>
      %52 = arith.mulf %36, %44 : vector<8x128xf32>
      %53 = arith.addf %51, %52 : vector<8x128xf32>
      %54 = math.tanh %53 : vector<8x128xf32>
      %55 = arith.mulf %50, %54 : vector<8x128xf32>
      %56 = arith.index_cast %25 : i32 to index
      %c0_33 = arith.constant 0 : index
      %57 = vector.load %arg14[%56, %c0_33] : memref<64x128xf32, #tpu.memory_space<vmem>>, vector<8x128xf32>
      tpu.vector_store %arg14[%56, %c0_33], %55 {strides = array<i32>} : memref<64x128xf32, #tpu.memory_space<vmem>>, vector<8x128xf32>,
      %c1_i32 = arith.constant 1 : i32
      %c8_i32_34 = arith.constant 8 : i32
      %58 = arith.muli %c1_i32, %c8_i32_34 : i32
      %59 = tpu.assume_multiple %58, 8 : i32
      %60 = arith.index_cast %59 : i32 to index
      %c0_35 = arith.constant 0 : index
      %61 = vector.load %arg16[%60, %c0_35] : memref<64x512xf32, #tpu.memory_space<vmem>>, vector<8x512xf32>
      %c0_36 = arith.constant 0 : index
      %c0_37 = arith.constant 0 : index
      %62 = vector.load %arg6[%c0_36, %c0_37] : memref<128x512xf32, #tpu.memory_space<vmem>>, vector<128x512xf32>
      %cst_38 = arith.constant dense<0.000000e+00> : vector<8x512xf32>
      %63 = tpu.matmul %55, %62, %cst_38 {dimension_numbers = #tpu.dot_dimension_numbers<[1], [0], [0], [1], [0, 0, 1, 1], [], []>} : vector<8x128xf32>, vector<128x512xf32>, vector<8x512xf32> -> vector<8x512xf32>
      %64 = arith.addf %61, %63 : vector<8x512xf32>
      %65 = vector.extract_strided_slice %64 {offsets = [0, 0], sizes = [8, 128], strides = [1, 1]} : vector<8x512xf32> to vector<8x128xf32>
      %66 = arith.negf %65 : vector<8x128xf32>
      %67 = math.exp %66 : vector<8x128xf32>
      %cst_39 = arith.constant 1.000000e+00 : f32
      %68 = vector.broadcast %cst_39 : f32 to vector<8x128xf32>
      %69 = arith.addf %68, %67 : vector<8x128xf32>
      %70 = arith.divf %68, %69 : vector<8x128xf32>
      %71 = vector.extract_strided_slice %64 {offsets = [0, 128], sizes = [8, 128], strides = [1, 1]} : vector<8x512xf32> to vector<8x128xf32>
      %72 = arith.negf %71 : vector<8x128xf32>
      %73 = math.exp %72 : vector<8x128xf32>
      %cst_40 = arith.constant 1.000000e+00 : f32
      %74 = vector.broadcast %cst_40 : f32 to vector<8x128xf32>
      %75 = arith.addf %74, %73 : vector<8x128xf32>
      %76 = arith.divf %74, %75 : vector<8x128xf32>
      %77 = vector.extract_strided_slice %64 {offsets = [0, 256], sizes = [8, 128], strides = [1, 1]} : vector<8x512xf32> to vector<8x128xf32>
      %78 = math.tanh %77 : vector<8x128xf32>
      %79 = vector.extract_strided_slice %64 {offsets = [0, 384], sizes = [8, 128], strides = [1, 1]} : vector<8x512xf32> to vector<8x128xf32>
      %80 = arith.negf %79 : vector<8x128xf32>
      %81 = math.exp %80 : vector<8x128xf32>
      %cst_41 = arith.constant 1.000000e+00 : f32
      %82 = vector.broadcast %cst_41 : f32 to vector<8x128xf32>
      %83 = arith.addf %82, %81 : vector<8x128xf32>
      %84 = arith.divf %82, %83 : vector<8x128xf32>
      %85 = arith.mulf %76, %53 : vector<8x128xf32>
      %86 = arith.mulf %70, %78 : vector<8x128xf32>
      %87 = arith.addf %85, %86 : vector<8x128xf32>
      %88 = math.tanh %87 : vector<8x128xf32>
      %89 = arith.mulf %84, %88 : vector<8x128xf32>
      %90 = arith.index_cast %59 : i32 to index
      %c0_42 = arith.constant 0 : index
      %91 = vector.load %arg14[%90, %c0_42] : memref<64x128xf32, #tpu.memory_space<vmem>>, vector<8x128xf32>
      tpu.vector_store %arg14[%90, %c0_42], %89 {strides = array<i32>} : memref<64x128xf32, #tpu.memory_space<vmem>>, vector<8x128xf32>,
      %c2_i32 = arith.constant 2 : i32
      %c8_i32_43 = arith.constant 8 : i32
      %92 = arith.muli %c2_i32, %c8_i32_43 : i32
      %93 = tpu.assume_multiple %92, 8 : i32
      %94 = arith.index_cast %93 : i32 to index
      %c0_44 = arith.constant 0 : index
      %95 = vector.load %arg16[%94, %c0_44] : memref<64x512xf32, #tpu.memory_space<vmem>>, vector<8x512xf32>
      %c0_45 = arith.constant 0 : index
      %c0_46 = arith.constant 0 : index
      %96 = vector.load %arg6[%c0_45, %c0_46] : memref<128x512xf32, #tpu.memory_space<vmem>>, vector<128x512xf32>
      %cst_47 = arith.constant dense<0.000000e+00> : vector<8x512xf32>
      %97 = tpu.matmul %89, %96, %cst_47 {dimension_numbers = #tpu.dot_dimension_numbers<[1], [0], [0], [1], [0, 0, 1, 1], [], []>} : vector<8x128xf32>, vector<128x512xf32>, vector<8x512xf32> -> vector<8x512xf32>
      %98 = arith.addf %95, %97 : vector<8x512xf32>
      %99 = vector.extract_strided_slice %98 {offsets = [0, 0], sizes = [8, 128], strides = [1, 1]} : vector<8x512xf32> to vector<8x128xf32>
      %100 = arith.negf %99 : vector<8x128xf32>
      %101 = math.exp %100 : vector<8x128xf32>
      %cst_48 = arith.constant 1.000000e+00 : f32
      %102 = vector.broadcast %cst_48 : f32 to vector<8x128xf32>
      %103 = arith.addf %102, %101 : vector<8x128xf32>
      %104 = arith.divf %102, %103 : vector<8x128xf32>
      %105 = vector.extract_strided_slice %98 {offsets = [0, 128], sizes = [8, 128], strides = [1, 1]} : vector<8x512xf32> to vector<8x128xf32>
      %106 = arith.negf %105 : vector<8x128xf32>
      %107 = math.exp %106 : vector<8x128xf32>
      %cst_49 = arith.constant 1.000000e+00 : f32
      %108 = vector.broadcast %cst_49 : f32 to vector<8x128xf32>
      %109 = arith.addf %108, %107 : vector<8x128xf32>
      %110 = arith.divf %108, %109 : vector<8x128xf32>
      %111 = vector.extract_strided_slice %98 {offsets = [0, 256], sizes = [8, 128], strides = [1, 1]} : vector<8x512xf32> to vector<8x128xf32>
      %112 = math.tanh %111 : vector<8x128xf32>
      %113 = vector.extract_strided_slice %98 {offsets = [0, 384], sizes = [8, 128], strides = [1, 1]} : vector<8x512xf32> to vector<8x128xf32>
      %114 = arith.negf %113 : vector<8x128xf32>
      %115 = math.exp %114 : vector<8x128xf32>
      %cst_50 = arith.constant 1.000000e+00 : f32
      %116 = vector.broadcast %cst_50 : f32 to vector<8x128xf32>
      %117 = arith.addf %116, %115 : vector<8x128xf32>
      %118 = arith.divf %116, %117 : vector<8x128xf32>
      %119 = arith.mulf %110, %87 : vector<8x128xf32>
      %120 = arith.mulf %104, %112 : vector<8x128xf32>
      %121 = arith.addf %119, %120 : vector<8x128xf32>
      %122 = math.tanh %121 : vector<8x128xf32>
      %123 = arith.mulf %118, %122 : vector<8x128xf32>
      %124 = arith.index_cast %93 : i32 to index
      %c0_51 = arith.constant 0 : index
      %125 = vector.load %arg14[%124, %c0_51] : memref<64x128xf32, #tpu.memory_space<vmem>>, vector<8x128xf32>
      tpu.vector_store %arg14[%124, %c0_51], %123 {strides = array<i32>} : memref<64x128xf32, #tpu.memory_space<vmem>>, vector<8x128xf32>,
      %c3_i32 = arith.constant 3 : i32
      %c8_i32_52 = arith.constant 8 : i32
      %126 = arith.muli %c3_i32, %c8_i32_52 : i32
      %127 = tpu.assume_multiple %126, 8 : i32
      %128 = arith.index_cast %127 : i32 to index
      %c0_53 = arith.constant 0 : index
      %129 = vector.load %arg16[%128, %c0_53] : memref<64x512xf32, #tpu.memory_space<vmem>>, vector<8x512xf32>
      %c0_54 = arith.constant 0 : index
      %c0_55 = arith.constant 0 : index
      %130 = vector.load %arg6[%c0_54, %c0_55] : memref<128x512xf32, #tpu.memory_space<vmem>>, vector<128x512xf32>
      %cst_56 = arith.constant dense<0.000000e+00> : vector<8x512xf32>
      %131 = tpu.matmul %123, %130, %cst_56 {dimension_numbers = #tpu.dot_dimension_numbers<[1], [0], [0], [1], [0, 0, 1, 1], [], []>} : vector<8x128xf32>, vector<128x512xf32>, vector<8x512xf32> -> vector<8x512xf32>
      %132 = arith.addf %129, %131 : vector<8x512xf32>
      %133 = vector.extract_strided_slice %132 {offsets = [0, 0], sizes = [8, 128], strides = [1, 1]} : vector<8x512xf32> to vector<8x128xf32>
      %134 = arith.negf %133 : vector<8x128xf32>
      %135 = math.exp %134 : vector<8x128xf32>
      %cst_57 = arith.constant 1.000000e+00 : f32
      %136 = vector.broadcast %cst_57 : f32 to vector<8x128xf32>
      %137 = arith.addf %136, %135 : vector<8x128xf32>
      %138 = arith.divf %136, %137 : vector<8x128xf32>
      %139 = vector.extract_strided_slice %132 {offsets = [0, 128], sizes = [8, 128], strides = [1, 1]} : vector<8x512xf32> to vector<8x128xf32>
      %140 = arith.negf %139 : vector<8x128xf32>
      %141 = math.exp %140 : vector<8x128xf32>
      %cst_58 = arith.constant 1.000000e+00 : f32
      %142 = vector.broadcast %cst_58 : f32 to vector<8x128xf32>
      %143 = arith.addf %142, %141 : vector<8x128xf32>
      %144 = arith.divf %142, %143 : vector<8x128xf32>
      %145 = vector.extract_strided_slice %132 {offsets = [0, 256], sizes = [8, 128], strides = [1, 1]} : vector<8x512xf32> to vector<8x128xf32>
      %146 = math.tanh %145 : vector<8x128xf32>
      %147 = vector.extract_strided_slice %132 {offsets = [0, 384], sizes = [8, 128], strides = [1, 1]} : vector<8x512xf32> to vector<8x128xf32>
      %148 = arith.negf %147 : vector<8x128xf32>
      %149 = math.exp %148 : vector<8x128xf32>
      %cst_59 = arith.constant 1.000000e+00 : f32
      %150 = vector.broadcast %cst_59 : f32 to vector<8x128xf32>
      %151 = arith.addf %150, %149 : vector<8x128xf32>
      %152 = arith.divf %150, %151 : vector<8x128xf32>
      %153 = arith.mulf %144, %121 : vector<8x128xf32>
      %154 = arith.mulf %138, %146 : vector<8x128xf32>
      %155 = arith.addf %153, %154 : vector<8x128xf32>
      %156 = math.tanh %155 : vector<8x128xf32>
      %157 = arith.mulf %152, %156 : vector<8x128xf32>
      %158 = arith.index_cast %127 : i32 to index
      %c0_60 = arith.constant 0 : index
      %159 = vector.load %arg14[%158, %c0_60] : memref<64x128xf32, #tpu.memory_space<vmem>>, vector<8x128xf32>
      tpu.vector_store %arg14[%158, %c0_60], %157 {strides = array<i32>} : memref<64x128xf32, #tpu.memory_space<vmem>>, vector<8x128xf32>,
      %c4_i32 = arith.constant 4 : i32
      %c8_i32_61 = arith.constant 8 : i32
      %160 = arith.muli %c4_i32, %c8_i32_61 : i32
      %161 = tpu.assume_multiple %160, 8 : i32
      %162 = arith.index_cast %161 : i32 to index
      %c0_62 = arith.constant 0 : index
      %163 = vector.load %arg16[%162, %c0_62] : memref<64x512xf32, #tpu.memory_space<vmem>>, vector<8x512xf32>
      %c0_63 = arith.constant 0 : index
      %c0_64 = arith.constant 0 : index
      %164 = vector.load %arg6[%c0_63, %c0_64] : memref<128x512xf32, #tpu.memory_space<vmem>>, vector<128x512xf32>
      %cst_65 = arith.constant dense<0.000000e+00> : vector<8x512xf32>
      %165 = tpu.matmul %157, %164, %cst_65 {dimension_numbers = #tpu.dot_dimension_numbers<[1], [0], [0], [1], [0, 0, 1, 1], [], []>} : vector<8x128xf32>, vector<128x512xf32>, vector<8x512xf32> -> vector<8x512xf32>
      %166 = arith.addf %163, %165 : vector<8x512xf32>
      %167 = vector.extract_strided_slice %166 {offsets = [0, 0], sizes = [8, 128], strides = [1, 1]} : vector<8x512xf32> to vector<8x128xf32>
      %168 = arith.negf %167 : vector<8x128xf32>
      %169 = math.exp %168 : vector<8x128xf32>
      %cst_66 = arith.constant 1.000000e+00 : f32
      %170 = vector.broadcast %cst_66 : f32 to vector<8x128xf32>
      %171 = arith.addf %170, %169 : vector<8x128xf32>
      %172 = arith.divf %170, %171 : vector<8x128xf32>
      %173 = vector.extract_strided_slice %166 {offsets = [0, 128], sizes = [8, 128], strides = [1, 1]} : vector<8x512xf32> to vector<8x128xf32>
      %174 = arith.negf %173 : vector<8x128xf32>
      %175 = math.exp %174 : vector<8x128xf32>
      %cst_67 = arith.constant 1.000000e+00 : f32
      %176 = vector.broadcast %cst_67 : f32 to vector<8x128xf32>
      %177 = arith.addf %176, %175 : vector<8x128xf32>
      %178 = arith.divf %176, %177 : vector<8x128xf32>
      %179 = vector.extract_strided_slice %166 {offsets = [0, 256], sizes = [8, 128], strides = [1, 1]} : vector<8x512xf32> to vector<8x128xf32>
      %180 = math.tanh %179 : vector<8x128xf32>
      %181 = vector.extract_strided_slice %166 {offsets = [0, 384], sizes = [8, 128], strides = [1, 1]} : vector<8x512xf32> to vector<8x128xf32>
      %182 = arith.negf %181 : vector<8x128xf32>
      %183 = math.exp %182 : vector<8x128xf32>
      %cst_68 = arith.constant 1.000000e+00 : f32
      %184 = vector.broadcast %cst_68 : f32 to vector<8x128xf32>
      %185 = arith.addf %184, %183 : vector<8x128xf32>
      %186 = arith.divf %184, %185 : vector<8x128xf32>
      %187 = arith.mulf %178, %155 : vector<8x128xf32>
      %188 = arith.mulf %172, %180 : vector<8x128xf32>
      %189 = arith.addf %187, %188 : vector<8x128xf32>
      %190 = math.tanh %189 : vector<8x128xf32>
      %191 = arith.mulf %186, %190 : vector<8x128xf32>
      %192 = arith.index_cast %161 : i32 to index
      %c0_69 = arith.constant 0 : index
      %193 = vector.load %arg14[%192, %c0_69] : memref<64x128xf32, #tpu.memory_space<vmem>>, vector<8x128xf32>
      tpu.vector_store %arg14[%192, %c0_69], %191 {strides = array<i32>} : memref<64x128xf32, #tpu.memory_space<vmem>>, vector<8x128xf32>,
      %c5_i32 = arith.constant 5 : i32
      %c8_i32_70 = arith.constant 8 : i32
      %194 = arith.muli %c5_i32, %c8_i32_70 : i32
      %195 = tpu.assume_multiple %194, 8 : i32
      %196 = arith.index_cast %195 : i32 to index
      %c0_71 = arith.constant 0 : index
      %197 = vector.load %arg16[%196, %c0_71] : memref<64x512xf32, #tpu.memory_space<vmem>>, vector<8x512xf32>
      %c0_72 = arith.constant 0 : index
      %c0_73 = arith.constant 0 : index
      %198 = vector.load %arg6[%c0_72, %c0_73] : memref<128x512xf32, #tpu.memory_space<vmem>>, vector<128x512xf32>
      %cst_74 = arith.constant dense<0.000000e+00> : vector<8x512xf32>
      %199 = tpu.matmul %191, %198, %cst_74 {dimension_numbers = #tpu.dot_dimension_numbers<[1], [0], [0], [1], [0, 0, 1, 1], [], []>} : vector<8x128xf32>, vector<128x512xf32>, vector<8x512xf32> -> vector<8x512xf32>
      %200 = arith.addf %197, %199 : vector<8x512xf32>
      %201 = vector.extract_strided_slice %200 {offsets = [0, 0], sizes = [8, 128], strides = [1, 1]} : vector<8x512xf32> to vector<8x128xf32>
      %202 = arith.negf %201 : vector<8x128xf32>
      %203 = math.exp %202 : vector<8x128xf32>
      %cst_75 = arith.constant 1.000000e+00 : f32
      %204 = vector.broadcast %cst_75 : f32 to vector<8x128xf32>
      %205 = arith.addf %204, %203 : vector<8x128xf32>
      %206 = arith.divf %204, %205 : vector<8x128xf32>
      %207 = vector.extract_strided_slice %200 {offsets = [0, 128], sizes = [8, 128], strides = [1, 1]} : vector<8x512xf32> to vector<8x128xf32>
      %208 = arith.negf %207 : vector<8x128xf32>
      %209 = math.exp %208 : vector<8x128xf32>
      %cst_76 = arith.constant 1.000000e+00 : f32
      %210 = vector.broadcast %cst_76 : f32 to vector<8x128xf32>
      %211 = arith.addf %210, %209 : vector<8x128xf32>
      %212 = arith.divf %210, %211 : vector<8x128xf32>
      %213 = vector.extract_strided_slice %200 {offsets = [0, 256], sizes = [8, 128], strides = [1, 1]} : vector<8x512xf32> to vector<8x128xf32>
      %214 = math.tanh %213 : vector<8x128xf32>
      %215 = vector.extract_strided_slice %200 {offsets = [0, 384], sizes = [8, 128], strides = [1, 1]} : vector<8x512xf32> to vector<8x128xf32>
      %216 = arith.negf %215 : vector<8x128xf32>
      %217 = math.exp %216 : vector<8x128xf32>
      %cst_77 = arith.constant 1.000000e+00 : f32
      %218 = vector.broadcast %cst_77 : f32 to vector<8x128xf32>
      %219 = arith.addf %218, %217 : vector<8x128xf32>
      %220 = arith.divf %218, %219 : vector<8x128xf32>
      %221 = arith.mulf %212, %189 : vector<8x128xf32>
      %222 = arith.mulf %206, %214 : vector<8x128xf32>
      %223 = arith.addf %221, %222 : vector<8x128xf32>
      %224 = math.tanh %223 : vector<8x128xf32>
      %225 = arith.mulf %220, %224 : vector<8x128xf32>
      %226 = arith.index_cast %195 : i32 to index
      %c0_78 = arith.constant 0 : index
      %227 = vector.load %arg14[%226, %c0_78] : memref<64x128xf32, #tpu.memory_space<vmem>>, vector<8x128xf32>
      tpu.vector_store %arg14[%226, %c0_78], %225 {strides = array<i32>} : memref<64x128xf32, #tpu.memory_space<vmem>>, vector<8x128xf32>,
      %c6_i32 = arith.constant 6 : i32
      %c8_i32_79 = arith.constant 8 : i32
      %228 = arith.muli %c6_i32, %c8_i32_79 : i32
      %229 = tpu.assume_multiple %228, 8 : i32
      %230 = arith.index_cast %229 : i32 to index
      %c0_80 = arith.constant 0 : index
      %231 = vector.load %arg16[%230, %c0_80] : memref<64x512xf32, #tpu.memory_space<vmem>>, vector<8x512xf32>
      %c0_81 = arith.constant 0 : index
      %c0_82 = arith.constant 0 : index
      %232 = vector.load %arg6[%c0_81, %c0_82] : memref<128x512xf32, #tpu.memory_space<vmem>>, vector<128x512xf32>
      %cst_83 = arith.constant dense<0.000000e+00> : vector<8x512xf32>
      %233 = tpu.matmul %225, %232, %cst_83 {dimension_numbers = #tpu.dot_dimension_numbers<[1], [0], [0], [1], [0, 0, 1, 1], [], []>} : vector<8x128xf32>, vector<128x512xf32>, vector<8x512xf32> -> vector<8x512xf32>
      %234 = arith.addf %231, %233 : vector<8x512xf32>
      %235 = vector.extract_strided_slice %234 {offsets = [0, 0], sizes = [8, 128], strides = [1, 1]} : vector<8x512xf32> to vector<8x128xf32>
      %236 = arith.negf %235 : vector<8x128xf32>
      %237 = math.exp %236 : vector<8x128xf32>
      %cst_84 = arith.constant 1.000000e+00 : f32
      %238 = vector.broadcast %cst_84 : f32 to vector<8x128xf32>
      %239 = arith.addf %238, %237 : vector<8x128xf32>
      %240 = arith.divf %238, %239 : vector<8x128xf32>
      %241 = vector.extract_strided_slice %234 {offsets = [0, 128], sizes = [8, 128], strides = [1, 1]} : vector<8x512xf32> to vector<8x128xf32>
      %242 = arith.negf %241 : vector<8x128xf32>
      %243 = math.exp %242 : vector<8x128xf32>
      %cst_85 = arith.constant 1.000000e+00 : f32
      %244 = vector.broadcast %cst_85 : f32 to vector<8x128xf32>
      %245 = arith.addf %244, %243 : vector<8x128xf32>
      %246 = arith.divf %244, %245 : vector<8x128xf32>
      %247 = vector.extract_strided_slice %234 {offsets = [0, 256], sizes = [8, 128], strides = [1, 1]} : vector<8x512xf32> to vector<8x128xf32>
      %248 = math.tanh %247 : vector<8x128xf32>
      %249 = vector.extract_strided_slice %234 {offsets = [0, 384], sizes = [8, 128], strides = [1, 1]} : vector<8x512xf32> to vector<8x128xf32>
      %250 = arith.negf %249 : vector<8x128xf32>
      %251 = math.exp %250 : vector<8x128xf32>
      %cst_86 = arith.constant 1.000000e+00 : f32
      %252 = vector.broadcast %cst_86 : f32 to vector<8x128xf32>
      %253 = arith.addf %252, %251 : vector<8x128xf32>
      %254 = arith.divf %252, %253 : vector<8x128xf32>
      %255 = arith.mulf %246, %223 : vector<8x128xf32>
      %256 = arith.mulf %240, %248 : vector<8x128xf32>
      %257 = arith.addf %255, %256 : vector<8x128xf32>
      %258 = math.tanh %257 : vector<8x128xf32>
      %259 = arith.mulf %254, %258 : vector<8x128xf32>
      %260 = arith.index_cast %229 : i32 to index
      %c0_87 = arith.constant 0 : index
      %261 = vector.load %arg14[%260, %c0_87] : memref<64x128xf32, #tpu.memory_space<vmem>>, vector<8x128xf32>
      tpu.vector_store %arg14[%260, %c0_87], %259 {strides = array<i32>} : memref<64x128xf32, #tpu.memory_space<vmem>>, vector<8x128xf32>,
      %c7_i32 = arith.constant 7 : i32
      %c8_i32_88 = arith.constant 8 : i32
      %262 = arith.muli %c7_i32, %c8_i32_88 : i32
      %263 = tpu.assume_multiple %262, 8 : i32
      %264 = arith.index_cast %263 : i32 to index
      %c0_89 = arith.constant 0 : index
      %265 = vector.load %arg16[%264, %c0_89] : memref<64x512xf32, #tpu.memory_space<vmem>>, vector<8x512xf32>
      %c0_90 = arith.constant 0 : index
      %c0_91 = arith.constant 0 : index
      %266 = vector.load %arg6[%c0_90, %c0_91] : memref<128x512xf32, #tpu.memory_space<vmem>>, vector<128x512xf32>
      %cst_92 = arith.constant dense<0.000000e+00> : vector<8x512xf32>
      %267 = tpu.matmul %259, %266, %cst_92 {dimension_numbers = #tpu.dot_dimension_numbers<[1], [0], [0], [1], [0, 0, 1, 1], [], []>} : vector<8x128xf32>, vector<128x512xf32>, vector<8x512xf32> -> vector<8x512xf32>
      %268 = arith.addf %265, %267 : vector<8x512xf32>
      %269 = vector.extract_strided_slice %268 {offsets = [0, 0], sizes = [8, 128], strides = [1, 1]} : vector<8x512xf32> to vector<8x128xf32>
      %270 = arith.negf %269 : vector<8x128xf32>
      %271 = math.exp %270 : vector<8x128xf32>
      %cst_93 = arith.constant 1.000000e+00 : f32
      %272 = vector.broadcast %cst_93 : f32 to vector<8x128xf32>
      %273 = arith.addf %272, %271 : vector<8x128xf32>
      %274 = arith.divf %272, %273 : vector<8x128xf32>
      %275 = vector.extract_strided_slice %268 {offsets = [0, 128], sizes = [8, 128], strides = [1, 1]} : vector<8x512xf32> to vector<8x128xf32>
      %276 = arith.negf %275 : vector<8x128xf32>
      %277 = math.exp %276 : vector<8x128xf32>
      %cst_94 = arith.constant 1.000000e+00 : f32
      %278 = vector.broadcast %cst_94 : f32 to vector<8x128xf32>
      %279 = arith.addf %278, %277 : vector<8x128xf32>
      %280 = arith.divf %278, %279 : vector<8x128xf32>
      %281 = vector.extract_strided_slice %268 {offsets = [0, 256], sizes = [8, 128], strides = [1, 1]} : vector<8x512xf32> to vector<8x128xf32>
      %282 = math.tanh %281 : vector<8x128xf32>
      %283 = vector.extract_strided_slice %268 {offsets = [0, 384], sizes = [8, 128], strides = [1, 1]} : vector<8x512xf32> to vector<8x128xf32>
      %284 = arith.negf %283 : vector<8x128xf32>
      %285 = math.exp %284 : vector<8x128xf32>
      %cst_95 = arith.constant 1.000000e+00 : f32
      %286 = vector.broadcast %cst_95 : f32 to vector<8x128xf32>
      %287 = arith.addf %286, %285 : vector<8x128xf32>
      %288 = arith.divf %286, %287 : vector<8x128xf32>
      %289 = arith.mulf %280, %257 : vector<8x128xf32>
      %290 = arith.mulf %274, %282 : vector<8x128xf32>
      %291 = arith.addf %289, %290 : vector<8x128xf32>
      %292 = math.tanh %291 : vector<8x128xf32>
      %293 = arith.mulf %288, %292 : vector<8x128xf32>
      %294 = arith.index_cast %263 : i32 to index
      %c0_96 = arith.constant 0 : index
      %295 = vector.load %arg14[%294, %c0_96] : memref<64x128xf32, #tpu.memory_space<vmem>>, vector<8x128xf32>
      tpu.vector_store %arg14[%294, %c0_96], %293 {strides = array<i32>} : memref<64x128xf32, #tpu.memory_space<vmem>>, vector<8x128xf32>,
      %c8_i32_97 = arith.constant 8 : i32
      %c0_98 = arith.constant 0 : index
      %c0_99 = arith.constant 0 : index
      %296 = vector.load %arg14[%c0_98, %c0_99] : memref<64x128xf32, #tpu.memory_space<vmem>>, vector<64x128xf32>
      %c0_100 = arith.constant 0 : index
      %c0_101 = arith.constant 0 : index
      %297 = vector.load %arg8[%c0_100, %c0_101] : memref<128x512xf32, #tpu.memory_space<vmem>>, vector<128x512xf32>
      %cst_102 = arith.constant dense<0.000000e+00> : vector<64x512xf32>
      %298 = tpu.matmul %296, %297, %cst_102 {dimension_numbers = #tpu.dot_dimension_numbers<[1], [0], [0], [1], [0, 0, 1, 1], [], []>} : vector<64x128xf32>, vector<128x512xf32>, vector<64x512xf32> -> vector<64x512xf32>
      %c0_103 = arith.constant 0 : index
      %c0_104 = arith.constant 0 : index
      %299 = vector.load %arg10[%c0_103, %c0_104] : memref<1x512xf32, #tpu.memory_space<vmem>>, vector<1x512xf32>
      %300 = vector.broadcast %299 : vector<1x512xf32> to vector<64x512xf32>
      %301 = arith.addf %298, %300 : vector<64x512xf32>
      %c0_105 = arith.constant 0 : index
      %c0_106 = arith.constant 0 : index
      %302 = vector.load %arg16[%c0_105, %c0_106] : memref<64x512xf32, #tpu.memory_space<vmem>>, vector<64x512xf32>
      tpu.vector_store %arg16[%c0_105, %c0_106], %301 {strides = array<i32>} : memref<64x512xf32, #tpu.memory_space<vmem>>, vector<64x512xf32>,
      %c0_i32_107 = arith.constant 0 : i32
      %c8_i32_108 = arith.constant 8 : i32
      %303 = arith.muli %c0_i32_107, %c8_i32_108 : i32
      %304 = tpu.assume_multiple %303, 8 : i32
      %305 = arith.index_cast %304 : i32 to index
      %c0_109 = arith.constant 0 : index
      %306 = vector.load %arg16[%305, %c0_109] : memref<64x512xf32, #tpu.memory_space<vmem>>, vector<8x512xf32>
      %c0_110 = arith.constant 0 : index
      %c0_111 = arith.constant 0 : index
      %307 = vector.load %arg9[%c0_110, %c0_111] : memref<128x512xf32, #tpu.memory_space<vmem>>, vector<128x512xf32>
      %cst_112 = arith.constant dense<0.000000e+00> : vector<8x512xf32>
      %308 = tpu.matmul %16, %307, %cst_112 {dimension_numbers = #tpu.dot_dimension_numbers<[1], [0], [0], [1], [0, 0, 1, 1], [], []>} : vector<8x128xf32>, vector<128x512xf32>, vector<8x512xf32> -> vector<8x512xf32>
      %309 = arith.addf %306, %308 : vector<8x512xf32>
      %310 = vector.extract_strided_slice %309 {offsets = [0, 0], sizes = [8, 128], strides = [1, 1]} : vector<8x512xf32> to vector<8x128xf32>
      %311 = arith.negf %310 : vector<8x128xf32>
      %312 = math.exp %311 : vector<8x128xf32>
      %cst_113 = arith.constant 1.000000e+00 : f32
      %313 = vector.broadcast %cst_113 : f32 to vector<8x128xf32>
      %314 = arith.addf %313, %312 : vector<8x128xf32>
      %315 = arith.divf %313, %314 : vector<8x128xf32>
      %316 = vector.extract_strided_slice %309 {offsets = [0, 128], sizes = [8, 128], strides = [1, 1]} : vector<8x512xf32> to vector<8x128xf32>
      %317 = arith.negf %316 : vector<8x128xf32>
      %318 = math.exp %317 : vector<8x128xf32>
      %cst_114 = arith.constant 1.000000e+00 : f32
      %319 = vector.broadcast %cst_114 : f32 to vector<8x128xf32>
      %320 = arith.addf %319, %318 : vector<8x128xf32>
      %321 = arith.divf %319, %320 : vector<8x128xf32>
      %322 = vector.extract_strided_slice %309 {offsets = [0, 256], sizes = [8, 128], strides = [1, 1]} : vector<8x512xf32> to vector<8x128xf32>
      %323 = math.tanh %322 : vector<8x128xf32>
      %324 = vector.extract_strided_slice %309 {offsets = [0, 384], sizes = [8, 128], strides = [1, 1]} : vector<8x512xf32> to vector<8x128xf32>
      %325 = arith.negf %324 : vector<8x128xf32>
      %326 = math.exp %325 : vector<8x128xf32>
      %cst_115 = arith.constant 1.000000e+00 : f32
      %327 = vector.broadcast %cst_115 : f32 to vector<8x128xf32>
      %328 = arith.addf %327, %326 : vector<8x128xf32>
      %329 = arith.divf %327, %328 : vector<8x128xf32>
      %330 = arith.mulf %321, %15 : vector<8x128xf32>
      %331 = arith.mulf %315, %323 : vector<8x128xf32>
      %332 = arith.addf %330, %331 : vector<8x128xf32>
      %333 = math.tanh %332 : vector<8x128xf32>
      %334 = arith.mulf %329, %333 : vector<8x128xf32>
      %335 = arith.index_cast %304 : i32 to index
      %c0_116 = arith.constant 0 : index
      %336 = vector.load %arg15[%335, %c0_116] : memref<64x128xf32, #tpu.memory_space<vmem>>, vector<8x128xf32>
      tpu.vector_store %arg15[%335, %c0_116], %334 {strides = array<i32>} : memref<64x128xf32, #tpu.memory_space<vmem>>, vector<8x128xf32>,
      %c1_i32_117 = arith.constant 1 : i32
      %c8_i32_118 = arith.constant 8 : i32
      %337 = arith.muli %c1_i32_117, %c8_i32_118 : i32
      %338 = tpu.assume_multiple %337, 8 : i32
      %339 = arith.index_cast %338 : i32 to index
      %c0_119 = arith.constant 0 : index
      %340 = vector.load %arg16[%339, %c0_119] : memref<64x512xf32, #tpu.memory_space<vmem>>, vector<8x512xf32>
      %c0_120 = arith.constant 0 : index
      %c0_121 = arith.constant 0 : index
      %341 = vector.load %arg9[%c0_120, %c0_121] : memref<128x512xf32, #tpu.memory_space<vmem>>, vector<128x512xf32>
      %cst_122 = arith.constant dense<0.000000e+00> : vector<8x512xf32>
      %342 = tpu.matmul %334, %341, %cst_122 {dimension_numbers = #tpu.dot_dimension_numbers<[1], [0], [0], [1], [0, 0, 1, 1], [], []>} : vector<8x128xf32>, vector<128x512xf32>, vector<8x512xf32> -> vector<8x512xf32>
      %343 = arith.addf %340, %342 : vector<8x512xf32>
      %344 = vector.extract_strided_slice %343 {offsets = [0, 0], sizes = [8, 128], strides = [1, 1]} : vector<8x512xf32> to vector<8x128xf32>
      %345 = arith.negf %344 : vector<8x128xf32>
      %346 = math.exp %345 : vector<8x128xf32>
      %cst_123 = arith.constant 1.000000e+00 : f32
      %347 = vector.broadcast %cst_123 : f32 to vector<8x128xf32>
      %348 = arith.addf %347, %346 : vector<8x128xf32>
      %349 = arith.divf %347, %348 : vector<8x128xf32>
      %350 = vector.extract_strided_slice %343 {offsets = [0, 128], sizes = [8, 128], strides = [1, 1]} : vector<8x512xf32> to vector<8x128xf32>
      %351 = arith.negf %350 : vector<8x128xf32>
      %352 = math.exp %351 : vector<8x128xf32>
      %cst_124 = arith.constant 1.000000e+00 : f32
      %353 = vector.broadcast %cst_124 : f32 to vector<8x128xf32>
      %354 = arith.addf %353, %352 : vector<8x128xf32>
      %355 = arith.divf %353, %354 : vector<8x128xf32>
      %356 = vector.extract_strided_slice %343 {offsets = [0, 256], sizes = [8, 128], strides = [1, 1]} : vector<8x512xf32> to vector<8x128xf32>
      %357 = math.tanh %356 : vector<8x128xf32>
      %358 = vector.extract_strided_slice %343 {offsets = [0, 384], sizes = [8, 128], strides = [1, 1]} : vector<8x512xf32> to vector<8x128xf32>
      %359 = arith.negf %358 : vector<8x128xf32>
      %360 = math.exp %359 : vector<8x128xf32>
      %cst_125 = arith.constant 1.000000e+00 : f32
      %361 = vector.broadcast %cst_125 : f32 to vector<8x128xf32>
      %362 = arith.addf %361, %360 : vector<8x128xf32>
      %363 = arith.divf %361, %362 : vector<8x128xf32>
      %364 = arith.mulf %355, %332 : vector<8x128xf32>
      %365 = arith.mulf %349, %357 : vector<8x128xf32>
      %366 = arith.addf %364, %365 : vector<8x128xf32>
      %367 = math.tanh %366 : vector<8x128xf32>
      %368 = arith.mulf %363, %367 : vector<8x128xf32>
      %369 = arith.index_cast %338 : i32 to index
      %c0_126 = arith.constant 0 : index
      %370 = vector.load %arg15[%369, %c0_126] : memref<64x128xf32, #tpu.memory_space<vmem>>, vector<8x128xf32>
      tpu.vector_store %arg15[%369, %c0_126], %368 {strides = array<i32>} : memref<64x128xf32, #tpu.memory_space<vmem>>, vector<8x128xf32>,
      %c2_i32_127 = arith.constant 2 : i32
      %c8_i32_128 = arith.constant 8 : i32
      %371 = arith.muli %c2_i32_127, %c8_i32_128 : i32
      %372 = tpu.assume_multiple %371, 8 : i32
      %373 = arith.index_cast %372 : i32 to index
      %c0_129 = arith.constant 0 : index
      %374 = vector.load %arg16[%373, %c0_129] : memref<64x512xf32, #tpu.memory_space<vmem>>, vector<8x512xf32>
      %c0_130 = arith.constant 0 : index
      %c0_131 = arith.constant 0 : index
      %375 = vector.load %arg9[%c0_130, %c0_131] : memref<128x512xf32, #tpu.memory_space<vmem>>, vector<128x512xf32>
      %cst_132 = arith.constant dense<0.000000e+00> : vector<8x512xf32>
      %376 = tpu.matmul %368, %375, %cst_132 {dimension_numbers = #tpu.dot_dimension_numbers<[1], [0], [0], [1], [0, 0, 1, 1], [], []>} : vector<8x128xf32>, vector<128x512xf32>, vector<8x512xf32> -> vector<8x512xf32>
      %377 = arith.addf %374, %376 : vector<8x512xf32>
      %378 = vector.extract_strided_slice %377 {offsets = [0, 0], sizes = [8, 128], strides = [1, 1]} : vector<8x512xf32> to vector<8x128xf32>
      %379 = arith.negf %378 : vector<8x128xf32>
      %380 = math.exp %379 : vector<8x128xf32>
      %cst_133 = arith.constant 1.000000e+00 : f32
      %381 = vector.broadcast %cst_133 : f32 to vector<8x128xf32>
      %382 = arith.addf %381, %380 : vector<8x128xf32>
      %383 = arith.divf %381, %382 : vector<8x128xf32>
      %384 = vector.extract_strided_slice %377 {offsets = [0, 128], sizes = [8, 128], strides = [1, 1]} : vector<8x512xf32> to vector<8x128xf32>
      %385 = arith.negf %384 : vector<8x128xf32>
      %386 = math.exp %385 : vector<8x128xf32>
      %cst_134 = arith.constant 1.000000e+00 : f32
      %387 = vector.broadcast %cst_134 : f32 to vector<8x128xf32>
      %388 = arith.addf %387, %386 : vector<8x128xf32>
      %389 = arith.divf %387, %388 : vector<8x128xf32>
      %390 = vector.extract_strided_slice %377 {offsets = [0, 256], sizes = [8, 128], strides = [1, 1]} : vector<8x512xf32> to vector<8x128xf32>
      %391 = math.tanh %390 : vector<8x128xf32>
      %392 = vector.extract_strided_slice %377 {offsets = [0, 384], sizes = [8, 128], strides = [1, 1]} : vector<8x512xf32> to vector<8x128xf32>
      %393 = arith.negf %392 : vector<8x128xf32>
      %394 = math.exp %393 : vector<8x128xf32>
      %cst_135 = arith.constant 1.000000e+00 : f32
      %395 = vector.broadcast %cst_135 : f32 to vector<8x128xf32>
      %396 = arith.addf %395, %394 : vector<8x128xf32>
      %397 = arith.divf %395, %396 : vector<8x128xf32>
      %398 = arith.mulf %389, %366 : vector<8x128xf32>
      %399 = arith.mulf %383, %391 : vector<8x128xf32>
      %400 = arith.addf %398, %399 : vector<8x128xf32>
      %401 = math.tanh %400 : vector<8x128xf32>
      %402 = arith.mulf %397, %401 : vector<8x128xf32>
      %403 = arith.index_cast %372 : i32 to index
      %c0_136 = arith.constant 0 : index
      %404 = vector.load %arg15[%403, %c0_136] : memref<64x128xf32, #tpu.memory_space<vmem>>, vector<8x128xf32>
      tpu.vector_store %arg15[%403, %c0_136], %402 {strides = array<i32>} : memref<64x128xf32, #tpu.memory_space<vmem>>, vector<8x128xf32>,
      %c3_i32_137 = arith.constant 3 : i32
      %c8_i32_138 = arith.constant 8 : i32
      %405 = arith.muli %c3_i32_137, %c8_i32_138 : i32
      %406 = tpu.assume_multiple %405, 8 : i32
      %407 = arith.index_cast %406 : i32 to index
      %c0_139 = arith.constant 0 : index
      %408 = vector.load %arg16[%407, %c0_139] : memref<64x512xf32, #tpu.memory_space<vmem>>, vector<8x512xf32>
      %c0_140 = arith.constant 0 : index
      %c0_141 = arith.constant 0 : index
      %409 = vector.load %arg9[%c0_140, %c0_141] : memref<128x512xf32, #tpu.memory_space<vmem>>, vector<128x512xf32>
      %cst_142 = arith.constant dense<0.000000e+00> : vector<8x512xf32>
      %410 = tpu.matmul %402, %409, %cst_142 {dimension_numbers = #tpu.dot_dimension_numbers<[1], [0], [0], [1], [0, 0, 1, 1], [], []>} : vector<8x128xf32>, vector<128x512xf32>, vector<8x512xf32> -> vector<8x512xf32>
      %411 = arith.addf %408, %410 : vector<8x512xf32>
      %412 = vector.extract_strided_slice %411 {offsets = [0, 0], sizes = [8, 128], strides = [1, 1]} : vector<8x512xf32> to vector<8x128xf32>
      %413 = arith.negf %412 : vector<8x128xf32>
      %414 = math.exp %413 : vector<8x128xf32>
      %cst_143 = arith.constant 1.000000e+00 : f32
      %415 = vector.broadcast %cst_143 : f32 to vector<8x128xf32>
      %416 = arith.addf %415, %414 : vector<8x128xf32>
      %417 = arith.divf %415, %416 : vector<8x128xf32>
      %418 = vector.extract_strided_slice %411 {offsets = [0, 128], sizes = [8, 128], strides = [1, 1]} : vector<8x512xf32> to vector<8x128xf32>
      %419 = arith.negf %418 : vector<8x128xf32>
      %420 = math.exp %419 : vector<8x128xf32>
      %cst_144 = arith.constant 1.000000e+00 : f32
      %421 = vector.broadcast %cst_144 : f32 to vector<8x128xf32>
      %422 = arith.addf %421, %420 : vector<8x128xf32>
      %423 = arith.divf %421, %422 : vector<8x128xf32>
      %424 = vector.extract_strided_slice %411 {offsets = [0, 256], sizes = [8, 128], strides = [1, 1]} : vector<8x512xf32> to vector<8x128xf32>
      %425 = math.tanh %424 : vector<8x128xf32>
      %426 = vector.extract_strided_slice %411 {offsets = [0, 384], sizes = [8, 128], strides = [1, 1]} : vector<8x512xf32> to vector<8x128xf32>
      %427 = arith.negf %426 : vector<8x128xf32>
      %428 = math.exp %427 : vector<8x128xf32>
      %cst_145 = arith.constant 1.000000e+00 : f32
      %429 = vector.broadcast %cst_145 : f32 to vector<8x128xf32>
      %430 = arith.addf %429, %428 : vector<8x128xf32>
      %431 = arith.divf %429, %430 : vector<8x128xf32>
      %432 = arith.mulf %423, %400 : vector<8x128xf32>
      %433 = arith.mulf %417, %425 : vector<8x128xf32>
      %434 = arith.addf %432, %433 : vector<8x128xf32>
      %435 = math.tanh %434 : vector<8x128xf32>
      %436 = arith.mulf %431, %435 : vector<8x128xf32>
      %437 = arith.index_cast %406 : i32 to index
      %c0_146 = arith.constant 0 : index
      %438 = vector.load %arg15[%437, %c0_146] : memref<64x128xf32, #tpu.memory_space<vmem>>, vector<8x128xf32>
      tpu.vector_store %arg15[%437, %c0_146], %436 {strides = array<i32>} : memref<64x128xf32, #tpu.memory_space<vmem>>, vector<8x128xf32>,
      %c4_i32_147 = arith.constant 4 : i32
      %c8_i32_148 = arith.constant 8 : i32
      %439 = arith.muli %c4_i32_147, %c8_i32_148 : i32
      %440 = tpu.assume_multiple %439, 8 : i32
      %441 = arith.index_cast %440 : i32 to index
      %c0_149 = arith.constant 0 : index
      %442 = vector.load %arg16[%441, %c0_149] : memref<64x512xf32, #tpu.memory_space<vmem>>, vector<8x512xf32>
      %c0_150 = arith.constant 0 : index
      %c0_151 = arith.constant 0 : index
      %443 = vector.load %arg9[%c0_150, %c0_151] : memref<128x512xf32, #tpu.memory_space<vmem>>, vector<128x512xf32>
      %cst_152 = arith.constant dense<0.000000e+00> : vector<8x512xf32>
      %444 = tpu.matmul %436, %443, %cst_152 {dimension_numbers = #tpu.dot_dimension_numbers<[1], [0], [0], [1], [0, 0, 1, 1], [], []>} : vector<8x128xf32>, vector<128x512xf32>, vector<8x512xf32> -> vector<8x512xf32>
      %445 = arith.addf %442, %444 : vector<8x512xf32>
      %446 = vector.extract_strided_slice %445 {offsets = [0, 0], sizes = [8, 128], strides = [1, 1]} : vector<8x512xf32> to vector<8x128xf32>
      %447 = arith.negf %446 : vector<8x128xf32>
      %448 = math.exp %447 : vector<8x128xf32>
      %cst_153 = arith.constant 1.000000e+00 : f32
      %449 = vector.broadcast %cst_153 : f32 to vector<8x128xf32>
      %450 = arith.addf %449, %448 : vector<8x128xf32>
      %451 = arith.divf %449, %450 : vector<8x128xf32>
      %452 = vector.extract_strided_slice %445 {offsets = [0, 128], sizes = [8, 128], strides = [1, 1]} : vector<8x512xf32> to vector<8x128xf32>
      %453 = arith.negf %452 : vector<8x128xf32>
      %454 = math.exp %453 : vector<8x128xf32>
      %cst_154 = arith.constant 1.000000e+00 : f32
      %455 = vector.broadcast %cst_154 : f32 to vector<8x128xf32>
      %456 = arith.addf %455, %454 : vector<8x128xf32>
      %457 = arith.divf %455, %456 : vector<8x128xf32>
      %458 = vector.extract_strided_slice %445 {offsets = [0, 256], sizes = [8, 128], strides = [1, 1]} : vector<8x512xf32> to vector<8x128xf32>
      %459 = math.tanh %458 : vector<8x128xf32>
      %460 = vector.extract_strided_slice %445 {offsets = [0, 384], sizes = [8, 128], strides = [1, 1]} : vector<8x512xf32> to vector<8x128xf32>
      %461 = arith.negf %460 : vector<8x128xf32>
      %462 = math.exp %461 : vector<8x128xf32>
      %cst_155 = arith.constant 1.000000e+00 : f32
      %463 = vector.broadcast %cst_155 : f32 to vector<8x128xf32>
      %464 = arith.addf %463, %462 : vector<8x128xf32>
      %465 = arith.divf %463, %464 : vector<8x128xf32>
      %466 = arith.mulf %457, %434 : vector<8x128xf32>
      %467 = arith.mulf %451, %459 : vector<8x128xf32>
      %468 = arith.addf %466, %467 : vector<8x128xf32>
      %469 = math.tanh %468 : vector<8x128xf32>
      %470 = arith.mulf %465, %469 : vector<8x128xf32>
      %471 = arith.index_cast %440 : i32 to index
      %c0_156 = arith.constant 0 : index
      %472 = vector.load %arg15[%471, %c0_156] : memref<64x128xf32, #tpu.memory_space<vmem>>, vector<8x128xf32>
      tpu.vector_store %arg15[%471, %c0_156], %470 {strides = array<i32>} : memref<64x128xf32, #tpu.memory_space<vmem>>, vector<8x128xf32>,
      %c5_i32_157 = arith.constant 5 : i32
      %c8_i32_158 = arith.constant 8 : i32
      %473 = arith.muli %c5_i32_157, %c8_i32_158 : i32
      %474 = tpu.assume_multiple %473, 8 : i32
      %475 = arith.index_cast %474 : i32 to index
      %c0_159 = arith.constant 0 : index
      %476 = vector.load %arg16[%475, %c0_159] : memref<64x512xf32, #tpu.memory_space<vmem>>, vector<8x512xf32>
      %c0_160 = arith.constant 0 : index
      %c0_161 = arith.constant 0 : index
      %477 = vector.load %arg9[%c0_160, %c0_161] : memref<128x512xf32, #tpu.memory_space<vmem>>, vector<128x512xf32>
      %cst_162 = arith.constant dense<0.000000e+00> : vector<8x512xf32>
      %478 = tpu.matmul %470, %477, %cst_162 {dimension_numbers = #tpu.dot_dimension_numbers<[1], [0], [0], [1], [0, 0, 1, 1], [], []>} : vector<8x128xf32>, vector<128x512xf32>, vector<8x512xf32> -> vector<8x512xf32>
      %479 = arith.addf %476, %478 : vector<8x512xf32>
      %480 = vector.extract_strided_slice %479 {offsets = [0, 0], sizes = [8, 128], strides = [1, 1]} : vector<8x512xf32> to vector<8x128xf32>
      %481 = arith.negf %480 : vector<8x128xf32>
      %482 = math.exp %481 : vector<8x128xf32>
      %cst_163 = arith.constant 1.000000e+00 : f32
      %483 = vector.broadcast %cst_163 : f32 to vector<8x128xf32>
      %484 = arith.addf %483, %482 : vector<8x128xf32>
      %485 = arith.divf %483, %484 : vector<8x128xf32>
      %486 = vector.extract_strided_slice %479 {offsets = [0, 128], sizes = [8, 128], strides = [1, 1]} : vector<8x512xf32> to vector<8x128xf32>
      %487 = arith.negf %486 : vector<8x128xf32>
      %488 = math.exp %487 : vector<8x128xf32>
      %cst_164 = arith.constant 1.000000e+00 : f32
      %489 = vector.broadcast %cst_164 : f32 to vector<8x128xf32>
      %490 = arith.addf %489, %488 : vector<8x128xf32>
      %491 = arith.divf %489, %490 : vector<8x128xf32>
      %492 = vector.extract_strided_slice %479 {offsets = [0, 256], sizes = [8, 128], strides = [1, 1]} : vector<8x512xf32> to vector<8x128xf32>
      %493 = math.tanh %492 : vector<8x128xf32>
      %494 = vector.extract_strided_slice %479 {offsets = [0, 384], sizes = [8, 128], strides = [1, 1]} : vector<8x512xf32> to vector<8x128xf32>
      %495 = arith.negf %494 : vector<8x128xf32>
      %496 = math.exp %495 : vector<8x128xf32>
      %cst_165 = arith.constant 1.000000e+00 : f32
      %497 = vector.broadcast %cst_165 : f32 to vector<8x128xf32>
      %498 = arith.addf %497, %496 : vector<8x128xf32>
      %499 = arith.divf %497, %498 : vector<8x128xf32>
      %500 = arith.mulf %491, %468 : vector<8x128xf32>
      %501 = arith.mulf %485, %493 : vector<8x128xf32>
      %502 = arith.addf %500, %501 : vector<8x128xf32>
      %503 = math.tanh %502 : vector<8x128xf32>
      %504 = arith.mulf %499, %503 : vector<8x128xf32>
      %505 = arith.index_cast %474 : i32 to index
      %c0_166 = arith.constant 0 : index
      %506 = vector.load %arg15[%505, %c0_166] : memref<64x128xf32, #tpu.memory_space<vmem>>, vector<8x128xf32>
      tpu.vector_store %arg15[%505, %c0_166], %504 {strides = array<i32>} : memref<64x128xf32, #tpu.memory_space<vmem>>, vector<8x128xf32>,
      %c6_i32_167 = arith.constant 6 : i32
      %c8_i32_168 = arith.constant 8 : i32
      %507 = arith.muli %c6_i32_167, %c8_i32_168 : i32
      %508 = tpu.assume_multiple %507, 8 : i32
      %509 = arith.index_cast %508 : i32 to index
      %c0_169 = arith.constant 0 : index
      %510 = vector.load %arg16[%509, %c0_169] : memref<64x512xf32, #tpu.memory_space<vmem>>, vector<8x512xf32>
      %c0_170 = arith.constant 0 : index
      %c0_171 = arith.constant 0 : index
      %511 = vector.load %arg9[%c0_170, %c0_171] : memref<128x512xf32, #tpu.memory_space<vmem>>, vector<128x512xf32>
      %cst_172 = arith.constant dense<0.000000e+00> : vector<8x512xf32>
      %512 = tpu.matmul %504, %511, %cst_172 {dimension_numbers = #tpu.dot_dimension_numbers<[1], [0], [0], [1], [0, 0, 1, 1], [], []>} : vector<8x128xf32>, vector<128x512xf32>, vector<8x512xf32> -> vector<8x512xf32>
      %513 = arith.addf %510, %512 : vector<8x512xf32>
      %514 = vector.extract_strided_slice %513 {offsets = [0, 0], sizes = [8, 128], strides = [1, 1]} : vector<8x512xf32> to vector<8x128xf32>
      %515 = arith.negf %514 : vector<8x128xf32>
      %516 = math.exp %515 : vector<8x128xf32>
      %cst_173 = arith.constant 1.000000e+00 : f32
      %517 = vector.broadcast %cst_173 : f32 to vector<8x128xf32>
      %518 = arith.addf %517, %516 : vector<8x128xf32>
      %519 = arith.divf %517, %518 : vector<8x128xf32>
      %520 = vector.extract_strided_slice %513 {offsets = [0, 128], sizes = [8, 128], strides = [1, 1]} : vector<8x512xf32> to vector<8x128xf32>
      %521 = arith.negf %520 : vector<8x128xf32>
      %522 = math.exp %521 : vector<8x128xf32>
      %cst_174 = arith.constant 1.000000e+00 : f32
      %523 = vector.broadcast %cst_174 : f32 to vector<8x128xf32>
      %524 = arith.addf %523, %522 : vector<8x128xf32>
      %525 = arith.divf %523, %524 : vector<8x128xf32>
      %526 = vector.extract_strided_slice %513 {offsets = [0, 256], sizes = [8, 128], strides = [1, 1]} : vector<8x512xf32> to vector<8x128xf32>
      %527 = math.tanh %526 : vector<8x128xf32>
      %528 = vector.extract_strided_slice %513 {offsets = [0, 384], sizes = [8, 128], strides = [1, 1]} : vector<8x512xf32> to vector<8x128xf32>
      %529 = arith.negf %528 : vector<8x128xf32>
      %530 = math.exp %529 : vector<8x128xf32>
      %cst_175 = arith.constant 1.000000e+00 : f32
      %531 = vector.broadcast %cst_175 : f32 to vector<8x128xf32>
      %532 = arith.addf %531, %530 : vector<8x128xf32>
      %533 = arith.divf %531, %532 : vector<8x128xf32>
      %534 = arith.mulf %525, %502 : vector<8x128xf32>
      %535 = arith.mulf %519, %527 : vector<8x128xf32>
      %536 = arith.addf %534, %535 : vector<8x128xf32>
      %537 = math.tanh %536 : vector<8x128xf32>
      %538 = arith.mulf %533, %537 : vector<8x128xf32>
      %539 = arith.index_cast %508 : i32 to index
      %c0_176 = arith.constant 0 : index
      %540 = vector.load %arg15[%539, %c0_176] : memref<64x128xf32, #tpu.memory_space<vmem>>, vector<8x128xf32>
      tpu.vector_store %arg15[%539, %c0_176], %538 {strides = array<i32>} : memref<64x128xf32, #tpu.memory_space<vmem>>, vector<8x128xf32>,
      %c7_i32_177 = arith.constant 7 : i32
      %c8_i32_178 = arith.constant 8 : i32
      %541 = arith.muli %c7_i32_177, %c8_i32_178 : i32
      %542 = tpu.assume_multiple %541, 8 : i32
      %543 = arith.index_cast %542 : i32 to index
      %c0_179 = arith.constant 0 : index
      %544 = vector.load %arg16[%543, %c0_179] : memref<64x512xf32, #tpu.memory_space<vmem>>, vector<8x512xf32>
      %c0_180 = arith.constant 0 : index
      %c0_181 = arith.constant 0 : index
      %545 = vector.load %arg9[%c0_180, %c0_181] : memref<128x512xf32, #tpu.memory_space<vmem>>, vector<128x512xf32>
      %cst_182 = arith.constant dense<0.000000e+00> : vector<8x512xf32>
      %546 = tpu.matmul %538, %545, %cst_182 {dimension_numbers = #tpu.dot_dimension_numbers<[1], [0], [0], [1], [0, 0, 1, 1], [], []>} : vector<8x128xf32>, vector<128x512xf32>, vector<8x512xf32> -> vector<8x512xf32>
      %547 = arith.addf %544, %546 : vector<8x512xf32>
      %548 = vector.extract_strided_slice %547 {offsets = [0, 0], sizes = [8, 128], strides = [1, 1]} : vector<8x512xf32> to vector<8x128xf32>
      %549 = arith.negf %548 : vector<8x128xf32>
      %550 = math.exp %549 : vector<8x128xf32>
      %cst_183 = arith.constant 1.000000e+00 : f32
      %551 = vector.broadcast %cst_183 : f32 to vector<8x128xf32>
      %552 = arith.addf %551, %550 : vector<8x128xf32>
      %553 = arith.divf %551, %552 : vector<8x128xf32>
      %554 = vector.extract_strided_slice %547 {offsets = [0, 128], sizes = [8, 128], strides = [1, 1]} : vector<8x512xf32> to vector<8x128xf32>
      %555 = arith.negf %554 : vector<8x128xf32>
      %556 = math.exp %555 : vector<8x128xf32>
      %cst_184 = arith.constant 1.000000e+00 : f32
      %557 = vector.broadcast %cst_184 : f32 to vector<8x128xf32>
      %558 = arith.addf %557, %556 : vector<8x128xf32>
      %559 = arith.divf %557, %558 : vector<8x128xf32>
      %560 = vector.extract_strided_slice %547 {offsets = [0, 256], sizes = [8, 128], strides = [1, 1]} : vector<8x512xf32> to vector<8x128xf32>
      %561 = math.tanh %560 : vector<8x128xf32>
      %562 = vector.extract_strided_slice %547 {offsets = [0, 384], sizes = [8, 128], strides = [1, 1]} : vector<8x512xf32> to vector<8x128xf32>
      %563 = arith.negf %562 : vector<8x128xf32>
      %564 = math.exp %563 : vector<8x128xf32>
      %cst_185 = arith.constant 1.000000e+00 : f32
      %565 = vector.broadcast %cst_185 : f32 to vector<8x128xf32>
      %566 = arith.addf %565, %564 : vector<8x128xf32>
      %567 = arith.divf %565, %566 : vector<8x128xf32>
      %568 = arith.mulf %559, %536 : vector<8x128xf32>
      %569 = arith.mulf %553, %561 : vector<8x128xf32>
      %570 = arith.addf %568, %569 : vector<8x128xf32>
      %571 = math.tanh %570 : vector<8x128xf32>
      %572 = arith.mulf %567, %571 : vector<8x128xf32>
      %573 = arith.index_cast %542 : i32 to index
      %c0_186 = arith.constant 0 : index
      %574 = vector.load %arg15[%573, %c0_186] : memref<64x128xf32, #tpu.memory_space<vmem>>, vector<8x128xf32>
      tpu.vector_store %arg15[%573, %c0_186], %572 {strides = array<i32>} : memref<64x128xf32, #tpu.memory_space<vmem>>, vector<8x128xf32>,
      %c8_i32_187 = arith.constant 8 : i32
    } else {
    }
    %c0 = arith.constant 0 : index
    %c0_1 = arith.constant 0 : index
    %3 = vector.load %arg15[%c0, %c0_1] : memref<64x128xf32, #tpu.memory_space<vmem>>, vector<64x128xf32>
    %c0_2 = arith.constant 0 : index
    %c0_3 = arith.constant 0 : index
    %4 = vector.load %arg11[%c0_2, %c0_3] : memref<128x128xf32, #tpu.memory_space<vmem>>, vector<128x128xf32>
    %cst = arith.constant dense<0.000000e+00> : vector<64x128xf32>
    %5 = tpu.matmul %3, %4, %cst {dimension_numbers = #tpu.dot_dimension_numbers<[1], [0], [0], [1], [0, 0, 1, 1], [], []>} : vector<64x128xf32>, vector<128x128xf32>, vector<64x128xf32> -> vector<64x128xf32>
    %c0_4 = arith.constant 0 : index
    %c0_5 = arith.constant 0 : index
    %6 = vector.load %arg12[%c0_4, %c0_5] : memref<1x128xf32, #tpu.memory_space<vmem>>, vector<1x128xf32>
    %7 = vector.broadcast %6 : vector<1x128xf32> to vector<64x128xf32>
    %8 = arith.addf %5, %7 : vector<64x128xf32>
    %c0_6 = arith.constant 0 : index
    %c0_7 = arith.constant 0 : index
    %9 = vector.load %arg13[%c0_6, %c0_7] : memref<64x128xf32, #tpu.memory_space<vmem>>, vector<64x128xf32>
    tpu.vector_store %arg13[%c0_6, %c0_7], %8 {strides = array<i32>} : memref<64x128xf32, #tpu.memory_space<vmem>>, vector<64x128xf32>,
    return
  }
  func.func @transform_0(%arg0: i32) -> (i32, i32) {
    %c0_i32 = arith.constant 0 : i32
    %c0_i32_0 = arith.constant 0 : i32
    %c0_i32_1 = arith.constant 0 : i32
    return %c0_i32, %c0_i32_0 : i32, i32
  }
  func.func @transform_1(%arg0: i32) -> (i32, i32) {
    %c0_i32 = arith.constant 0 : i32
    %c0_i32_0 = arith.constant 0 : i32
    %c0_i32_1 = arith.constant 0 : i32
    return %c0_i32, %c0_i32_0 : i32, i32
  }
  func.func @transform_2(%arg0: i32) -> (i32, i32) {
    %c0_i32 = arith.constant 0 : i32
    %c0_i32_0 = arith.constant 0 : i32
    %c0_i32_1 = arith.constant 0 : i32
    return %c0_i32, %c0_i32_0 : i32, i32
  }
  func.func @transform_3(%arg0: i32) -> (i32, i32) {
    %c0_i32 = arith.constant 0 : i32
    %c0_i32_0 = arith.constant 0 : i32
    %c0_i32_1 = arith.constant 0 : i32
    return %c0_i32, %c0_i32_0 : i32, i32
  }
  func.func @transform_4(%arg0: i32) -> (i32, i32) {
    %c0_i32 = arith.constant 0 : i32
    %c0_i32_0 = arith.constant 0 : i32
    %c0_i32_1 = arith.constant 0 : i32
    return %c0_i32, %c0_i32_0 : i32, i32
  }
  func.func @transform_5(%arg0: i32) -> (i32, i32) {
    %c0_i32 = arith.constant 0 : i32
    %c0_i32_0 = arith.constant 0 : i32
    %c0_i32_1 = arith.constant 0 : i32
    return %c0_i32, %c0_i32_0 : i32, i32
  }
  func.func @transform_6(%arg0: i32) -> (i32, i32) {
    %c0_i32 = arith.constant 0 : i32
    %c0_i32_0 = arith.constant 0 : i32
    %c0_i32_1 = arith.constant 0 : i32
    return %c0_i32, %c0_i32_0 : i32, i32
  }
  func.func @transform_7(%arg0: i32) -> (i32, i32) {
    %c0_i32 = arith.constant 0 : i32
    %c0_i32_0 = arith.constant 0 : i32
    %c0_i32_1 = arith.constant 0 : i32
    return %c0_i32, %c0_i32_0 : i32, i32
  }
  func.func @transform_8(%arg0: i32) -> (i32, i32) {
    %c0_i32 = arith.constant 0 : i32
    %c0_i32_0 = arith.constant 0 : i32
    %c0_i32_1 = arith.constant 0 : i32
    return %c0_i32, %c0_i32_0 : i32, i32
  }
  func.func @transform_9(%arg0: i32) -> (i32, i32) {
    %c0_i32 = arith.constant 0 : i32
    %c0_i32_0 = arith.constant 0 : i32
    %c0_i32_1 = arith.constant 0 : i32
    return %c0_i32, %c0_i32_0 : i32, i32
  }
  func.func @transform_10(%arg0: i32) -> (i32, i32) {
    %c0_i32 = arith.constant 0 : i32
    %c0_i32_0 = arith.constant 0 : i32
    return %c0_i32, %arg0 : i32, i32
  }
  func.func @transform_11(%arg0: i32) -> (i32, i32) {
    %c0_i32 = arith.constant 0 : i32
    %c0_i32_0 = arith.constant 0 : i32
    return %c0_i32, %arg0 : i32, i32
  }
  func.func @transform_12(%arg0: i32) -> (i32, i32) {
    %c0_i32 = arith.constant 0 : i32
    %c0_i32_0 = arith.constant 0 : i32
    return %c0_i32, %arg0 : i32, i32
  }
}

</mosaic_0001>

<bundles_post_ra>
// kernel: tpu_custom_call.1
= control target key start
LH: loop header
LB: loop body
LE: loop exit
PB: predicated region body
PF: predicated region fallthrough
CT: control target
= control target key end

     0   :  { %17 = vsyncpa [#allocation6], 0  ;;  %s7574_s0 = inlined_call_operand.vmem [shape: f32[64,16], index: 0, kind: input, shape index: {}]   ;;  %s7575_s1 = inlined_call_operand.vmem [shape: f32[8,64], index: 1, kind: input, shape index: {}]   ;;  %s7576_s2 = inlined_call_operand.vmem [shape: f32[64,128], index: 2, kind: input, shape index: {}]   ;;  %s7577_s3 = inlined_call_operand.vmem [shape: f32[1,128], index: 3, kind: input, shape index: {}]   ;;  %s7578_s4 = inlined_call_operand.hbm [shape: f32[16,512], index: 4, kind: input, shape index: {}]   ;;  %s7579_s5 = inlined_call_operand.hbm [shape: f32[128,512], index: 5, kind: input, shape index: {}]   ;;  %s7580_s6 = inlined_call_operand.vmem [shape: f32[1,512], index: 6, kind: input, shape index: {}]   ;;  %s7581_s7 = inlined_call_operand.hbm [shape: f32[128,512], index: 7, kind: input, shape index: {}]   ;;  %s7582_s8 = inlined_call_operand.hbm [shape: f32[128,512], index: 8, kind: input, shape index: {}]   ;;  %s7583_s9 = inlined_call_operand.vmem [shape: f32[1,512], index: 9, kind: input, shape index: {}]   ;;  %s7584_s10 = inlined_call_operand.hbm [shape: f32[128,128], index: 10, kind: input, shape index: {}]   ;;  %s7585_s11 = inlined_call_operand.vmem [shape: f32[1,128], index: 11, kind: input, shape index: {}]   ;;  %s7586_s12 = inlined_call_operand.hbm [shape: f32[64,128], index: 12, kind: output, shape index: {}]  }
   0x1   :  { %18 = vsyncpa [#allocation9], 0 }
   0x2   :  { %19 = vsyncpa [#allocation12], 0 }
   0x3   :  { %20 = vsyncpa [#allocation7], 0  ;;  %s5468_s21 = smov [#allocation8]   ;;  %s5469_s23 = smov [#allocation11]  }
   0x4   :  { %s46_s22 = sshll.u32 %s5468_s21, 4  ;;  %s72_s24 = sshll.u32 %s5469_s23, 4  ;;  %s47_s22 = int_to_ptr.vmem [resolvable:$true] %s46_s22  ;;  %s73_s24 = int_to_ptr.vmem [resolvable:$true] %s72_s24 }
   0x5   :  { %s5348_s25 = scalar_lea.vmem %s47_s22, 8192  ;;  %p5353_p1 = scmp.lt.s32.totalorder %s47_s22, %s47_s22 }
   0x6   :  { %p5349_p0 = scmp.ne.s32.totalorder %s47_s22, %s5348_s25  ;;  %p5354_p2 = scmp.lt.s32.totalorder %s5348_s25, %s5348_s25 }
   0x8   :  { %p5355_p3 = por %p5354_p2, %p5353_p1 }
   0xa   :  { %p5356_p4 = pnand %p5355_p3, %p5349_p0 }
   0xc   :  { %5359 = shalt.err (!%p5356_p4)
}
   0xd   :  { %s5470_s26 = smov 512   ;;  %s5471_s27 = smov 32  }
   0xe   :  { %52 = dma.hbm_to_vmem [thread:$0]  %s7579_s5, 8192, %s47_s22, [#allocation9], %s5470_s26, %s5470_s26, %s5471_s27  }
   0xf   :  { %s5368_s30 = scalar_lea.vmem %s73_s24, 8192  ;;  %p5373_p6 = scmp.lt.s32.totalorder %s73_s24, %s73_s24 }
  0x10   :  { %p5369_p5 = scmp.ne.s32.totalorder %s73_s24, %s5368_s30  ;;  %p5374_p7 = scmp.lt.s32.totalorder %s5368_s30, %s5368_s30 }
  0x12   :  { %p5375_p8 = por %p5374_p7, %p5373_p6 }
  0x14   :  { %p5376_p9 = pnand %p5375_p8, %p5369_p5 }
  0x16   :  { %5379 = shalt.err (!%p5376_p9)
}
  0x17   :  { %78 = dma.hbm_to_vmem [thread:$0]  %s7582_s8, 8192, %s73_s24, [#allocation12], %s5470_s26, %s5470_s26, %s5471_s27  }
  0x18   :  { %s5472_s15 = smov [#allocation5]   ;;  %s5473_s17 = smov [#allocation10]  }
  0x19   :  { %s34_s16 = sshll.u32 %s5472_s15, 4  ;;  %s60_s18 = sshll.u32 %s5473_s17, 4  ;;  %s35_s16 = int_to_ptr.vmem [resolvable:$true] %s34_s16  ;;  %s61_s18 = int_to_ptr.vmem [resolvable:$true] %s60_s18 }
  0x1a   :  { %s5388_s5 = scalar_lea.vmem %s35_s16, 1024  ;;  %p5393_p11 = scmp.lt.s32.totalorder %s35_s16, %s35_s16 }
  0x1b   :  { %p5389_p10 = scmp.ne.s32.totalorder %s35_s16, %s5388_s5  ;;  %p5394_p12 = scmp.lt.s32.totalorder %s5388_s5, %s5388_s5 }
  0x1d   :  { %p5395_p13 = por %p5394_p12, %p5393_p11 }
  0x1f   :  { %p5396_p0 = pnand %p5395_p13, %p5389_p10 }
  0x21   :  { %5399 = shalt.err (!%p5396_p0)
}
  0x22   :  { %40 = dma.hbm_to_vmem [thread:$0]  %s7578_s4, 1024, %s35_s16, [#allocation6], %s5470_s26, %s5470_s26, %s5471_s27  }
  0x23   :  { %s5408_s8 = scalar_lea.vmem %s61_s18, 8192  ;;  %p5413_p2 = scmp.lt.s32.totalorder %s61_s18, %s61_s18 }
  0x24   :  { %p5409_p1 = scmp.ne.s32.totalorder %s61_s18, %s5408_s8  ;;  %p5414_p3 = scmp.lt.s32.totalorder %s5408_s8, %s5408_s8 }
  0x26   :  { %p5415_p4 = por %p5414_p3, %p5413_p2 }
  0x28   :  { %p5416_p5 = pnand %p5415_p4, %p5409_p1 }
  0x2a   :  { %5419 = shalt.err (!%p5416_p5)
}
  0x2b   :  { %66 = dma.hbm_to_vmem [thread:$0]  %s7581_s7, 8192, %s61_s18, [#allocation9], %s5470_s26, %s5470_s26, %s5471_s27  }
  0x2c   :  { %s5474_s23 = smov [#allocation13]  }
  0x2d   :  { %s86_s24 = sshll.u32 %s5474_s23, 4  ;;  %s87_s24 = int_to_ptr.vmem [resolvable:$true] %s86_s24 }
  0x2e   :  { %s5428_s25 = scalar_lea.vmem %s87_s24, 2048  ;;  %p5433_p7 = scmp.lt.s32.totalorder %s87_s24, %s87_s24 }
  0x2f   :  { %p5429_p6 = scmp.ne.s32.totalorder %s87_s24, %s5428_s25  ;;  %p5434_p8 = scmp.lt.s32.totalorder %s5428_s25, %s5428_s25 }
  0x31   :  { %p5435_p9 = por %p5434_p8, %p5433_p7 }
  0x33   :  { %p5436_p10 = pnand %p5435_p9, %p5429_p6 }
  0x35   :  { %5439 = shalt.err (!%p5436_p10)
}
  0x36   :  { %s5475_s4 = smov 128   ;;  %s5476_s28 = smov 8  }
  0x37   :  { %92 = dma.hbm_to_vmem [thread:$0]  %s7584_s10, 2048, %s87_s24, [#allocation12], %s5475_s4, %s5475_s4, %s5476_s28  }
  0x38   :  { %5460 = dma.done.wait [#allocation6], 1024  }
  0x39   :  { %5461 = vsyncadd [#allocation6], 4294966272 }
  0x3a   :  { %5462 = dma.done.wait [#allocation9], 16384  }
  0x3b   :  { %5463 = vsyncadd [#allocation9], 4294950912 }
  0x3c   :  { %5464 = dma.done.wait [#allocation12], 10240  }
  0x3d   :  { %5465 = vsyncadd [#allocation12], 4294957056  ;;  %v7591_v0 = vmov 0.0   ;;  %vm5478_vm0 = vmmov 0   ;;  %v122_v1 = vld [vmem:[%s7576_s2 + $0x38] sm:$0xff]  ;;  %v217_v2 = vld [vmem:[#allocation5 + $0x28] sm:$0xff] }
  0x3e   :  { %5009 = vmatprep.subr.mxu0 %v7591_v0  ;;  %331 = vmatprep.mubr.f32.mxu1 %v7591_v0  ;;  %v216_v3 = vld [vmem:[#allocation5 + $0x20] sm:$0xff]  ;;  %v121_v4 = vld [vmem:[%s7576_s2 + $0x30] sm:$0xff]  ;;  %v213_v5 = vld [vmem:[#allocation5 + $0x8] sm:$0xff]  ;;  %vm242_vm1 = vcmask 130048   ;;  %vm130_vm2 = vcmask 523264  }
  0x3f   :  { %5025 = vmatprep.mubr.msk.f32.mxu0 %vm5478_vm0, %v7591_v0  ;;  %5010 = vmatpush3.msra.mxu0 %v122_v1  ;;  %v212_v6 = vld [vmem:[#allocation5] sm:$0xff]  ;;  %v120_v7 = vld [vmem:[%s7576_s2 + $0x28] sm:$0xff]  ;;  %v118_v14 = vld [vmem:[%s7576_s2 + $0x18] sm:$0xff] }
  0x40   :  { %295 = vmatprep.subr.mxu1 %v217_v2  ;;  %5011 = vmatprep.subr.mxu0 %v7591_v0  ;;  %v5591_v8 = vld [vmem:[%s7574_s0] sm:$0xff]  ;;  %v5593_v9 = vld [vmem:[#allocation8 + $0x1e8] sm:$0xff]  ;;  %v117_v18 = vld [vmem:[%s7576_s2 + $0x10] sm:$0xff] }
  0x41   :  { %296 = vmatpush1.msra.mxu1 %v216_v3  ;;  %5012 = vmatpush3.msra.mxu0 %v121_v4  ;;  %v5596_v10 = vld [vmem:[#allocation8 + $0x1e0] sm:$0xff]  ;;  %v5603_v12 = vld [vmem:[#allocation8 + $0x1c8] sm:$0xff]  ;;  %v5644_v22 = vld [vmem:[%s7574_s0 + $0x10] sm:$0xff] }
  0x42   :  { %297 = vmatprep.subr.mxu1 %v213_v5  ;;  %5013 = vmatprep.subr.mxu0 %v7591_v0  ;;  %v119_v11 = vld [vmem:[%s7576_s2 + $0x20] sm:$0xff]  ;;  %7776 = vst [vmem:[#allocation19_spill] sm:$0xff] %v5603_v12  ;;  %v5616_v15 = vld [vmem:[%s7574_s0 + $0x8] sm:$0xff]  ;;  %v219_v28 = vld [vmem:[#allocation5 + $0x38] sm:$0xff] }
  0x43   :  { %298 = vmatpush1.msra.mxu1 %v212_v6  ;;  %5014 = vmatpush3.msra.mxu0 %v120_v7  ;;  %v5607_v13 = vld [vmem:[#allocation8 + $0x1c0] sm:$0xff]  ;;  %v5620_v16 = vld [vmem:[#allocation8 + $0x1a8] sm:$0xff]  ;;  %v218_v30 = vld [vmem:[#allocation5 + $0x30] sm:$0xff] }
  0x44   :  { %4911 = vmatmul.mubr.msk.f32.vlgmr.msra.gmra.mxu1 %vm242_vm1, %v5591_v8  ;;  %596 = vmatprep.subr.mxu1 %v5593_v9  ;;  %7777 = vst [vmem:[#allocation20_spill] sm:$0xff] %v5607_v13  ;;  %v5624_v17 = vld [vmem:[#allocation8 + $0x1a0] sm:$0xff]  ;;  %v5631_v19 = vld [vmem:[#allocation8 + $0x188] sm:$0xff]  ;;  %v5673_v31 = vld [vmem:[%s7574_s0 + $0x18] sm:$0xff] }
  0x45   :  { %5015 = vmatprep.subr.mxu0 %v7591_v0  ;;  %597 = vmatpush1.msra.mxu1 %v5596_v10  ;;  %v5635_v20 = vld [vmem:[#allocation8 + $0x180] sm:$0xff]  ;;  %v116_v21 = vld [vmem:[%s7576_s2 + $0x8] sm:$0xff]  ;;  %v215_v33 = vld [vmem:[#allocation5 + $0x18] sm:$0xff] }
  0x46   :  { %5016 = vmatpush3.msra.mxu0 %v119_v11  ;;  %598 = vmatprep.subr.mxu1 %v5603_v12  ;;  %v5648_v23 = vld [vmem:[#allocation8 + $0x168] sm:$0xff]  ;;  %v5652_v24 = vld [vmem:[#allocation8 + $0x160] sm:$0xff]  ;;  %v214_v35 = vld [vmem:[#allocation5 + $0x10] sm:$0xff] }
  0x47   :  { %5017 = vmatprep.subr.mxu0 %v7591_v0  ;;  %337 = vmatprep.mubr.f32.mxu1 %v7591_v0  ;;  %v115_v25 = vld [vmem:[%s7576_s2] sm:$0xff]  ;;  %v5659_v26 = vld [vmem:[#allocation8 + $0x148] sm:$0xff]  ;;  %v5690_v38 = vld [vmem:[#allocation8 + $0x1f8] sm:$0xff] }
  0x48   :  { %599 = vmatpush1.msra.mxu1 %v5607_v13  ;;  %5018 = vmatpush3.msra.mxu0 %v118_v14  ;;  %v114_v27 = vld [vmem:[%s7575_s1] sm:$0xff]  ;;  %v5675_v32 = vld [vmem:[#allocation8 + $0x128] sm:$0xff]  ;;  %v5701_v41 = vld [vmem:[#allocation8 + $0x1f0] sm:$0xff] }
  0x49   :  { %4912 = vmatmul.mubr.msk.f32.gmra.mxu1 %vm242_vm1, %v5616_v15  ;;  %600 = vmatprep.subr.mxu1 %v5620_v16  ;;  %v5667_v29 = vld [vmem:[#allocation8 + $0x140] sm:$0xff]  ;;  %v5684_v36 = vld [vmem:[#allocation8 + $0x108] sm:$0xff]  ;;  %v5708_v43 = vld [vmem:[#allocation8 + $0x1d8] sm:$0xff] }
  0x4a   :  { %5019 = vmatprep.subr.mxu0 %v7591_v0  ;;  %601 = vmatpush1.msra.mxu1 %v5624_v17  ;;  %v5678_v34 = vld [vmem:[#allocation8 + $0x120] sm:$0xff]  ;;  %v5699_v40 = vld [vmem:[#allocation8 + $0xe8] sm:$0xff]  ;;  %v5717_v45 = vld [vmem:[#allocation8 + $0x1d0] sm:$0xff] }
  0x4b   :  { %5020 = vmatpush3.msra.mxu0 %v117_v18  ;;  %602 = vmatprep.subr.mxu1 %v5631_v19  ;;  %v5687_v37 = vld [vmem:[#allocation8 + $0x100] sm:$0xff]  ;;  %v5713_v44 = vld [vmem:[#allocation8 + $0xc8] sm:$0xff]  ;;  %v5725_v47 = vld [vmem:[#allocation8 + $0x1b8] sm:$0xff] }
  0x4c   :  { %5021 = vmatprep.subr.mxu0 %v7591_v0  ;;  %343 = vmatprep.mubr.f32.mxu1 %v7591_v0  ;;  %v5695_v39 = vld [vmem:[%s7574_s0 + $0x20] sm:$0xff]  ;;  %v5730_v48 = vld [vmem:[%s7574_s0 + $0x28] sm:$0xff]  ;;  %v5736_v50 = vld [vmem:[#allocation8 + $0x1b0] sm:$0xff] }
  0x4d   :  { %603 = vmatpush1.msra.mxu1 %v5635_v20  ;;  %5022 = vmatpush3.msra.mxu0 %v116_v21  ;;  %v5706_v42 = vld [vmem:[#allocation8 + $0xe0] sm:$0xff]  ;;  %v5734_v49 = vld [vmem:[#allocation8 + $0xa8] sm:$0xff]  ;;  %v5743_v52 = vld [vmem:[#allocation8 + $0x198] sm:$0xff] }
  0x4e   :  { %4913 = vmatmul.mubr.msk.f32.gmra.mxu1 %vm242_vm1, %v5644_v22  ;;  %604 = vmatprep.subr.mxu1 %v5648_v23  ;;  %v5721_v46 = vld [vmem:[#allocation8 + $0xc0] sm:$0xff]  ;;  %v5748_v53 = vld [vmem:[#allocation8 + $0x88] sm:$0xff]  ;;  %v5752_v54 = vld [vmem:[#allocation8 + $0x190] sm:$0xff] }
  0x4f   :  { %5023 = vmatprep.subr.mxu0 %v7591_v0  ;;  %605 = vmatpush1.msra.mxu1 %v5652_v24  ;;  %v5741_v51 = vld [vmem:[#allocation8 + $0xa0] sm:$0xff]  ;;  %7778 = vst [vmem:[#allocation21_spill] sm:$0xff] %v5748_v53  ;;  %v5760_v56 = vld [vmem:[#allocation8 + $0x178] sm:$0xff]  ;;  %v5765_v57 = vld [vmem:[%s7574_s0 + $0x30] sm:$0xff] }
  0x50   :  { %5024 = vmatpush3.msra.mxu0 %v115_v25  ;;  %606 = vmatprep.subr.mxu1 %v5659_v26  ;;  %v5756_v55 = vld [vmem:[#allocation8 + $0x80] sm:$0xff]  ;;  %v5769_v58 = vld [vmem:[#allocation8 + $0x68] sm:$0xff]  ;;  %v5771_v59 = vld [vmem:[#allocation8 + $0x170] sm:$0xff] }
  0x51   :  { %5026 = vmatmul.mubr.msk.f32.vlgmr.msra.gmra.mxu0 %vm130_vm2, %v114_v27  ;;  %349 = vmatprep.mubr.f32.mxu1 %v7591_v0  ;;  %7779 = vst [vmem:[#allocation22_spill] sm:$0xff] %v5756_v55  ;;  %7780 = vst [vmem:[#allocation23_spill] sm:$0xff] %v5769_v58  ;;  %v5776_v60 = vld [vmem:[#allocation8 + $0x60] sm:$0xff]  ;;  %v5778_v61 = vld [vmem:[#allocation8 + $0x158] sm:$0xff] }
  0x52   :  { %408 = vmatprep.subr.mxu0 %v219_v28  ;;  %607 = vmatpush1.msra.mxu1 %v5667_v29  ;;  %7781 = vst [vmem:[#allocation24_spill] sm:$0xff] %v5776_v60  ;;  %v5783_v62 = vld [vmem:[#allocation8 + $0x48] sm:$0xff]  ;;  %v5787_v63 = vld [vmem:[#allocation8 + $0x150] sm:$0xff]  ;;  %v5791_v1 = vld [vmem:[#allocation8 + $0x40] sm:$0xff] }
  0x53   :  { %409 = vmatpush1.msra.mxu0 %v218_v30  ;;  %4914 = vmatmul.mubr.msk.f32.gmra.mxu1 %vm242_vm1, %v5673_v31  ;;  %7782 = vst [vmem:[#allocation25_spill] sm:$0xff] %v5783_v62  ;;  %7783 = vst [vmem:[#allocation26_spill] sm:$0xff] %v5791_v1  ;;  %v5795_v2 = vld [vmem:[#allocation8 + $0x138] sm:$0xff]  ;;  %v5804_v4 = vld [vmem:[#allocation8 + $0x28] sm:$0xff] }
  0x54   :  { %608 = vmatprep.subr.mxu1 %v5675_v32  ;;  %410 = vmatprep.subr.mxu0 %v215_v33  ;;  %v5800_v3 = vld [vmem:[%s7574_s0 + $0x38] sm:$0xff]  ;;  %7784 = vst [vmem:[#allocation27_spill] sm:$0xff] %v5804_v4  ;;  %v5806_v5 = vld [vmem:[#allocation8 + $0x130] sm:$0xff]  ;;  %v5811_v6 = vld [vmem:[#allocation8 + $0x20] sm:$0xff] }
  0x55   :  { %609 = vmatpush1.msra.mxu1 %v5678_v34  ;;  %411 = vmatpush1.msra.mxu0 %v214_v35  ;;  %7785 = vst [vmem:[#allocation28_spill] sm:$0xff] %v5811_v6  ;;  %v5813_v7 = vld [vmem:[#allocation8 + $0x118] sm:$0xff]  ;;  %v5822_v11 = vld [vmem:[#allocation8 + $0x110] sm:$0xff]  ;;  %v5824_v14 = vld [vmem:[#allocation8] sm:$0xff] }
  0x56   :  { %444 = vmatprep.mubr.f32.mxu0 %v7591_v0  ;;  %610 = vmatprep.subr.mxu1 %v5684_v36  ;;  %7787 = vst [vmem:[#allocation30_spill] sm:$0xff] %v5824_v14  ;;  %v5834_v18 = vld [vmem:[#allocation8 + $0xf0] sm:$0xff]  ;;  %v5839_v21 = vld [vmem:[#allocation8 + $0xd8] sm:$0xff] }
  0x57   :  { %355 = vmatprep.mubr.f32.mxu1 %v7591_v0  ;;  %4919 = vmatmul.mubr.msk.f32.vlgmr.msra.gmra.mxu0 %vm242_vm1, %v5591_v8  ;;  %v5818_v8 = vld [vmem:[#allocation8 + $0x8] sm:$0xff]  ;;  %v5847_v25 = vld [vmem:[#allocation8 + $0xb8] sm:$0xff]  ;;  %v5850_v27 = vld [vmem:[#allocation8 + $0xb0] sm:$0xff] }
  0x58   :  { %611 = vmatpush1.msra.mxu1 %v5687_v37  ;;  %667 = vmatprep.subr.mxu0 %v5690_v38  ;;  %7786 = vst [vmem:[#allocation29_spill] sm:$0xff] %v5818_v8  ;;  %7788 = vst [vmem:[#allocation31_spill] sm:$0xff] %v5850_v27  ;;  %v5854_v28 = vld [vmem:[#allocation8 + $0x98] sm:$0xff]  ;;  %v5860_v30 = vld [vmem:[#allocation8 + $0x90] sm:$0xff] }
  0x59   :  { %4915 = vmatmul.mubr.msk.f32.gmra.mxu1 %vm242_vm1, %v5695_v39  ;;  %612 = vmatprep.subr.mxu1 %v5699_v40  ;;  %7789 = vst [vmem:[#allocation32_spill] sm:$0xff] %v5854_v28  ;;  %7790 = vst [vmem:[#allocation33_spill] sm:$0xff] %v5860_v30  ;;  %v5867_v33 = vld [vmem:[#allocation8 + $0x70] sm:$0xff]  ;;  %v5871_v35 = vld [vmem:[#allocation8 + $0x58] sm:$0xff] }
  0x5a   :  { %668 = vmatpush1.msra.mxu0 %v5701_v41  ;;  %613 = vmatpush1.msra.mxu1 %v5706_v42  ;;  %7792 = vst [vmem:[#allocation35_spill] sm:$0xff] %v5867_v33  ;;  %7793 = vst [vmem:[#allocation36_spill] sm:$0xff] %v5871_v35 }
  0x5b   :  { %669 = vmatprep.subr.mxu0 %v5708_v43  ;;  %450 = vmatprep.mubr.f32.mxu0 %v7591_v0 }
  0x5c   :  { %614 = vmatprep.subr.mxu1 %v5713_v44  ;;  %670 = vmatpush1.msra.mxu0 %v5717_v45 }
  0x5d   :  { %361 = vmatprep.mubr.f32.mxu1 %v7591_v0  ;;  %4920 = vmatmul.mubr.msk.f32.gmra.mxu0 %vm242_vm1, %v5616_v15  ;;  %v5830_v15 = vld [vmem:[#allocation8 + $0xf8] sm:$0xff] }
  0x5e   :  { %615 = vmatpush1.msra.mxu1 %v5721_v46  ;;  %671 = vmatprep.subr.mxu0 %v5725_v47 }
  0x5f   :  { %4916 = vmatmul.mubr.msk.f32.gmra.mxu1 %vm242_vm1, %v5730_v48  ;;  %616 = vmatprep.subr.mxu1 %v5734_v49 }
  0x60   :  { %672 = vmatpush1.msra.mxu0 %v5736_v50  ;;  %617 = vmatpush1.msra.mxu1 %v5741_v51 }
  0x61   :  { %673 = vmatprep.subr.mxu0 %v5743_v52  ;;  %456 = vmatprep.mubr.f32.mxu0 %v7591_v0 }
  0x62   :  { %618 = vmatprep.subr.mxu1 %v5748_v53  ;;  %674 = vmatpush1.msra.mxu0 %v5752_v54 }
  0x63   :  { %367 = vmatprep.mubr.f32.mxu1 %v7591_v0  ;;  %4921 = vmatmul.mubr.msk.f32.gmra.mxu0 %vm242_vm1, %v5644_v22  ;;  %v5843_v22 = vld [vmem:[#allocation8 + $0xd0] sm:$0xff] }
  0x64   :  { %619 = vmatpush1.msra.mxu1 %v5756_v55  ;;  %675 = vmatprep.subr.mxu0 %v5760_v56 }
  0x65   :  { %4917 = vmatmul.mubr.msk.f32.gmra.mxu1 %vm242_vm1, %v5765_v57  ;;  %620 = vmatprep.subr.mxu1 %v5769_v58 }
  0x66   :  { %676 = vmatpush1.msra.mxu0 %v5771_v59  ;;  %621 = vmatpush1.msra.mxu1 %v5776_v60 }
  0x67   :  { %677 = vmatprep.subr.mxu0 %v5778_v61  ;;  %462 = vmatprep.mubr.f32.mxu0 %v7591_v0 }
  0x68   :  { %622 = vmatprep.subr.mxu1 %v5783_v62  ;;  %678 = vmatpush1.msra.mxu0 %v5787_v63 }
  0x69   :  { %373 = vmatprep.mubr.f32.mxu1 %v7591_v0  ;;  %4922 = vmatmul.mubr.msk.f32.gmra.mxu0 %vm242_vm1, %v5673_v31  ;;  %v5864_v31 = vld [vmem:[#allocation8 + $0x78] sm:$0xff] }
  0x6a   :  { %623 = vmatpush1.msra.mxu1 %v5791_v1  ;;  %679 = vmatprep.subr.mxu0 %v5795_v2  ;;  %7791 = vst [vmem:[#allocation34_spill] sm:$0xff] %v5864_v31 }
  0x6b   :  { %4918 = vmatmul.mubr.msk.f32.gmra.mxu1 %vm242_vm1, %v5800_v3  ;;  %624 = vmatprep.subr.mxu1 %v5804_v4 }
  0x6c   :  { %680 = vmatpush1.msra.mxu0 %v5806_v5  ;;  %625 = vmatpush1.msra.mxu1 %v5811_v6 }
  0x6d   :  { %681 = vmatprep.subr.mxu0 %v5813_v7  ;;  %468 = vmatprep.mubr.f32.mxu0 %v7591_v0 }
  0x6e   :  { %626 = vmatprep.subr.mxu1 %v5818_v8  ;;  %682 = vmatpush1.msra.mxu0 %v5822_v11 }
  0x6f   :  { %627 = vmatpush1.msra.mxu1 %v5824_v14  ;;  %4923 = vmatmul.mubr.msk.f32.gmra.mxu0 %vm242_vm1, %v5695_v39  ;;  %v5877_v39 = vld [vmem:[#allocation8 + $0x50] sm:$0xff] }
  0x70   :  { %660 = vmatprep.mubr.f32.mxu1 %v7591_v0  ;;  %683 = vmatprep.subr.mxu0 %v5830_v15  ;;  %7794 = vst [vmem:[#allocation37_spill] sm:$0xff] %v5877_v39 }
  0x71   :  { %661 = vmatmul.mubr.f32.vlgmr.msra.gmra.mxu1 %v7591_v0  ;;  %684 = vmatpush1.msra.mxu0 %v5834_v18 }
  0x72   :  { %474 = vmatprep.mubr.f32.mxu0 %v7591_v0  ;;  %685 = vmatprep.subr.mxu0 %v5839_v21 }
  0x73   :  { %838 = vmatprep.subr.mxu1 %v5593_v9  ;;  %686 = vmatpush1.msra.mxu0 %v5843_v22 }
  0x74   :  { %839 = vmatpush1.msra.mxu1 %v5596_v10  ;;  %4924 = vmatmul.mubr.msk.f32.gmra.mxu0 %vm242_vm1, %v5730_v48  ;;  %v5881_v48 = vld [vmem:[#allocation8 + $0x38] sm:$0xff] }
  0x75   :  { %687 = vmatprep.subr.mxu0 %v5847_v25  ;;  %480 = vmatprep.mubr.f32.mxu0 %v7591_v0  ;;  %7795 = vst [vmem:[#allocation38_spill] sm:$0xff] %v5881_v48 }
  0x76   :  { %688 = vmatpush1.msra.mxu0 %v5850_v27  ;;  %840 = vmatprep.subr.mxu1 %v5603_v12  ;;  %v5884_v12 = vld [vmem:[#allocation8 + $0x30] sm:$0xff] }
  0x77   :  { %689 = vmatprep.subr.mxu0 %v5854_v28  ;;  %841 = vmatpush1.msra.mxu1 %v5607_v13  ;;  %7796 = vst [vmem:[#allocation39_spill] sm:$0xff] %v5884_v12  ;;  %v5888_v13 = vld [vmem:[#allocation8 + $0x18] sm:$0xff] }
  0x78   :  { %690 = vmatpush1.msra.mxu0 %v5860_v30  ;;  %842 = vmatprep.subr.mxu1 %v5620_v16  ;;  %7797 = vst [vmem:[#allocation40_spill] sm:$0xff] %v5888_v13 }
  0x79   :  { %4925 = vmatmul.mubr.msk.f32.gmra.mxu0 %vm242_vm1, %v5765_v57  ;;  %691 = vmatprep.subr.mxu0 %v5864_v31  ;;  %v5894_v57 = vld [vmem:[#allocation8 + $0x10] sm:$0xff] }
  0x7a   :  { %692 = vmatpush1.msra.mxu0 %v5867_v33  ;;  %486 = vmatprep.mubr.f32.mxu0 %v7591_v0  ;;  %7798 = vst [vmem:[#allocation41_spill] sm:$0xff] %v5894_v57 }
  0x7b   :  { %693 = vmatprep.subr.mxu0 %v5871_v35  ;;  %843 = vmatpush1.msra.mxu1 %v5624_v17 }
  0x7c   :  { %694 = vmatpush1.msra.mxu0 %v5877_v39  ;;  %844 = vmatprep.subr.mxu1 %v5631_v19 }
  0x7d   :  { %4926 = vmatmul.mubr.msk.f32.gmra.mxu0 %vm242_vm1, %v5800_v3  ;;  %695 = vmatprep.subr.mxu0 %v5881_v48  ;;  %v222_v3 = vlaneseq }
  0x7e   :  { %696 = vmatpush1.msra.mxu0 %v5884_v12  ;;  %731 = vmatprep.mubr.f32.mxu0 %v7591_v0 }
  0x7f   :  { %697 = vmatprep.subr.mxu0 %v5888_v13  ;;  %845 = vmatpush1.msra.mxu1 %v5635_v20 }
  0x80   :  { %698 = vmatpush1.msra.mxu0 %v5894_v57  ;;  %846 = vmatprep.subr.mxu1 %v5648_v23 }
  0x81   :  { %732 = vmatmul.mubr.f32.vlgmr.msra.gmra.mxu0 %v7591_v0  ;;  %909 = vmatprep.subr.mxu0 %v5690_v38 }
  0x82   :  { %910 = vmatpush1.msra.mxu0 %v5701_v41  ;;  %847 = vmatpush1.msra.mxu1 %v5652_v24 }
  0x83   :  { %911 = vmatprep.subr.mxu0 %v5708_v43  ;;  %848 = vmatprep.subr.mxu1 %v5659_v26 }
  0x84   :  { %912 = vmatpush1.msra.mxu0 %v5717_v45  ;;  %849 = vmatpush1.msra.mxu1 %v5667_v29 }
  0x85   :  { %913 = vmatprep.subr.mxu0 %v5725_v47  ;;  %850 = vmatprep.subr.mxu1 %v5675_v32 }
  0x86   :  { %914 = vmatpush1.msra.mxu0 %v5736_v50  ;;  %851 = vmatpush1.msra.mxu1 %v5678_v34 }
  0x87   :  { %915 = vmatprep.subr.mxu0 %v5743_v52  ;;  %852 = vmatprep.subr.mxu1 %v5684_v36 }
  0x88   :  { %916 = vmatpush1.msra.mxu0 %v5752_v54  ;;  %853 = vmatpush1.msra.mxu1 %v5687_v37 }
  0x89   :  { %917 = vmatprep.subr.mxu0 %v5760_v56  ;;  %854 = vmatprep.subr.mxu1 %v5699_v40 }
  0x8a   :  { %918 = vmatpush1.msra.mxu0 %v5771_v59  ;;  %855 = vmatpush1.msra.mxu1 %v5706_v42 }
  0x8b   :  { %919 = vmatprep.subr.mxu0 %v5778_v61  ;;  %856 = vmatprep.subr.mxu1 %v5713_v44 }
  0x8c   :  { %920 = vmatpush1.msra.mxu0 %v5787_v63  ;;  %857 = vmatpush1.msra.mxu1 %v5721_v46 }
  0x8d   :  { %921 = vmatprep.subr.mxu0 %v5795_v2  ;;  %858 = vmatprep.subr.mxu1 %v5734_v49 }
  0x8e   :  { %922 = vmatpush1.msra.mxu0 %v5806_v5  ;;  %859 = vmatpush1.msra.mxu1 %v5741_v51 }
  0x8f   :  { %923 = vmatprep.subr.mxu0 %v5813_v7  ;;  %860 = vmatprep.subr.mxu1 %v5748_v53 }
  0x90   :  { %924 = vmatpush1.msra.mxu0 %v5822_v11  ;;  %861 = vmatpush1.msra.mxu1 %v5756_v55 }
  0x91   :  { %925 = vmatprep.subr.mxu0 %v5830_v15  ;;  %862 = vmatprep.subr.mxu1 %v5769_v58 }
  0x92   :  { %926 = vmatpush1.msra.mxu0 %v5834_v18  ;;  %863 = vmatpush1.msra.mxu1 %v5776_v60 }
  0x93   :  { %927 = vmatprep.subr.mxu0 %v5839_v21  ;;  %864 = vmatprep.subr.mxu1 %v5783_v62 }
  0x94   :  { %928 = vmatpush1.msra.mxu0 %v5843_v22  ;;  %865 = vmatpush1.msra.mxu1 %v5791_v1 }
  0x95   :  { %929 = vmatprep.subr.mxu0 %v5847_v25  ;;  %866 = vmatprep.subr.mxu1 %v5804_v4 }
  0x96   :  { %930 = vmatpush1.msra.mxu0 %v5850_v27  ;;  %867 = vmatpush1.msra.mxu1 %v5811_v6 }
  0x97   :  { %931 = vmatprep.subr.mxu0 %v5854_v28  ;;  %868 = vmatprep.subr.mxu1 %v5818_v8 }
  0x98   :  { %932 = vmatpush1.msra.mxu0 %v5860_v30  ;;  %869 = vmatpush1.msra.mxu1 %v5824_v14  ;;  %v5963_v14 = vshrl.u32 %v222_v3, 7 }
  0x99   :  { %933 = vmatprep.subr.mxu0 %v5864_v31  ;;  %902 = vmatprep.mubr.f32.mxu1 %v7591_v0 }
  0x9a   :  { %934 = vmatpush1.msra.mxu0 %v5867_v33  ;;  %973 = vmatprep.mubr.f32.mxu0 %v7591_v0  ;;  %7799 = vst [vmem:[#allocation42_spill] sm:$0xff] %v5963_v14  ;;  %v7606_v8 = vsub.s32 0, %v5963_v14  ;;  %v7609_v6 = vsub.s32 1, %v5963_v14 }
  0x9b   :  { %935 = vmatprep.subr.mxu0 %v5871_v35  ;;  %1081 = vmatprep.subr.mxu1 %v5593_v9  ;;  %v220_v9 = vld [vmem:[%s7580_s6] sm:$0xf] }
  0x9c   :  { %936 = vmatpush1.msra.mxu0 %v5877_v39 }
  0x9d   :  { %937 = vmatprep.subr.mxu0 %v5881_v48 }
  0x9e   :  { %938 = vmatpush1.msra.mxu0 %v5884_v12 }
  0x9f   :  { %939 = vmatprep.subr.mxu0 %v5888_v13  ;;  %v225_v13 = vrot.slane %v220_v9, %v7606_v8 }
  0xa0   :  { %940 = vmatpush1.msra.mxu0 %v5894_v57 }
  0xa1   :  { %1152 = vmatprep.subr.mxu0 %v5690_v38  ;;  %v229_v38 = vrot.slane %v220_v9, %v7609_v6  ;;  %v7613_v6 = vsub.s32 2, %v5963_v14 }
 0x104   :  { %v333_v0 = vpop.f32.mrf.mxu1 }
 0x106   :  { %v335_v48 = vpop.f32.mrf.mxu1 }
 0x109   :  { %v339_v12 = vpop.f32.mrf.mxu1 }
 0x10a   :  { %v5974_v57 = vadd.f32 %v339_v12, %v225_v13 }
 0x10b   :  { %v341_v3 = vpop.f32.mrf.mxu1 }
 0x10c   :  { %7800 = vst [vmem:[#allocation43_spill] sm:$0xff] %v5974_v57  ;;  %v5976_v4 = vadd.f32 %v341_v3, %v229_v38 }
 0x10e   :  { %7801 = vst [vmem:[#allocation44_spill] sm:$0xff] %v5976_v4  ;;  %v345_v39 = vpop.f32.mrf.mxu1 }
 0x10f   :  { %v5978_v1 = vadd.f32 %v345_v39, %v225_v13 }
 0x110   :  { %v347_v35 = vpop.f32.mrf.mxu1 }
 0x111   :  { %7802 = vst [vmem:[#allocation45_spill] sm:$0xff] %v5978_v1  ;;  %v5980_v62 = vadd.f32 %v347_v35, %v229_v38  ;;  %v5982_v33 = vpop.f32.mrf.mxu0  ;;  %v7617_v1 = vsub.s32 3, %v5963_v14 }
 0x113   :  { %7803 = vst [vmem:[#allocation46_spill] sm:$0xff] %v5980_v62  ;;  %v5027_v60 = vpop.f32.mrf.mxu0  ;;  %v351_v31 = vpop.f32.mrf.mxu1 }
 0x114   :  { %v5984_v8 = vadd.f32 %v351_v31, %v225_v13  ;;  %v233_v60 = vrot.slane %v220_v9, %v7613_v6 }
 0x115   :  { %v353_v58 = vpop.f32.mrf.mxu1 }
 0x116   :  { %7804 = vst [vmem:[#allocation47_spill] sm:$0xff] %v5984_v8  ;;  %v5986_v30 = vadd.f32 %v353_v58, %v229_v38  ;;  %v237_v58 = vrot.slane %v220_v9, %v7617_v1 }
 0x117   :  { %v446_v12 = vpop.f32.mrf.mxu0 }
 0x118   :  { %7805 = vst [vmem:[#allocation48_spill] sm:$0xff] %v5986_v30 }
 0x119   :  { %v357_v3 = vpop.f32.mrf.mxu1  ;;  %v448_v39 = vpop.f32.mrf.mxu0 }
 0x11a   :  { %v5989_v4 = vadd.f32 %v357_v3, %v225_v13 }
 0x11b   :  { %v359_v35 = vpop.f32.mrf.mxu1 }
 0x11c   :  { %7806 = vst [vmem:[#allocation49_spill] sm:$0xff] %v5989_v4  ;;  %v5992_v62 = vadd.f32 %v359_v35, %v229_v38 }
 0x11d   :  { %v452_v31 = vpop.f32.mrf.mxu0 }
 0x11e   :  { %7807 = vst [vmem:[#allocation50_spill] sm:$0xff] %v5992_v62  ;;  %v5998_v30 = vadd.f32 %v452_v31, %v233_v60 }
 0x11f   :  { %v363_v8 = vpop.f32.mrf.mxu1  ;;  %v454_v3 = vpop.f32.mrf.mxu0 }
 0x120   :  { %7808 = vst [vmem:[#allocation51_spill] sm:$0xff] %v5998_v30  ;;  %v6000_v57 = vadd.f32 %v363_v8, %v225_v13  ;;  %v6002_v4 = vadd.f32 %v454_v3, %v237_v58 }
 0x121   :  { %v365_v55 = vpop.f32.mrf.mxu1 }
 0x122   :  { %7809 = vst [vmem:[#allocation52_spill] sm:$0xff] %v6000_v57  ;;  %7810 = vst [vmem:[#allocation53_spill] sm:$0xff] %v6002_v4  ;;  %v6004_v28 = vadd.f32 %v365_v55, %v229_v38 }
 0x123   :  { %v458_v35 = vpop.f32.mrf.mxu0 }
 0x124   :  { %7811 = vst [vmem:[#allocation54_spill] sm:$0xff] %v6004_v28  ;;  %v6006_v62 = vadd.f32 %v458_v35, %v233_v60 }
 0x125   :  { %v369_v53 = vpop.f32.mrf.mxu1  ;;  %v460_v27 = vpop.f32.mrf.mxu0 }
 0x126   :  { %7812 = vst [vmem:[#allocation55_spill] sm:$0xff] %v6006_v62  ;;  %v6008_v6 = vadd.f32 %v369_v53, %v225_v13  ;;  %v6010_v14 = vadd.f32 %v460_v27, %v237_v58  ;;  %v334_v53 = vadd.f32 %v333_v0, %v225_v13 }
 0x127   :  { %v371_v9 = vpop.f32.mrf.mxu1 }
 0x128   :  { %7813 = vst [vmem:[#allocation56_spill] sm:$0xff] %v6008_v6  ;;  %7814 = vst [vmem:[#allocation57_spill] sm:$0xff] %v6010_v14  ;;  %v6012_v31 = vadd.f32 %v371_v9, %v229_v38  ;;  %v336_v14 = vadd.f32 %v335_v48, %v229_v38 }
 0x129   :  { %v464_v8 = vpop.f32.mrf.mxu0 }
 0x12a   :  { %7815 = vst [vmem:[#allocation58_spill] sm:$0xff] %v6012_v31  ;;  %v6014_v1 = vadd.f32 %v464_v8, %v233_v60 }
 0x12b   :  { %v375_v3 = vpop.f32.mrf.mxu1  ;;  %v466_v55 = vpop.f32.mrf.mxu0 }
 0x12c   :  { %7816 = vst [vmem:[#allocation59_spill] sm:$0xff] %v6014_v1  ;;  %v6016_v57 = vadd.f32 %v375_v3, %v225_v13  ;;  %v6018_v28 = vadd.f32 %v466_v55, %v237_v58 }
 0x12d   :  { %v377_v35 = vpop.f32.mrf.mxu1 }
 0x12e   :  { %7817 = vst [vmem:[#allocation60_spill] sm:$0xff] %v6016_v57  ;;  %7818 = vst [vmem:[#allocation61_spill] sm:$0xff] %v6018_v28  ;;  %v6020_v62 = vadd.f32 %v377_v35, %v229_v38 }
 0x12f   :  { %v470_v6 = vpop.f32.mrf.mxu0 }
 0x130   :  { %7819 = vst [vmem:[#allocation62_spill] sm:$0xff] %v6020_v62  ;;  %v6022_v30 = vadd.f32 %v470_v6, %v233_v60 }
 0x131   :  { %v662_v27 = vpop.f32.mrf.mxu1  ;;  %v472_v31 = vpop.f32.mrf.mxu0 }
 0x132   :  { %7820 = vst [vmem:[#allocation63_spill] sm:$0xff] %v6022_v30  ;;  %v738_v9 = vadd.f32 %v662_v27, %v334_v53  ;;  %v6024_v4 = vadd.f32 %v472_v31, %v237_v58  ;;  %v6306_v30 = vld [vmem:[#allocation8 + $0x8] sm:$0xff] }
 0x133   :  { %v664_v8 = vpop.f32.mrf.mxu1 }
 0x134   :  { %7821 = vst [vmem:[#allocation64_spill] sm:$0xff] %v6024_v4  ;;  %v4927_v1 = vmul.f32 -1.442695, %v738_v9  ;;  %v739_v3 = vadd.f32 %v664_v8, %v336_v14  ;;  %v476_v57 = vpop.f32.mrf.mxu0  ;;  %v6308_v4 = vld [vmem:[#allocation8 + $0x18] sm:$0xff] }
 0x135   :  { %v6026_v28 = vadd.f32 %v476_v57, %v233_v60  ;;  %v449_v57 = vadd.f32 %v448_v39, %v237_v58 }
 0x136   :  { %5084 = vpow2.f32 %v4927_v1  ;;  %v4928_v55 = vmul.f32 -1.442695, %v739_v3  ;;  %v478_v35 = vpop.f32.mrf.mxu0  ;;  %v447_v1 = vadd.f32 %v446_v12, %v233_v60 }
 0x137   :  { %7822 = vst [vmem:[#allocation65_spill] sm:$0xff] %v6026_v28  ;;  %v6028_v0 = vadd.f32 %v478_v35, %v237_v58 }
 0x138   :  { %5086 = vpow2.f32 %v4928_v55 }
 0x139   :  { %7823 = vst [vmem:[#allocation66_spill] sm:$0xff] %v6028_v0  ;;  %v482_v13 = vpop.f32.mrf.mxu0  ;;  %v6302_v0 = vld [vmem:[#allocation8 + $0x30] sm:$0xff] }
 0x13a   :  { %v6030_v6 = vadd.f32 %v482_v13, %v233_v60 }
 0x13b   :  { %v484_v48 = vpop.f32.mrf.mxu0 }
 0x13c   :  { %7824 = vst [vmem:[#allocation67_spill] sm:$0xff] %v6030_v6  ;;  %v6032_v38 = vadd.f32 %v484_v48, %v237_v58  ;;  %v4909_v48 = vld [vmem:[%s7577_s3] ss:$0 sm:$0xff] }
 0x13d   :  { %v488_v31 = vpop.f32.mrf.mxu0  ;;  %v6042_v39 = vadd.f32 %v4909_v48, %v5982_v33  ;;  %v7830_v33 = vld [vmem:[#allocation19_spill] sm:$0xff] }
 0x13e   :  { %7825 = vst [vmem:[#allocation68_spill] sm:$0xff] %v6032_v38  ;;  %v6034_v53 = vadd.f32 %v488_v31, %v233_v60  ;;  %v6300_v38 = vld [vmem:[#allocation8 + $0x20] sm:$0xff] }
 0x13f   :  { %v490_v27 = vpop.f32.mrf.mxu0  ;;  %7828 = vst [vmem:[#allocation71_spill] sm:$0xff] %v6042_v39 }
 0x140   :  { %7826 = vst [vmem:[#allocation69_spill] sm:$0xff] %v6034_v53  ;;  %v6036_v14 = vadd.f32 %v490_v27, %v237_v58  ;;  %v6288_v53 = vld [vmem:[#allocation8 + $0x40] sm:$0xff] }
 0x141   :  { %v733_v9 = vpop.f32.mrf.mxu0 }
 0x142   :  { %7827 = vst [vmem:[#allocation70_spill] sm:$0xff] %v6036_v14  ;;  %v740_v3 = vadd.f32 %v733_v9, %v447_v1  ;;  %v6290_v14 = vld [vmem:[#allocation8 + $0x50] sm:$0xff] }
 0x143   :  { %v5085_v8 = vpop.eup %5084  ;;  %v735_v55 = vpop.f32.mrf.mxu0 }
 0x144   :  { %v745_v35 = vadd.f32 1.0, %v5085_v8  ;;  %v741_v62 = vadd.f32 %v735_v55, %v449_v57  ;;  %v7831_v8 = vld [vmem:[#allocation20_spill] sm:$0xff] }
 0x145   :  { %v5087_v28 = vpop.eup %5086 }
 0x146   :  { %5088 = vrcp.f32 %v745_v35  ;;  %v751_v13 = vadd.f32 1.0, %v5087_v28  ;;  %v4929_v6 = vmul.f32 -1.442695, %v741_v62 }
 0x147   :  { %5090 = vtanh.f32 %v740_v3 }
 0x148   :  { %5092 = vrcp.f32 %v751_v13 }
 0x149   :  { %5094 = vpow2.f32 %v4929_v6 }
 0x153   :  { %v5089_v31 = vpop.eup %5088 }
 0x154   :  { %v5091_v12 = vpop.eup %5090 }
 0x155   :  { %v5093_v60 = vpop.eup %5092  ;;  %v762_v1 = vmul.f32 %v5091_v12, %v5089_v31 }
 0x156   :  { %v5095_v58 = vpop.eup %5094  ;;  %v761_v27 = vmul.f32 %v5093_v60, %v6042_v39  ;;  %v6284_v39 = vld [vmem:[#allocation8 + $0x58] sm:$0xff] }
 0x157   :  { %v758_v9 = vadd.f32 1.0, %v5095_v58 }
 0x158   :  { %v6045_v28 = vadd.f32 %v762_v1, %v761_v27 }
 0x159   :  { %5096 = vrcp.f32 %v758_v9 }
 0x15a   :  { %5098 = vtanh.f32 %v6045_v28 }
 0x166   :  { %v5097_v62 = vpop.eup %5096 }
 0x167   :  { %v5099_v6 = vpop.eup %5098 }
 0x168   :  { %v6048_v57 = vmul.f32 %v5099_v6, %v5097_v62  ;;  %v6130_v6 = vld [vmem:[#allocation8 + $0x1e8] sm:$0xff] }
 0x169   :  { %7859 = vst [vmem:[#allocation20_spill] sm:$0xff] %v6130_v6 }
 0x16a   :  { %7829 = vst [vmem:[#allocation72_spill] sm:$0xff] %v6048_v57  ;;  %903 = vmatmul.mubr.f32.vlgmr.msra.gmra.mxu1 %v6048_v57  ;;  %974 = vmatmul.mubr.f32.vlgmr.msra.gmra.mxu0 %v6048_v57  ;;  %v6296_v57 = vld [vmem:[#allocation8 + $0x38] sm:$0xff] }
 0x16b   :  { %1082 = vmatpush1.msra.mxu1 %v5596_v10  ;;  %1153 = vmatpush1.msra.mxu0 %v5701_v41  ;;  %v7832_v10 = vld [vmem:[#allocation31_spill] sm:$0xff]  ;;  %v7846_v41 = vld [vmem:[#allocation38_spill] sm:$0xff] }
 0x16c   :  { %1083 = vmatprep.subr.mxu1 %v7830_v33  ;;  %1154 = vmatprep.subr.mxu0 %v5708_v43  ;;  %v7848_v43 = vld [vmem:[#allocation39_spill] sm:$0xff]  ;;  %7874 = vst [vmem:[#allocation38_spill] sm:$0xff] %v6306_v30 }
 0x16d   :  { %1084 = vmatpush1.msra.mxu1 %v7831_v8  ;;  %1155 = vmatpush1.msra.mxu0 %v5717_v45  ;;  %v7850_v45 = vld [vmem:[#allocation40_spill] sm:$0xff]  ;;  %v6136_v33 = vld [vmem:[#allocation8 + $0x1e0] sm:$0xff]  ;;  %v6138_v8 = vld [vmem:[#allocation8 + $0x1f0] sm:$0xff] }
 0x16e   :  { %1085 = vmatprep.subr.mxu1 %v5620_v16  ;;  %1156 = vmatprep.subr.mxu0 %v5725_v47  ;;  %v7833_v16 = vld [vmem:[#allocation21_spill] sm:$0xff]  ;;  %v7852_v47 = vmov 0.0  }
 0x16f   :  { %1086 = vmatpush1.msra.mxu1 %v5624_v17  ;;  %1157 = vmatpush1.msra.mxu0 %v5736_v50  ;;  %v7834_v17 = vld [vmem:[#allocation32_spill] sm:$0xff] }
 0x170   :  { %1087 = vmatprep.subr.mxu1 %v5631_v19  ;;  %1158 = vmatprep.subr.mxu0 %v5743_v52  ;;  %v7835_v19 = vld [vmem:[#allocation22_spill] sm:$0xff] }
 0x171   :  { %1088 = vmatpush1.msra.mxu1 %v5635_v20  ;;  %1159 = vmatpush1.msra.mxu0 %v5752_v54  ;;  %v7836_v20 = vld [vmem:[#allocation33_spill] sm:$0xff] }
 0x172   :  { %1089 = vmatprep.subr.mxu1 %v5648_v23  ;;  %1160 = vmatprep.subr.mxu0 %v5760_v56  ;;  %v7837_v23 = vld [vmem:[#allocation23_spill] sm:$0xff] }
 0x173   :  { %1090 = vmatpush1.msra.mxu1 %v5652_v24  ;;  %1161 = vmatpush1.msra.mxu0 %v5771_v59  ;;  %v7838_v24 = vld [vmem:[#allocation34_spill] sm:$0xff]  ;;  %v7855_v59 = vld [vmem:[#allocation44_spill] sm:$0xff] }
 0x174   :  { %1091 = vmatprep.subr.mxu1 %v5659_v26  ;;  %1162 = vmatprep.subr.mxu0 %v5778_v61  ;;  %v7839_v26 = vld [vmem:[#allocation24_spill] sm:$0xff] }
 0x175   :  { %1092 = vmatpush1.msra.mxu1 %v5667_v29  ;;  %1163 = vmatpush1.msra.mxu0 %v5787_v63  ;;  %v7840_v29 = vld [vmem:[#allocation35_spill] sm:$0xff]  ;;  %7867 = vst [vmem:[#allocation24_spill] sm:$0xff] %v6284_v39 }
 0x176   :  { %1093 = vmatprep.subr.mxu1 %v5675_v32  ;;  %1164 = vmatprep.subr.mxu0 %v5795_v2  ;;  %v7841_v32 = vld [vmem:[#allocation25_spill] sm:$0xff]  ;;  %7868 = vst [vmem:[#allocation35_spill] sm:$0xff] %v6288_v53 }
 0x177   :  { %1094 = vmatpush1.msra.mxu1 %v5678_v34  ;;  %1165 = vmatpush1.msra.mxu0 %v5806_v5  ;;  %v7842_v34 = vld [vmem:[#allocation36_spill] sm:$0xff]  ;;  %7869 = vst [vmem:[#allocation25_spill] sm:$0xff] %v6290_v14 }
 0x178   :  { %1095 = vmatprep.subr.mxu1 %v5684_v36  ;;  %1166 = vmatprep.subr.mxu0 %v5813_v7  ;;  %v7843_v36 = vld [vmem:[#allocation26_spill] sm:$0xff]  ;;  %v7856_v7 = vld [vmem:[#allocation53_spill] sm:$0xff] }
 0x179   :  { %1096 = vmatpush1.msra.mxu1 %v5687_v37  ;;  %1167 = vmatpush1.msra.mxu0 %v5822_v11  ;;  %v7844_v37 = vld [vmem:[#allocation37_spill] sm:$0xff]  ;;  %7871 = vst [vmem:[#allocation26_spill] sm:$0xff] %v6296_v57 }
 0x17a   :  { %1097 = vmatprep.subr.mxu1 %v5699_v40  ;;  %1168 = vmatprep.subr.mxu0 %v5830_v15  ;;  %v7845_v40 = vld [vmem:[#allocation27_spill] sm:$0xff]  ;;  %7872 = vst [vmem:[#allocation37_spill] sm:$0xff] %v6300_v38 }
 0x17b   :  { %1098 = vmatpush1.msra.mxu1 %v5706_v42  ;;  %1169 = vmatpush1.msra.mxu0 %v5834_v18  ;;  %v7847_v42 = vld [vmem:[#allocation28_spill] sm:$0xff]  ;;  %v7857_v15 = vld [vmem:[#allocation51_spill] sm:$0xff]  ;;  %7873 = vst [vmem:[#allocation27_spill] sm:$0xff] %v6302_v0 }
 0x17c   :  { %1099 = vmatprep.subr.mxu1 %v5713_v44  ;;  %1170 = vmatprep.subr.mxu0 %v5839_v21  ;;  %v7849_v44 = vld [vmem:[#allocation29_spill] sm:$0xff]  ;;  %7875 = vst [vmem:[#allocation28_spill] sm:$0xff] %v6308_v4 }
 0x17d   :  { %1100 = vmatpush1.msra.mxu1 %v5721_v46  ;;  %1171 = vmatpush1.msra.mxu0 %v5843_v22  ;;  %v7851_v46 = vld [vmem:[#allocation30_spill] sm:$0xff] }
 0x17e   :  { %1101 = vmatprep.subr.mxu1 %v5734_v49  ;;  %1172 = vmatprep.subr.mxu0 %v5847_v25  ;;  %v7853_v49 = vld [vmem:[#allocation41_spill] sm:$0xff] }
 0x17f   :  { %1102 = vmatpush1.msra.mxu1 %v5741_v51  ;;  %1173 = vmatpush1.msra.mxu0 %v7832_v10  ;;  %v7854_v51 = vld [vmem:[#allocation43_spill] sm:$0xff]  ;;  %v6142_v10 = vld [vmem:[#allocation8 + $0x1c8] sm:$0xff] }
 0x180   :  { %1103 = vmatprep.subr.mxu1 %v7833_v16  ;;  %1174 = vmatprep.subr.mxu0 %v7834_v17  ;;  %v6144_v16 = vld [vmem:[#allocation8 + $0x1d8] sm:$0xff]  ;;  %v6148_v17 = vld [vmem:[#allocation8 + $0x1c0] sm:$0xff] }
 0x181   :  { %1104 = vmatpush1.msra.mxu1 %v7835_v19  ;;  %1175 = vmatpush1.msra.mxu0 %v7836_v20  ;;  %v6150_v19 = vld [vmem:[#allocation8 + $0x1d0] sm:$0xff]  ;;  %v6154_v20 = vld [vmem:[#allocation8 + $0x1a8] sm:$0xff] }
 0x182   :  { %1105 = vmatprep.subr.mxu1 %v7837_v23  ;;  %1176 = vmatprep.subr.mxu0 %v7838_v24  ;;  %v6156_v23 = vld [vmem:[#allocation8 + $0x1b8] sm:$0xff]  ;;  %v6160_v24 = vld [vmem:[#allocation8 + $0x1a0] sm:$0xff] }
 0x183   :  { %1106 = vmatpush1.msra.mxu1 %v7839_v26  ;;  %1177 = vmatpush1.msra.mxu0 %v7840_v29  ;;  %v6162_v26 = vld [vmem:[#allocation8 + $0x1b0] sm:$0xff]  ;;  %v6166_v29 = vld [vmem:[#allocation8 + $0x188] sm:$0xff] }
 0x184   :  { %1107 = vmatprep.subr.mxu1 %v7841_v32  ;;  %1178 = vmatprep.subr.mxu0 %v7842_v34  ;;  %v6168_v32 = vld [vmem:[#allocation8 + $0x198] sm:$0xff]  ;;  %v6172_v34 = vld [vmem:[#allocation8 + $0x180] sm:$0xff] }
 0x185   :  { %1108 = vmatpush1.msra.mxu1 %v7843_v36  ;;  %1179 = vmatpush1.msra.mxu0 %v7844_v37  ;;  %v6174_v36 = vld [vmem:[#allocation8 + $0x190] sm:$0xff]  ;;  %v6178_v37 = vld [vmem:[#allocation8 + $0x168] sm:$0xff] }
 0x186   :  { %1109 = vmatprep.subr.mxu1 %v7845_v40  ;;  %1180 = vmatprep.subr.mxu0 %v7846_v41  ;;  %v6180_v40 = vld [vmem:[#allocation8 + $0x178] sm:$0xff]  ;;  %v6184_v41 = vld [vmem:[#allocation8 + $0x160] sm:$0xff] }
 0x187   :  { %1110 = vmatpush1.msra.mxu1 %v7847_v42  ;;  %1181 = vmatpush1.msra.mxu0 %v7848_v43  ;;  %v6186_v42 = vld [vmem:[#allocation8 + $0x170] sm:$0xff]  ;;  %v6190_v43 = vld [vmem:[#allocation8 + $0x148] sm:$0xff] }
 0x188   :  { %1111 = vmatprep.subr.mxu1 %v7849_v44  ;;  %1182 = vmatprep.subr.mxu0 %v7850_v45  ;;  %v6192_v44 = vld [vmem:[#allocation8 + $0x158] sm:$0xff]  ;;  %v6196_v45 = vld [vmem:[#allocation8 + $0x140] sm:$0xff] }
 0x189   :  { %1112 = vmatpush1.msra.mxu1 %v7851_v46  ;;  %1145 = vmatprep.mubr.f32.mxu1 %v7852_v47  ;;  %v6198_v46 = vld [vmem:[#allocation8 + $0x150] sm:$0xff] }
 0x18a   :  { %1183 = vmatpush1.msra.mxu0 %v7853_v49  ;;  %1216 = vmatprep.mubr.f32.mxu0 %v7852_v47  ;;  %v6202_v49 = vld [vmem:[#allocation8 + $0x128] sm:$0xff] }
 0x18b   :  { %1324 = vmatprep.subr.mxu1 %v6130_v6 }
 0x22a   :  { %v904_v50 = vpop.f32.mrf.mxu1  ;;  %v975_v63 = vpop.f32.mrf.mxu0 }
 0x22b   :  { %v980_v52 = vadd.f32 %v904_v50, %v7854_v51  ;;  %v982_v18 = vadd.f32 %v975_v63, %v7857_v15  ;;  %v6204_v50 = vld [vmem:[#allocation8 + $0x138] sm:$0xff]  ;;  %v6208_v51 = vld [vmem:[#allocation8 + $0x120] sm:$0xff]  ;;  %v6224_v63 = vld [vmem:[#allocation8 + $0xe8] sm:$0xff] }
 0x22c   :  { %v906_v54 = vpop.f32.mrf.mxu1  ;;  %v977_v5 = vpop.f32.mrf.mxu0  ;;  %v6236_v15 = vld [vmem:[#allocation8 + $0xd8] sm:$0xff] }
 0x22d   :  { %v4930_v56 = vmul.f32 -1.442695, %v980_v52  ;;  %v981_v61 = vadd.f32 %v906_v54, %v7855_v59  ;;  %v983_v11 = vadd.f32 %v977_v5, %v7856_v7  ;;  %v6210_v52 = vld [vmem:[#allocation8 + $0x130] sm:$0xff]  ;;  %v6212_v54 = vld [vmem:[#allocation8 + $0x108] sm:$0xff]  ;;  %v6218_v59 = vld [vmem:[#allocation8 + $0x100] sm:$0xff] }
 0x22e   :  { %v6228_v5 = vld [vmem:[#allocation8 + $0xe0] sm:$0xff]  ;;  %v6232_v7 = vld [vmem:[#allocation8 + $0xf0] sm:$0xff] }
 0x22f   :  { %5100 = vpow2.f32 %v4930_v56  ;;  %v4931_v2 = vmul.f32 -1.442695, %v981_v61  ;;  %v4932_v21 = vmul.f32 -1.442695, %v983_v11  ;;  %v6216_v56 = vld [vmem:[#allocation8 + $0x118] sm:$0xff]  ;;  %v6220_v61 = vld [vmem:[#allocation8 + $0x110] sm:$0xff] }
 0x230   :  { %v6234_v11 = vld [vmem:[#allocation8 + $0xc8] sm:$0xff] }
 0x231   :  { %5102 = vpow2.f32 %v4931_v2  ;;  %v6226_v2 = vld [vmem:[#allocation8 + $0xf8] sm:$0xff] }
 0x232   :  { %5104 = vtanh.f32 %v982_v18  ;;  %v6240_v18 = vld [vmem:[#allocation8 + $0xc0] sm:$0xff] }
 0x233   :  { %5106 = vpow2.f32 %v4932_v21  ;;  %v6242_v21 = vld [vmem:[#allocation8 + $0xd0] sm:$0xff] }
 0x23c   :  { %v5101_v22 = vpop.eup %5100 }
 0x23d   :  { %v987_v25 = vadd.f32 1.0, %v5101_v22  ;;  %v6246_v22 = vld [vmem:[#allocation8 + $0xa8] sm:$0xff] }
 0x23e   :  { %v5103_v3 = vpop.eup %5102 }
 0x23f   :  { %5108 = vrcp.f32 %v987_v25  ;;  %v993_v55 = vadd.f32 1.0, %v5103_v3  ;;  %v5105_v35 = vpop.eup %5104  ;;  %v6248_v25 = vld [vmem:[#allocation8 + $0xb8] sm:$0xff]  ;;  %v6252_v3 = vld [vmem:[#allocation8 + $0xa0] sm:$0xff] }
 0x240   :  { %v5107_v13 = vpop.eup %5106 }
 0x241   :  { %5110 = vrcp.f32 %v993_v55  ;;  %v1000_v60 = vadd.f32 1.0, %v5107_v13  ;;  %v6254_v55 = vld [vmem:[#allocation8 + $0xb0] sm:$0xff]  ;;  %v6260_v13 = vld [vmem:[#allocation8 + $0x98] sm:$0xff] }
 0x243   :  { %5112 = vrcp.f32 %v1000_v60  ;;  %v6272_v60 = vld [vmem:[#allocation8 + $0x78] sm:$0xff] }
 0x244   :  { %7863 = vst [vmem:[#allocation22_spill] sm:$0xff] %v6272_v60 }
 0x24c   :  { %v5109_v48 = vpop.eup %5108 }
 0x24d   :  { %v1004_v31 = vmul.f32 %v5109_v48, %v5105_v35  ;;  %v6258_v35 = vld [vmem:[#allocation8 + $0x88] sm:$0xff]  ;;  %v6264_v48 = vld [vmem:[#allocation8 + $0x80] sm:$0xff] }
 0x24e   :  { %v5111_v12 = vpop.eup %5110 }
 0x24f   :  { %v1003_v58 = vmul.f32 %v5111_v12, %v6045_v28  ;;  %v6132_v28 = vld [vmem:[#allocation8 + $0x1f8] sm:$0xff]  ;;  %v6270_v12 = vld [vmem:[#allocation8 + $0x68] sm:$0xff] }
 0x250   :  { %v5113_v1 = vpop.eup %5112  ;;  %7860 = vst [vmem:[#allocation31_spill] sm:$0xff] %v6132_v28  ;;  %1395 = vmatprep.subr.mxu0 %v6132_v28  ;;  %7862 = vst [vmem:[#allocation32_spill] sm:$0xff] %v6270_v12 }
 0x251   :  { %v6121_v27 = vadd.f32 %v1004_v31, %v1003_v58  ;;  %v6266_v31 = vld [vmem:[#allocation8 + $0x90] sm:$0xff]  ;;  %v6276_v58 = vld [vmem:[#allocation8 + $0x60] sm:$0xff] }
 0x252   :  { %7861 = vst [vmem:[#allocation21_spill] sm:$0xff] %v6266_v31  ;;  %7864 = vst [vmem:[#allocation33_spill] sm:$0xff] %v6276_v58 }
 0x253   :  { %5114 = vtanh.f32 %v6121_v27 }
 0x260   :  { %v5115_v9 = vpop.eup %5114 }
 0x261   :  { %v6124_v62 = vmul.f32 %v5115_v9, %v5113_v1  ;;  %v6278_v1 = vld [vmem:[#allocation8 + $0x70] sm:$0xff]  ;;  %v6282_v9 = vld [vmem:[#allocation8 + $0x48] sm:$0xff] }
 0x262   :  { %7865 = vst [vmem:[#allocation23_spill] sm:$0xff] %v6278_v1  ;;  %7866 = vst [vmem:[#allocation34_spill] sm:$0xff] %v6282_v9 }
 0x263   :  { %7858 = vst [vmem:[#allocation19_spill] sm:$0xff] %v6124_v62  ;;  %1146 = vmatmul.mubr.f32.vlgmr.msra.gmra.mxu1 %v6124_v62  ;;  %1217 = vmatmul.mubr.f32.vlgmr.msra.gmra.mxu0 %v6124_v62  ;;  %v6294_v62 = vld [vmem:[#allocation8 + $0x28] sm:$0xff] }
 0x264   :  { %1388 = vmatprep.mubr.f32.mxu1 %v7852_v47  ;;  %1459 = vmatprep.mubr.f32.mxu0 %v7852_v47  ;;  %7870 = vst [vmem:[#allocation36_spill] sm:$0xff] %v6294_v62  ;;  %v6312_v47 = vld [vmem:[#allocation8] sm:$0xff] }
 0x265   :  { %1325 = vmatpush1.msra.mxu1 %v6136_v33  ;;  %1396 = vmatpush1.msra.mxu0 %v6138_v8  ;;  %7876 = vst [vmem:[#allocation39_spill] sm:$0xff] %v6312_v47 }
 0x266   :  { %1326 = vmatprep.subr.mxu1 %v6142_v10  ;;  %1397 = vmatprep.subr.mxu0 %v6144_v16 }
 0x267   :  { %1327 = vmatpush1.msra.mxu1 %v6148_v17  ;;  %1398 = vmatpush1.msra.mxu0 %v6150_v19 }
 0x268   :  { %1328 = vmatprep.subr.mxu1 %v6154_v20  ;;  %1399 = vmatprep.subr.mxu0 %v6156_v23 }
 0x269   :  { %1329 = vmatpush1.msra.mxu1 %v6160_v24  ;;  %1400 = vmatpush1.msra.mxu0 %v6162_v26 }
 0x26a   :  { %1330 = vmatprep.subr.mxu1 %v6166_v29  ;;  %1401 = vmatprep.subr.mxu0 %v6168_v32 }
 0x26b   :  { %1331 = vmatpush1.msra.mxu1 %v6172_v34  ;;  %1402 = vmatpush1.msra.mxu0 %v6174_v36 }
 0x26c   :  { %1332 = vmatprep.subr.mxu1 %v6178_v37  ;;  %1403 = vmatprep.subr.mxu0 %v6180_v40 }
 0x26d   :  { %1333 = vmatpush1.msra.mxu1 %v6184_v41  ;;  %1404 = vmatpush1.msra.mxu0 %v6186_v42 }
 0x26e   :  { %1334 = vmatprep.subr.mxu1 %v6190_v43  ;;  %1405 = vmatprep.subr.mxu0 %v6192_v44 }
 0x26f   :  { %1335 = vmatpush1.msra.mxu1 %v6196_v45  ;;  %1406 = vmatpush1.msra.mxu0 %v6198_v46 }
 0x270   :  { %1336 = vmatprep.subr.mxu1 %v6202_v49  ;;  %1407 = vmatprep.subr.mxu0 %v6204_v50 }
 0x271   :  { %1337 = vmatpush1.msra.mxu1 %v6208_v51  ;;  %1408 = vmatpush1.msra.mxu0 %v6210_v52 }
 0x272   :  { %1338 = vmatprep.subr.mxu1 %v6212_v54  ;;  %1409 = vmatprep.subr.mxu0 %v6216_v56 }
 0x273   :  { %1339 = vmatpush1.msra.mxu1 %v6218_v59  ;;  %1410 = vmatpush1.msra.mxu0 %v6220_v61 }
 0x274   :  { %1340 = vmatprep.subr.mxu1 %v6224_v63  ;;  %1411 = vmatprep.subr.mxu0 %v6226_v2 }
 0x275   :  { %1341 = vmatpush1.msra.mxu1 %v6228_v5  ;;  %1412 = vmatpush1.msra.mxu0 %v6232_v7 }
 0x276   :  { %1342 = vmatprep.subr.mxu1 %v6234_v11  ;;  %1413 = vmatprep.subr.mxu0 %v6236_v15 }
 0x277   :  { %1343 = vmatpush1.msra.mxu1 %v6240_v18  ;;  %1414 = vmatpush1.msra.mxu0 %v6242_v21 }
 0x278   :  { %1344 = vmatprep.subr.mxu1 %v6246_v22  ;;  %1415 = vmatprep.subr.mxu0 %v6248_v25 }
 0x279   :  { %1345 = vmatpush1.msra.mxu1 %v6252_v3  ;;  %1416 = vmatpush1.msra.mxu0 %v6254_v55 }
 0x27a   :  { %1346 = vmatprep.subr.mxu1 %v6258_v35  ;;  %1417 = vmatprep.subr.mxu0 %v6260_v13 }
 0x27b   :  { %1347 = vmatpush1.msra.mxu1 %v6264_v48  ;;  %1418 = vmatpush1.msra.mxu0 %v6266_v31 }
 0x27c   :  { %1348 = vmatprep.subr.mxu1 %v6270_v12  ;;  %1419 = vmatprep.subr.mxu0 %v6272_v60  ;;  %v7881_v60 = vld [vmem:[#allocation55_spill] sm:$0xff] }
 0x27d   :  { %1349 = vmatpush1.msra.mxu1 %v6276_v58  ;;  %1420 = vmatpush1.msra.mxu0 %v6278_v1  ;;  %v7880_v58 = vld [vmem:[#allocation57_spill] sm:$0xff] }
 0x27e   :  { %1350 = vmatprep.subr.mxu1 %v6282_v9  ;;  %1421 = vmatprep.subr.mxu0 %v6284_v39  ;;  %v6314_v9 = vld [vmem:[#allocation8 + $0x10] sm:$0xff] }
 0x27f   :  { %1351 = vmatpush1.msra.mxu1 %v6288_v53  ;;  %1422 = vmatpush1.msra.mxu0 %v6290_v14  ;;  %7877 = vst [vmem:[#allocation29_spill] sm:$0xff] %v6314_v9 }
 0x280   :  { %1352 = vmatprep.subr.mxu1 %v6294_v62  ;;  %1423 = vmatprep.subr.mxu0 %v6296_v57  ;;  %v7878_v62 = vld [vmem:[#allocation45_spill] sm:$0xff] }
 0x281   :  { %1353 = vmatpush1.msra.mxu1 %v6300_v38  ;;  %1424 = vmatpush1.msra.mxu0 %v6302_v0  ;;  %v7879_v38 = vld [vmem:[#allocation46_spill] sm:$0xff] }
 0x282   :  { %1354 = vmatprep.subr.mxu1 %v6306_v30  ;;  %1425 = vmatprep.subr.mxu0 %v6308_v4 }
 0x283   :  { %1355 = vmatpush1.msra.mxu1 %v6312_v47  ;;  %1426 = vmatpush1.msra.mxu0 %v6314_v9 }
 0x284   :  { %1567 = vmatprep.subr.mxu1 %v6130_v6  ;;  %1638 = vmatprep.subr.mxu0 %v6132_v28 }
 0x323   :  { %v1147_v57 = vpop.f32.mrf.mxu1  ;;  %v1218_v0 = vpop.f32.mrf.mxu0 }
 0x324   :  { %v1223_v14 = vadd.f32 %v1147_v57, %v7878_v62  ;;  %v1225_v9 = vadd.f32 %v1218_v0, %v7881_v60  ;;  %v7887_v60 = vld [vmem:[#allocation23_spill] sm:$0xff] }
 0x325   :  { %v1149_v53 = vpop.f32.mrf.mxu1  ;;  %v1220_v4 = vpop.f32.mrf.mxu0 }
 0x326   :  { %v4933_v39 = vmul.f32 -1.442695, %v1223_v14  ;;  %v1224_v1 = vadd.f32 %v1149_v53, %v7879_v38  ;;  %v1226_v47 = vadd.f32 %v1220_v4, %v7880_v58  ;;  %v7888_v58 = vld [vmem:[#allocation34_spill] sm:$0xff] }
 0x328   :  { %5116 = vpow2.f32 %v4933_v39  ;;  %v4934_v30 = vmul.f32 -1.442695, %v1224_v1  ;;  %v4935_v12 = vmul.f32 -1.442695, %v1226_v47 }
 0x32a   :  { %5118 = vpow2.f32 %v4934_v30 }
 0x32b   :  { %5120 = vtanh.f32 %v1225_v9  ;;  %v7889_v9 = vld [vmem:[#allocation24_spill] sm:$0xff] }
 0x32c   :  { %5122 = vpow2.f32 %v4935_v12  ;;  %v7886_v12 = vld [vmem:[#allocation33_spill] sm:$0xff] }
 0x335   :  { %v5117_v6 = vpop.eup %5116 }
 0x336   :  { %v1230_v31 = vadd.f32 1.0, %v5117_v6 }
 0x337   :  { %v5119_v28 = vpop.eup %5118 }
 0x338   :  { %5124 = vrcp.f32 %v1230_v31  ;;  %v1236_v57 = vadd.f32 1.0, %v5119_v28  ;;  %v5121_v14 = vpop.eup %5120  ;;  %v7884_v28 = vld [vmem:[#allocation32_spill] sm:$0xff]  ;;  %v7885_v31 = vld [vmem:[#allocation22_spill] sm:$0xff] }
 0x339   :  { %v5123_v38 = vpop.eup %5122 }
 0x33a   :  { %5126 = vrcp.f32 %v1236_v57  ;;  %v1243_v30 = vadd.f32 1.0, %v5123_v38  ;;  %v7890_v57 = vld [vmem:[#allocation35_spill] sm:$0xff]  ;;  %v7892_v38 = vld [vmem:[#allocation36_spill] sm:$0xff] }
 0x33c   :  { %5128 = vrcp.f32 %v1243_v30  ;;  %v7896_v30 = vld [vmem:[#allocation38_spill] sm:$0xff] }
 0x345   :  { %v5125_v53 = vpop.eup %5124 }
 0x346   :  { %v1247_v39 = vmul.f32 %v5125_v53, %v5121_v14  ;;  %v7891_v14 = vld [vmem:[#allocation25_spill] sm:$0xff]  ;;  %v7893_v53 = vld [vmem:[#allocation26_spill] sm:$0xff] }
 0x347   :  { %v5127_v62 = vpop.eup %5126 }
 0x348   :  { %v1246_v1 = vmul.f32 %v5127_v62, %v6121_v27  ;;  %v7883_v27 = vld [vmem:[#allocation21_spill] sm:$0xff]  ;;  %v7895_v62 = vld [vmem:[#allocation27_spill] sm:$0xff] }
 0x349   :  { %v5129_v0 = vpop.eup %5128 }
 0x34a   :  { %v6329_v4 = vadd.f32 %v1247_v39, %v1246_v1  ;;  %v7894_v39 = vld [vmem:[#allocation37_spill] sm:$0xff]  ;;  %v7897_v1 = vld [vmem:[#allocation28_spill] sm:$0xff] }
 0x34c   :  { %5130 = vtanh.f32 %v6329_v4 }
 0x359   :  { %v5131_v47 = vpop.eup %5130 }
 0x35a   :  { %v6332_v6 = vmul.f32 %v5131_v47, %v5129_v0  ;;  %v7898_v0 = vld [vmem:[#allocation39_spill] sm:$0xff]  ;;  %v7899_v47 = vmov 0.0  }
 0x35c   :  { %7882 = vst [vmem:[#allocation40_spill] sm:$0xff] %v6332_v6  ;;  %1389 = vmatmul.mubr.f32.vlgmr.msra.gmra.mxu1 %v6332_v6  ;;  %1460 = vmatmul.mubr.f32.vlgmr.msra.gmra.mxu0 %v6332_v6  ;;  %v7900_v6 = vld [vmem:[#allocation29_spill] sm:$0xff] }
 0x35d   :  { %1568 = vmatpush1.msra.mxu1 %v6136_v33  ;;  %1639 = vmatpush1.msra.mxu0 %v6138_v8 }
 0x35e   :  { %1569 = vmatprep.subr.mxu1 %v6142_v10  ;;  %1640 = vmatprep.subr.mxu0 %v6144_v16 }
 0x35f   :  { %1570 = vmatpush1.msra.mxu1 %v6148_v17  ;;  %1641 = vmatpush1.msra.mxu0 %v6150_v19 }
 0x360   :  { %1571 = vmatprep.subr.mxu1 %v6154_v20  ;;  %1642 = vmatprep.subr.mxu0 %v6156_v23 }
 0x361   :  { %1572 = vmatpush1.msra.mxu1 %v6160_v24  ;;  %1643 = vmatpush1.msra.mxu0 %v6162_v26 }
 0x362   :  { %1573 = vmatprep.subr.mxu1 %v6166_v29  ;;  %1644 = vmatprep.subr.mxu0 %v6168_v32 }
 0x363   :  { %1574 = vmatpush1.msra.mxu1 %v6172_v34  ;;  %1645 = vmatpush1.msra.mxu0 %v6174_v36 }
 0x364   :  { %1575 = vmatprep.subr.mxu1 %v6178_v37  ;;  %1646 = vmatprep.subr.mxu0 %v6180_v40 }
 0x365   :  { %1576 = vmatpush1.msra.mxu1 %v6184_v41  ;;  %1647 = vmatpush1.msra.mxu0 %v6186_v42 }
 0x366   :  { %1577 = vmatprep.subr.mxu1 %v6190_v43  ;;  %1648 = vmatprep.subr.mxu0 %v6192_v44 }
 0x367   :  { %1578 = vmatpush1.msra.mxu1 %v6196_v45  ;;  %1649 = vmatpush1.msra.mxu0 %v6198_v46 }
 0x368   :  { %1579 = vmatprep.subr.mxu1 %v6202_v49  ;;  %1650 = vmatprep.subr.mxu0 %v6204_v50 }
 0x369   :  { %1580 = vmatpush1.msra.mxu1 %v6208_v51  ;;  %1651 = vmatpush1.msra.mxu0 %v6210_v52 }
 0x36a   :  { %1581 = vmatprep.subr.mxu1 %v6212_v54  ;;  %1652 = vmatprep.subr.mxu0 %v6216_v56 }
 0x36b   :  { %1582 = vmatpush1.msra.mxu1 %v6218_v59  ;;  %1653 = vmatpush1.msra.mxu0 %v6220_v61 }
 0x36c   :  { %1583 = vmatprep.subr.mxu1 %v6224_v63  ;;  %1654 = vmatprep.subr.mxu0 %v6226_v2 }
 0x36d   :  { %1584 = vmatpush1.msra.mxu1 %v6228_v5  ;;  %1655 = vmatpush1.msra.mxu0 %v6232_v7 }
 0x36e   :  { %1585 = vmatprep.subr.mxu1 %v6234_v11  ;;  %1656 = vmatprep.subr.mxu0 %v6236_v15 }
 0x36f   :  { %1586 = vmatpush1.msra.mxu1 %v6240_v18  ;;  %1657 = vmatpush1.msra.mxu0 %v6242_v21 }
 0x370   :  { %1587 = vmatprep.subr.mxu1 %v6246_v22  ;;  %1658 = vmatprep.subr.mxu0 %v6248_v25 }
 0x371   :  { %1588 = vmatpush1.msra.mxu1 %v6252_v3  ;;  %1659 = vmatpush1.msra.mxu0 %v6254_v55 }
 0x372   :  { %1589 = vmatprep.subr.mxu1 %v6258_v35  ;;  %1660 = vmatprep.subr.mxu0 %v6260_v13 }
 0x373   :  { %1590 = vmatpush1.msra.mxu1 %v6264_v48  ;;  %1661 = vmatpush1.msra.mxu0 %v7883_v27 }
 0x374   :  { %1591 = vmatprep.subr.mxu1 %v7884_v28  ;;  %1662 = vmatprep.subr.mxu0 %v7885_v31  ;;  %v7906_v31 = vld [vmem:[#allocation59_spill] sm:$0xff] }
 0x375   :  { %1592 = vmatpush1.msra.mxu1 %v7886_v12  ;;  %1663 = vmatpush1.msra.mxu0 %v7887_v60  ;;  %v7905_v12 = vld [vmem:[#allocation61_spill] sm:$0xff] }
 0x376   :  { %1593 = vmatprep.subr.mxu1 %v7888_v58  ;;  %1664 = vmatprep.subr.mxu0 %v7889_v9 }
 0x377   :  { %1594 = vmatpush1.msra.mxu1 %v7890_v57  ;;  %1665 = vmatpush1.msra.mxu0 %v7891_v14  ;;  %v7901_v14 = vld [vmem:[#allocation20_spill] sm:$0xff] }
 0x378   :  { %1595 = vmatprep.subr.mxu1 %v7892_v38  ;;  %1666 = vmatprep.subr.mxu0 %v7893_v53  ;;  %v7902_v38 = vld [vmem:[#allocation31_spill] sm:$0xff] }
 0x379   :  { %1596 = vmatpush1.msra.mxu1 %v7894_v39  ;;  %1667 = vmatpush1.msra.mxu0 %v7895_v62  ;;  %v7903_v39 = vld [vmem:[#allocation47_spill] sm:$0xff] }
 0x37a   :  { %1597 = vmatprep.subr.mxu1 %v7896_v30  ;;  %1668 = vmatprep.subr.mxu0 %v7897_v1  ;;  %v7904_v30 = vld [vmem:[#allocation48_spill] sm:$0xff] }
 0x37b   :  { %1598 = vmatpush1.msra.mxu1 %v7898_v0  ;;  %1631 = vmatprep.mubr.f32.mxu1 %v7899_v47 }
 0x37c   :  { %1669 = vmatpush1.msra.mxu0 %v7900_v6  ;;  %1702 = vmatprep.mubr.f32.mxu0 %v7899_v47 }
 0x37d   :  { %1810 = vmatprep.subr.mxu1 %v7901_v14  ;;  %1881 = vmatprep.subr.mxu0 %v7902_v38 }
 0x41c   :  { %v1390_v53 = vpop.f32.mrf.mxu1  ;;  %v1461_v1 = vpop.f32.mrf.mxu0 }
 0x41d   :  { %v1466_v57 = vadd.f32 %v1390_v53, %v7903_v39  ;;  %v1468_v47 = vadd.f32 %v1461_v1, %v7906_v31  ;;  %v7913_v1 = vld [vmem:[#allocation34_spill] sm:$0xff] }
 0x41e   :  { %v1392_v62 = vpop.f32.mrf.mxu1  ;;  %v1463_v60 = vpop.f32.mrf.mxu0 }
 0x41f   :  { %v4936_v9 = vmul.f32 -1.442695, %v1466_v57  ;;  %v1467_v58 = vadd.f32 %v1392_v62, %v7904_v30  ;;  %v1469_v6 = vadd.f32 %v1463_v60, %v7905_v12 }
 0x421   :  { %5132 = vpow2.f32 %v4936_v9  ;;  %v4937_v0 = vmul.f32 -1.442695, %v1467_v58  ;;  %v4938_v28 = vmul.f32 -1.442695, %v1469_v6 }
 0x423   :  { %5134 = vpow2.f32 %v4937_v0 }
 0x424   :  { %5136 = vtanh.f32 %v1468_v47  ;;  %v7914_v47 = vld [vmem:[#allocation24_spill] sm:$0xff] }
 0x425   :  { %5138 = vpow2.f32 %v4938_v28  ;;  %v7910_v28 = vld [vmem:[#allocation22_spill] sm:$0xff] }
 0x42e   :  { %v5133_v14 = vpop.eup %5132 }
 0x42f   :  { %v1473_v27 = vadd.f32 1.0, %v5133_v14  ;;  %v7911_v14 = vld [vmem:[#allocation33_spill] sm:$0xff] }
 0x430   :  { %v5135_v38 = vpop.eup %5134 }
 0x431   :  { %5140 = vrcp.f32 %v1473_v27  ;;  %v1479_v53 = vadd.f32 1.0, %v5135_v38  ;;  %v5137_v57 = vpop.eup %5136  ;;  %v7909_v27 = vld [vmem:[#allocation32_spill] sm:$0xff]  ;;  %v7912_v38 = vld [vmem:[#allocation23_spill] sm:$0xff] }
 0x432   :  { %v5139_v39 = vpop.eup %5138 }
 0x433   :  { %5142 = vrcp.f32 %v1479_v53  ;;  %v1486_v30 = vadd.f32 1.0, %v5139_v39  ;;  %v7915_v53 = vld [vmem:[#allocation35_spill] sm:$0xff]  ;;  %v7917_v39 = vld [vmem:[#allocation36_spill] sm:$0xff] }
 0x435   :  { %5144 = vrcp.f32 %v1486_v30  ;;  %v7921_v30 = vld [vmem:[#allocation38_spill] sm:$0xff] }
 0x43e   :  { %v5141_v9 = vpop.eup %5140 }
 0x43f   :  { %v1490_v62 = vmul.f32 %v5141_v9, %v5137_v57  ;;  %v7916_v57 = vld [vmem:[#allocation25_spill] sm:$0xff]  ;;  %v7918_v9 = vld [vmem:[#allocation26_spill] sm:$0xff] }
 0x440   :  { %v5143_v58 = vpop.eup %5142 }
 0x441   :  { %v1489_v0 = vmul.f32 %v5143_v58, %v6329_v4  ;;  %v7908_v4 = vld [vmem:[#allocation21_spill] sm:$0xff]  ;;  %v7920_v58 = vld [vmem:[#allocation27_spill] sm:$0xff] }
 0x442   :  { %v5145_v6 = vpop.eup %5144 }
 0x443   :  { %v6407_v12 = vadd.f32 %v1490_v62, %v1489_v0  ;;  %v7919_v62 = vld [vmem:[#allocation37_spill] sm:$0xff]  ;;  %v7922_v0 = vld [vmem:[#allocation28_spill] sm:$0xff] }
 0x445   :  { %5146 = vtanh.f32 %v6407_v12 }
 0x452   :  { %v5147_v31 = vpop.eup %5146 }
 0x453   :  { %v6410_v60 = vmul.f32 %v5147_v31, %v5145_v6  ;;  %v7923_v6 = vld [vmem:[#allocation39_spill] sm:$0xff]  ;;  %v7924_v31 = vmov 0.0  }
 0x455   :  { %7907 = vst [vmem:[#allocation30_spill] sm:$0xff] %v6410_v60  ;;  %1632 = vmatmul.mubr.f32.vlgmr.msra.gmra.mxu1 %v6410_v60  ;;  %1703 = vmatmul.mubr.f32.vlgmr.msra.gmra.mxu0 %v6410_v60  ;;  %v7925_v60 = vld [vmem:[#allocation29_spill] sm:$0xff] }
 0x456   :  { %1811 = vmatpush1.msra.mxu1 %v6136_v33  ;;  %1882 = vmatpush1.msra.mxu0 %v6138_v8 }
 0x457   :  { %1812 = vmatprep.subr.mxu1 %v6142_v10  ;;  %1883 = vmatprep.subr.mxu0 %v6144_v16 }
 0x458   :  { %1813 = vmatpush1.msra.mxu1 %v6148_v17  ;;  %1884 = vmatpush1.msra.mxu0 %v6150_v19 }
 0x459   :  { %1814 = vmatprep.subr.mxu1 %v6154_v20  ;;  %1885 = vmatprep.subr.mxu0 %v6156_v23 }
 0x45a   :  { %1815 = vmatpush1.msra.mxu1 %v6160_v24  ;;  %1886 = vmatpush1.msra.mxu0 %v6162_v26 }
 0x45b   :  { %1816 = vmatprep.subr.mxu1 %v6166_v29  ;;  %1887 = vmatprep.subr.mxu0 %v6168_v32 }
 0x45c   :  { %1817 = vmatpush1.msra.mxu1 %v6172_v34  ;;  %1888 = vmatpush1.msra.mxu0 %v6174_v36 }
 0x45d   :  { %1818 = vmatprep.subr.mxu1 %v6178_v37  ;;  %1889 = vmatprep.subr.mxu0 %v6180_v40 }
 0x45e   :  { %1819 = vmatpush1.msra.mxu1 %v6184_v41  ;;  %1890 = vmatpush1.msra.mxu0 %v6186_v42 }
 0x45f   :  { %1820 = vmatprep.subr.mxu1 %v6190_v43  ;;  %1891 = vmatprep.subr.mxu0 %v6192_v44 }
 0x460   :  { %1821 = vmatpush1.msra.mxu1 %v6196_v45  ;;  %1892 = vmatpush1.msra.mxu0 %v6198_v46 }
 0x461   :  { %1822 = vmatprep.subr.mxu1 %v6202_v49  ;;  %1893 = vmatprep.subr.mxu0 %v6204_v50 }
 0x462   :  { %1823 = vmatpush1.msra.mxu1 %v6208_v51  ;;  %1894 = vmatpush1.msra.mxu0 %v6210_v52 }
 0x463   :  { %1824 = vmatprep.subr.mxu1 %v6212_v54  ;;  %1895 = vmatprep.subr.mxu0 %v6216_v56 }
 0x464   :  { %1825 = vmatpush1.msra.mxu1 %v6218_v59  ;;  %1896 = vmatpush1.msra.mxu0 %v6220_v61 }
 0x465   :  { %1826 = vmatprep.subr.mxu1 %v6224_v63  ;;  %1897 = vmatprep.subr.mxu0 %v6226_v2 }
 0x466   :  { %1827 = vmatpush1.msra.mxu1 %v6228_v5  ;;  %1898 = vmatpush1.msra.mxu0 %v6232_v7 }
 0x467   :  { %1828 = vmatprep.subr.mxu1 %v6234_v11  ;;  %1899 = vmatprep.subr.mxu0 %v6236_v15 }
 0x468   :  { %1829 = vmatpush1.msra.mxu1 %v6240_v18  ;;  %1900 = vmatpush1.msra.mxu0 %v6242_v21 }
 0x469   :  { %1830 = vmatprep.subr.mxu1 %v6246_v22  ;;  %1901 = vmatprep.subr.mxu0 %v6248_v25 }
 0x46a   :  { %1831 = vmatpush1.msra.mxu1 %v6252_v3  ;;  %1902 = vmatpush1.msra.mxu0 %v6254_v55 }
 0x46b   :  { %1832 = vmatprep.subr.mxu1 %v6258_v35  ;;  %1903 = vmatprep.subr.mxu0 %v6260_v13 }
 0x46c   :  { %1833 = vmatpush1.msra.mxu1 %v6264_v48  ;;  %1904 = vmatpush1.msra.mxu0 %v7908_v4 }
 0x46d   :  { %1834 = vmatprep.subr.mxu1 %v7909_v27  ;;  %1905 = vmatprep.subr.mxu0 %v7910_v28  ;;  %v7931_v28 = vld [vmem:[#allocation63_spill] sm:$0xff] }
 0x46e   :  { %1835 = vmatpush1.msra.mxu1 %v7911_v14  ;;  %1906 = vmatpush1.msra.mxu0 %v7912_v38  ;;  %v7930_v14 = vld [vmem:[#allocation64_spill] sm:$0xff] }
 0x46f   :  { %1836 = vmatprep.subr.mxu1 %v7913_v1  ;;  %1907 = vmatprep.subr.mxu0 %v7914_v47 }
 0x470   :  { %1837 = vmatpush1.msra.mxu1 %v7915_v53  ;;  %1908 = vmatpush1.msra.mxu0 %v7916_v57  ;;  %v7926_v57 = vld [vmem:[#allocation20_spill] sm:$0xff] }
 0x471   :  { %1838 = vmatprep.subr.mxu1 %v7917_v39  ;;  %1909 = vmatprep.subr.mxu0 %v7918_v9  ;;  %v7927_v39 = vld [vmem:[#allocation31_spill] sm:$0xff] }
 0x472   :  { %1839 = vmatpush1.msra.mxu1 %v7919_v62  ;;  %1910 = vmatpush1.msra.mxu0 %v7920_v58  ;;  %v7928_v62 = vld [vmem:[#allocation49_spill] sm:$0xff] }
 0x473   :  { %1840 = vmatprep.subr.mxu1 %v7921_v30  ;;  %1911 = vmatprep.subr.mxu0 %v7922_v0  ;;  %v7929_v30 = vld [vmem:[#allocation50_spill] sm:$0xff] }
 0x474   :  { %1841 = vmatpush1.msra.mxu1 %v7923_v6  ;;  %1874 = vmatprep.mubr.f32.mxu1 %v7924_v31 }
 0x475   :  { %1912 = vmatpush1.msra.mxu0 %v7925_v60  ;;  %1945 = vmatprep.mubr.f32.mxu0 %v7924_v31 }
 0x476   :  { %2053 = vmatprep.subr.mxu1 %v7926_v57  ;;  %2124 = vmatprep.subr.mxu0 %v7927_v39 }
 0x515   :  { %v1633_v9 = vpop.f32.mrf.mxu1  ;;  %v1704_v0 = vpop.f32.mrf.mxu0 }
 0x516   :  { %v1709_v53 = vadd.f32 %v1633_v9, %v7928_v62  ;;  %v1711_v31 = vadd.f32 %v1704_v0, %v7931_v28  ;;  %v2293_v0 = vld [vmem:[#allocation8 + $0x1e8] sm:$0xff] }
 0x517   :  { %v1635_v58 = vpop.f32.mrf.mxu1  ;;  %v1706_v38 = vpop.f32.mrf.mxu0 }
 0x518   :  { %v4939_v47 = vmul.f32 -1.442695, %v1709_v53  ;;  %v1710_v1 = vadd.f32 %v1635_v58, %v7929_v30  ;;  %v1712_v60 = vadd.f32 %v1706_v38, %v7930_v14 }
 0x51a   :  { %5148 = vpow2.f32 %v4939_v47  ;;  %v4940_v6 = vmul.f32 -1.442695, %v1710_v1  ;;  %v4941_v27 = vmul.f32 -1.442695, %v1712_v60 }
 0x51c   :  { %5150 = vpow2.f32 %v4940_v6 }
 0x51d   :  { %5152 = vtanh.f32 %v1711_v31  ;;  %v2295_v31 = vld [vmem:[#allocation8 + $0x1f8] sm:$0xff] }
 0x51e   :  { %5154 = vpow2.f32 %v4941_v27 }
 0x527   :  { %v5149_v57 = vpop.eup %5148 }
 0x528   :  { %v1716_v4 = vadd.f32 1.0, %v5149_v57  ;;  %v2292_v57 = vld [vmem:[#allocation8 + $0x1e0] sm:$0xff] }
 0x529   :  { %v5151_v39 = vpop.eup %5150 }
 0x52a   :  { %5156 = vrcp.f32 %v1716_v4  ;;  %v1722_v9 = vadd.f32 1.0, %v5151_v39  ;;  %v5153_v53 = vpop.eup %5152  ;;  %v2294_v39 = vld [vmem:[#allocation8 + $0x1f0] sm:$0xff] }
 0x52b   :  { %v5155_v62 = vpop.eup %5154 }
 0x52c   :  { %5158 = vrcp.f32 %v1722_v9  ;;  %v1729_v30 = vadd.f32 1.0, %v5155_v62  ;;  %v2289_v9 = vld [vmem:[#allocation8 + $0x1c8] sm:$0xff]  ;;  %v2288_v62 = vld [vmem:[#allocation8 + $0x1c0] sm:$0xff] }
 0x52e   :  { %5160 = vrcp.f32 %v1729_v30  ;;  %v2284_v30 = vld [vmem:[#allocation8 + $0x1a0] sm:$0xff] }
 0x537   :  { %v5157_v47 = vpop.eup %5156 }
 0x538   :  { %v1733_v58 = vmul.f32 %v5157_v47, %v5153_v53  ;;  %v2291_v53 = vld [vmem:[#allocation8 + $0x1d8] sm:$0xff]  ;;  %v2290_v47 = vld [vmem:[#allocation8 + $0x1d0] sm:$0xff] }
 0x539   :  { %v5159_v1 = vpop.eup %5158 }
 0x53a   :  { %v1732_v6 = vmul.f32 %v5159_v1, %v6407_v12  ;;  %v2287_v1 = vld [vmem:[#allocation8 + $0x1b8] sm:$0xff] }
 0x53b   :  { %v5161_v60 = vpop.eup %5160 }
 0x53c   :  { %v6485_v14 = vadd.f32 %v1733_v58, %v1732_v6  ;;  %v2285_v58 = vld [vmem:[#allocation8 + $0x1a8] sm:$0xff]  ;;  %v2286_v6 = vld [vmem:[#allocation8 + $0x1b0] sm:$0xff] }
 0x53e   :  { %5162 = vtanh.f32 %v6485_v14 }
 0x54b   :  { %v5163_v28 = vpop.eup %5162 }
 0x54c   :  { %v6488_v38 = vmul.f32 %v5163_v28, %v5161_v60  ;;  %v2283_v60 = vld [vmem:[#allocation8 + $0x198] sm:$0xff]  ;;  %v2280_v28 = vld [vmem:[#allocation8 + $0x180] sm:$0xff] }
 0x54e   :  { %1875 = vmatmul.mubr.f32.vlgmr.msra.gmra.mxu1 %v6488_v38  ;;  %1946 = vmatmul.mubr.f32.vlgmr.msra.gmra.mxu0 %v6488_v38 }
 0x54f   :  { %2054 = vmatpush1.msra.mxu1 %v6136_v33  ;;  %2125 = vmatpush1.msra.mxu0 %v6138_v8  ;;  %v7932_v33 = vld [vmem:[#allocation21_spill] sm:$0xff]  ;;  %v7933_v8 = vld [vmem:[#allocation32_spill] sm:$0xff] }
 0x550   :  { %2055 = vmatprep.subr.mxu1 %v6142_v10  ;;  %2126 = vmatprep.subr.mxu0 %v6144_v16  ;;  %v7934_v10 = vld [vmem:[#allocation22_spill] sm:$0xff]  ;;  %v7935_v16 = vld [vmem:[#allocation33_spill] sm:$0xff] }
 0x551   :  { %2056 = vmatpush1.msra.mxu1 %v6148_v17  ;;  %2127 = vmatpush1.msra.mxu0 %v6150_v19  ;;  %v7936_v17 = vld [vmem:[#allocation23_spill] sm:$0xff]  ;;  %v7937_v19 = vld [vmem:[#allocation34_spill] sm:$0xff] }
 0x552   :  { %2057 = vmatprep.subr.mxu1 %v6154_v20  ;;  %2128 = vmatprep.subr.mxu0 %v6156_v23  ;;  %v7938_v20 = vld [vmem:[#allocation24_spill] sm:$0xff]  ;;  %v7939_v23 = vld [vmem:[#allocation35_spill] sm:$0xff] }
 0x553   :  { %2058 = vmatpush1.msra.mxu1 %v6160_v24  ;;  %2129 = vmatpush1.msra.mxu0 %v6162_v26  ;;  %v7940_v24 = vld [vmem:[#allocation25_spill] sm:$0xff]  ;;  %v7941_v26 = vld [vmem:[#allocation36_spill] sm:$0xff] }
 0x554   :  { %2059 = vmatprep.subr.mxu1 %v6166_v29  ;;  %2130 = vmatprep.subr.mxu0 %v6168_v32  ;;  %v7942_v29 = vld [vmem:[#allocation26_spill] sm:$0xff]  ;;  %v7943_v32 = vld [vmem:[#allocation37_spill] sm:$0xff] }
 0x555   :  { %2060 = vmatpush1.msra.mxu1 %v6172_v34  ;;  %2131 = vmatpush1.msra.mxu0 %v6174_v36  ;;  %v7944_v34 = vld [vmem:[#allocation27_spill] sm:$0xff]  ;;  %v7945_v36 = vld [vmem:[#allocation38_spill] sm:$0xff] }
 0x556   :  { %2061 = vmatprep.subr.mxu1 %v6178_v37  ;;  %2132 = vmatprep.subr.mxu0 %v6180_v40  ;;  %v7946_v37 = vld [vmem:[#allocation28_spill] sm:$0xff]  ;;  %v7947_v40 = vld [vmem:[#allocation39_spill] sm:$0xff] }
 0x557   :  { %2062 = vmatpush1.msra.mxu1 %v6184_v41  ;;  %2133 = vmatpush1.msra.mxu0 %v6186_v42  ;;  %v7948_v41 = vmov 0.0   ;;  %v7949_v42 = vld [vmem:[#allocation29_spill] sm:$0xff] }
 0x558   :  { %2063 = vmatprep.subr.mxu1 %v6190_v43  ;;  %2134 = vmatprep.subr.mxu0 %v6192_v44  ;;  %v7950_v44 = vld [vmem:[#allocation52_spill] sm:$0xff] }
 0x559   :  { %2064 = vmatpush1.msra.mxu1 %v6196_v45  ;;  %2135 = vmatpush1.msra.mxu0 %v6198_v46 }
 0x55a   :  { %2065 = vmatprep.subr.mxu1 %v6202_v49  ;;  %2136 = vmatprep.subr.mxu0 %v6204_v50  ;;  %v7951_v50 = vld [vmem:[#allocation54_spill] sm:$0xff] }
 0x55b   :  { %2066 = vmatpush1.msra.mxu1 %v6208_v51  ;;  %2137 = vmatpush1.msra.mxu0 %v6210_v52 }
 0x55c   :  { %2067 = vmatprep.subr.mxu1 %v6212_v54  ;;  %2138 = vmatprep.subr.mxu0 %v6216_v56 }
 0x55d   :  { %2068 = vmatpush1.msra.mxu1 %v6218_v59  ;;  %2139 = vmatpush1.msra.mxu0 %v6220_v61  ;;  %v7952_v59 = vld [vmem:[#allocation66_spill] sm:$0xff] }
 0x55e   :  { %2069 = vmatprep.subr.mxu1 %v6224_v63  ;;  %2140 = vmatprep.subr.mxu0 %v6226_v2  ;;  %v7953_v63 = vld [vmem:[#allocation65_spill] sm:$0xff] }
 0x55f   :  { %2070 = vmatpush1.msra.mxu1 %v6228_v5  ;;  %2141 = vmatpush1.msra.mxu0 %v6232_v7 }
 0x560   :  { %2071 = vmatprep.subr.mxu1 %v6234_v11  ;;  %2142 = vmatprep.subr.mxu0 %v6236_v15 }
 0x561   :  { %2072 = vmatpush1.msra.mxu1 %v6240_v18  ;;  %2143 = vmatpush1.msra.mxu0 %v6242_v21 }
 0x562   :  { %2073 = vmatprep.subr.mxu1 %v6246_v22  ;;  %2144 = vmatprep.subr.mxu0 %v6248_v25 }
 0x563   :  { %2074 = vmatpush1.msra.mxu1 %v6252_v3  ;;  %2145 = vmatpush1.msra.mxu0 %v6254_v55 }
 0x564   :  { %2075 = vmatprep.subr.mxu1 %v6258_v35  ;;  %2146 = vmatprep.subr.mxu0 %v6260_v13 }
 0x565   :  { %2076 = vmatpush1.msra.mxu1 %v6264_v48  ;;  %2147 = vmatpush1.msra.mxu0 %v7932_v33  ;;  %v2282_v33 = vld [vmem:[#allocation8 + $0x190] sm:$0xff] }
 0x566   :  { %2077 = vmatprep.subr.mxu1 %v7933_v8  ;;  %2148 = vmatprep.subr.mxu0 %v7934_v10  ;;  %v2277_v8 = vld [vmem:[#allocation8 + $0x168] sm:$0xff]  ;;  %v2279_v10 = vld [vmem:[#allocation8 + $0x178] sm:$0xff] }
 0x567   :  { %2078 = vmatpush1.msra.mxu1 %v7935_v16  ;;  %2149 = vmatpush1.msra.mxu0 %v7936_v17  ;;  %v2276_v16 = vld [vmem:[#allocation8 + $0x160] sm:$0xff]  ;;  %v2278_v17 = vld [vmem:[#allocation8 + $0x170] sm:$0xff] }
 0x568   :  { %2079 = vmatprep.subr.mxu1 %v7937_v19  ;;  %2150 = vmatprep.subr.mxu0 %v7938_v20  ;;  %v2273_v19 = vld [vmem:[#allocation8 + $0x148] sm:$0xff]  ;;  %v2275_v20 = vld [vmem:[#allocation8 + $0x158] sm:$0xff] }
 0x569   :  { %2080 = vmatpush1.msra.mxu1 %v7939_v23  ;;  %2151 = vmatpush1.msra.mxu0 %v7940_v24  ;;  %v2272_v23 = vld [vmem:[#allocation8 + $0x140] sm:$0xff]  ;;  %v2274_v24 = vld [vmem:[#allocation8 + $0x150] sm:$0xff] }
 0x56a   :  { %2081 = vmatprep.subr.mxu1 %v7941_v26  ;;  %2152 = vmatprep.subr.mxu0 %v7942_v29  ;;  %v2269_v26 = vld [vmem:[#allocation8 + $0x128] sm:$0xff]  ;;  %v2271_v29 = vld [vmem:[#allocation8 + $0x138] sm:$0xff] }
 0x56b   :  { %2082 = vmatpush1.msra.mxu1 %v7943_v32  ;;  %2153 = vmatpush1.msra.mxu0 %v7944_v34  ;;  %v2268_v32 = vld [vmem:[#allocation8 + $0x120] sm:$0xff]  ;;  %v2270_v34 = vld [vmem:[#allocation8 + $0x130] sm:$0xff] }
 0x56c   :  { %2083 = vmatprep.subr.mxu1 %v7945_v36  ;;  %2154 = vmatprep.subr.mxu0 %v7946_v37  ;;  %v2265_v36 = vld [vmem:[#allocation8 + $0x108] sm:$0xff]  ;;  %v2267_v37 = vld [vmem:[#allocation8 + $0x118] sm:$0xff] }
 0x56d   :  { %2084 = vmatpush1.msra.mxu1 %v7947_v40  ;;  %2117 = vmatprep.mubr.f32.mxu1 %v7948_v41  ;;  %v2264_v40 = vld [vmem:[#allocation8 + $0x100] sm:$0xff] }
 0x56e   :  { %2155 = vmatpush1.msra.mxu0 %v7949_v42  ;;  %2188 = vmatprep.mubr.f32.mxu0 %v7948_v41  ;;  %v2266_v42 = vld [vmem:[#allocation8 + $0x110] sm:$0xff] }
 0x56f   :  { %2296 = vmatprep.subr.mxu1 %v2293_v0  ;;  %2367 = vmatprep.subr.mxu0 %v2295_v31  ;;  %v2233_v0 = vld [vmem:[#allocation8 + $0x8] sm:$0xff]  ;;  %v2235_v31 = vld [vmem:[#allocation8 + $0x18] sm:$0xff] }
 0x60e   :  { %v1876_v43 = vpop.f32.mrf.mxu1  ;;  %v1947_v52 = vpop.f32.mrf.mxu0 }
 0x60f   :  { %v1952_v45 = vadd.f32 %v1876_v43, %v7950_v44  ;;  %v1954_v2 = vadd.f32 %v1947_v52, %v7953_v63  ;;  %v2261_v43 = vld [vmem:[#allocation8 + $0xe8] sm:$0xff]  ;;  %v2263_v44 = vld [vmem:[#allocation8 + $0xf8] sm:$0xff]  ;;  %v2258_v52 = vld [vmem:[#allocation8 + $0xd0] sm:$0xff] }
 0x610   :  { %v1878_v46 = vpop.f32.mrf.mxu1  ;;  %v1949_v56 = vpop.f32.mrf.mxu0  ;;  %v2249_v63 = vld [vmem:[#allocation8 + $0x88] sm:$0xff] }
 0x611   :  { %v4942_v49 = vmul.f32 -1.442695, %v1952_v45  ;;  %v1953_v51 = vadd.f32 %v1878_v46, %v7951_v50  ;;  %v1955_v61 = vadd.f32 %v1949_v56, %v7952_v59  ;;  %v2260_v45 = vld [vmem:[#allocation8 + $0xe0] sm:$0xff]  ;;  %v2262_v46 = vld [vmem:[#allocation8 + $0xf0] sm:$0xff]  ;;  %v2259_v50 = vld [vmem:[#allocation8 + $0xd8] sm:$0xff] }
 0x612   :  { %v2255_v56 = vld [vmem:[#allocation8 + $0xb8] sm:$0xff]  ;;  %v2252_v59 = vld [vmem:[#allocation8 + $0xa0] sm:$0xff] }
 0x613   :  { %5164 = vpow2.f32 %v4942_v49  ;;  %v4943_v54 = vmul.f32 -1.442695, %v1953_v51  ;;  %v4944_v5 = vmul.f32 -1.442695, %v1955_v61  ;;  %v2257_v49 = vld [vmem:[#allocation8 + $0xc8] sm:$0xff]  ;;  %v2256_v51 = vld [vmem:[#allocation8 + $0xc0] sm:$0xff] }
 0x614   :  { %v2254_v61 = vld [vmem:[#allocation8 + $0xb0] sm:$0xff] }
 0x615   :  { %5166 = vpow2.f32 %v4943_v54  ;;  %v2253_v54 = vld [vmem:[#allocation8 + $0xa8] sm:$0xff] }
 0x616   :  { %5168 = vtanh.f32 %v1954_v2  ;;  %v2251_v2 = vld [vmem:[#allocation8 + $0x98] sm:$0xff] }
 0x617   :  { %5170 = vpow2.f32 %v4944_v5  ;;  %v2248_v5 = vld [vmem:[#allocation8 + $0x80] sm:$0xff] }
 0x620   :  { %v5165_v7 = vpop.eup %5164 }
 0x621   :  { %v1959_v11 = vadd.f32 1.0, %v5165_v7  ;;  %v2250_v7 = vld [vmem:[#allocation8 + $0x90] sm:$0xff] }
 0x622   :  { %v5167_v15 = vpop.eup %5166 }
 0x623   :  { %5172 = vrcp.f32 %v1959_v11  ;;  %v1965_v18 = vadd.f32 1.0, %v5167_v15  ;;  %v5169_v21 = vpop.eup %5168  ;;  %v2245_v11 = vld [vmem:[#allocation8 + $0x68] sm:$0xff]  ;;  %v2247_v15 = vld [vmem:[#allocation8 + $0x78] sm:$0xff] }
 0x624   :  { %v5171_v22 = vpop.eup %5170 }
 0x625   :  { %5174 = vrcp.f32 %v1965_v18  ;;  %v1972_v35 = vadd.f32 1.0, %v5171_v22  ;;  %v2244_v18 = vld [vmem:[#allocation8 + $0x60] sm:$0xff]  ;;  %v2241_v22 = vld [vmem:[#allocation8 + $0x48] sm:$0xff] }
 0x627   :  { %5176 = vrcp.f32 %v1972_v35  ;;  %v2237_v35 = vld [vmem:[#allocation8 + $0x28] sm:$0xff] }
 0x630   :  { %v5173_v25 = vpop.eup %5172 }
 0x631   :  { %v1976_v3 = vmul.f32 %v5173_v25, %v5169_v21  ;;  %v2246_v21 = vld [vmem:[#allocation8 + $0x70] sm:$0xff]  ;;  %v2243_v25 = vld [vmem:[#allocation8 + $0x58] sm:$0xff] }
 0x632   :  { %v5175_v55 = vpop.eup %5174 }
 0x633   :  { %v1975_v13 = vmul.f32 %v5175_v55, %v6485_v14  ;;  %v2281_v14 = vld [vmem:[#allocation8 + $0x188] sm:$0xff]  ;;  %v2242_v55 = vld [vmem:[#allocation8 + $0x50] sm:$0xff] }
 0x634   :  { %v5177_v12 = vpop.eup %5176 }
 0x635   :  { %v6561_v48 = vadd.f32 %v1976_v3, %v1975_v13  ;;  %v2240_v3 = vld [vmem:[#allocation8 + $0x40] sm:$0xff]  ;;  %v2239_v13 = vld [vmem:[#allocation8 + $0x38] sm:$0xff] }
 0x637   :  { %5178 = vtanh.f32 %v6561_v48 }
 0x644   :  { %v5179_v4 = vpop.eup %5178 }
 0x645   :  { %v6564_v27 = vmul.f32 %v5179_v4, %v5177_v12  ;;  %v2236_v12 = vld [vmem:[#allocation8 + $0x20] sm:$0xff]  ;;  %v2238_v4 = vld [vmem:[#allocation8 + $0x30] sm:$0xff] }
 0x647   :  { %2118 = vmatmul.mubr.f32.vlgmr.msra.gmra.mxu1 %v6564_v27  ;;  %2189 = vmatmul.mubr.f32.vlgmr.msra.gmra.mxu0 %v6564_v27 }
 0x648   :  { %2360 = vmatprep.mubr.f32.mxu1 %v7948_v41  ;;  %2431 = vmatprep.mubr.f32.mxu0 %v7948_v41 }
 0x649   :  { %2297 = vmatpush1.msra.mxu1 %v2292_v57  ;;  %2368 = vmatpush1.msra.mxu0 %v2294_v39  ;;  %v2232_v57 = vld [vmem:[#allocation8] sm:$0xff]  ;;  %v2234_v39 = vld [vmem:[#allocation8 + $0x10] sm:$0xff] }
 0x64a   :  { %2298 = vmatprep.subr.mxu1 %v2289_v9  ;;  %2369 = vmatprep.subr.mxu0 %v2291_v53  ;;  %v2537_v9 = vld [vmem:[#allocation10 + $0x1e8] sm:$0xff]  ;;  %v2539_v53 = vld [vmem:[#allocation10 + $0x1f8] sm:$0xff] }
 0x64b   :  { %2299 = vmatpush1.msra.mxu1 %v2288_v62  ;;  %2370 = vmatpush1.msra.mxu0 %v2290_v47  ;;  %v7954_v47 = vld [vmem:[#allocation56_spill] sm:$0xff] }
 0x64c   :  { %2300 = vmatprep.subr.mxu1 %v2285_v58  ;;  %2371 = vmatprep.subr.mxu0 %v2287_v1 }
 0x64d   :  { %2301 = vmatpush1.msra.mxu1 %v2284_v30  ;;  %2372 = vmatpush1.msra.mxu0 %v2286_v6  ;;  %v7955_v6 = vld [vmem:[#allocation58_spill] sm:$0xff] }
 0x64e   :  { %2302 = vmatprep.subr.mxu1 %v2281_v14  ;;  %2373 = vmatprep.subr.mxu0 %v2283_v60 }
 0x64f   :  { %2303 = vmatpush1.msra.mxu1 %v2280_v28  ;;  %2374 = vmatpush1.msra.mxu0 %v2282_v33 }
 0x650   :  { %2304 = vmatprep.subr.mxu1 %v2277_v8  ;;  %2375 = vmatprep.subr.mxu0 %v2279_v10  ;;  %v7956_v8 = vld [vmem:[#allocation68_spill] sm:$0xff] }
 0x651   :  { %2305 = vmatpush1.msra.mxu1 %v2276_v16  ;;  %2376 = vmatpush1.msra.mxu0 %v2278_v17  ;;  %v7957_v16 = vld [vmem:[#allocation67_spill] sm:$0xff] }
 0x652   :  { %2306 = vmatprep.subr.mxu1 %v2273_v19  ;;  %2377 = vmatprep.subr.mxu0 %v2275_v20 }
 0x653   :  { %2307 = vmatpush1.msra.mxu1 %v2272_v23  ;;  %2378 = vmatpush1.msra.mxu0 %v2274_v24 }
 0x654   :  { %2308 = vmatprep.subr.mxu1 %v2269_v26  ;;  %2379 = vmatprep.subr.mxu0 %v2271_v29 }
 0x655   :  { %2309 = vmatpush1.msra.mxu1 %v2268_v32  ;;  %2380 = vmatpush1.msra.mxu0 %v2270_v34 }
 0x656   :  { %2310 = vmatprep.subr.mxu1 %v2265_v36  ;;  %2381 = vmatprep.subr.mxu0 %v2267_v37 }
 0x657   :  { %2311 = vmatpush1.msra.mxu1 %v2264_v40  ;;  %2382 = vmatpush1.msra.mxu0 %v2266_v42 }
 0x658   :  { %2312 = vmatprep.subr.mxu1 %v2261_v43  ;;  %2383 = vmatprep.subr.mxu0 %v2263_v44 }
 0x659   :  { %2313 = vmatpush1.msra.mxu1 %v2260_v45  ;;  %2384 = vmatpush1.msra.mxu0 %v2262_v46 }
 0x65a   :  { %2314 = vmatprep.subr.mxu1 %v2257_v49  ;;  %2385 = vmatprep.subr.mxu0 %v2259_v50  ;;  %v2536_v49 = vld [vmem:[#allocation10 + $0x1e0] sm:$0xff]  ;;  %v2538_v50 = vld [vmem:[#allocation10 + $0x1f0] sm:$0xff] }
 0x65b   :  { %2315 = vmatpush1.msra.mxu1 %v2256_v51  ;;  %2386 = vmatpush1.msra.mxu0 %v2258_v52  ;;  %v2533_v51 = vld [vmem:[#allocation10 + $0x1c8] sm:$0xff]  ;;  %v2535_v52 = vld [vmem:[#allocation10 + $0x1d8] sm:$0xff] }
 0x65c   :  { %2316 = vmatprep.subr.mxu1 %v2253_v54  ;;  %2387 = vmatprep.subr.mxu0 %v2255_v56  ;;  %v2532_v54 = vld [vmem:[#allocation10 + $0x1c0] sm:$0xff]  ;;  %v2534_v56 = vld [vmem:[#allocation10 + $0x1d0] sm:$0xff] }
 0x65d   :  { %2317 = vmatpush1.msra.mxu1 %v2252_v59  ;;  %2388 = vmatpush1.msra.mxu0 %v2254_v61  ;;  %v2531_v59 = vld [vmem:[#allocation10 + $0x1b8] sm:$0xff]  ;;  %v2528_v61 = vld [vmem:[#allocation10 + $0x1a0] sm:$0xff] }
 0x65e   :  { %2318 = vmatprep.subr.mxu1 %v2249_v63  ;;  %2389 = vmatprep.subr.mxu0 %v2251_v2  ;;  %v2530_v63 = vld [vmem:[#allocation10 + $0x1b0] sm:$0xff]  ;;  %v2525_v2 = vld [vmem:[#allocation10 + $0x188] sm:$0xff] }
 0x65f   :  { %2319 = vmatpush1.msra.mxu1 %v2248_v5  ;;  %2390 = vmatpush1.msra.mxu0 %v2250_v7  ;;  %v2527_v5 = vld [vmem:[#allocation10 + $0x198] sm:$0xff]  ;;  %v2524_v7 = vld [vmem:[#allocation10 + $0x180] sm:$0xff] }
 0x660   :  { %2320 = vmatprep.subr.mxu1 %v2245_v11  ;;  %2391 = vmatprep.subr.mxu0 %v2247_v15  ;;  %v2526_v11 = vld [vmem:[#allocation10 + $0x190] sm:$0xff]  ;;  %v2521_v15 = vld [vmem:[#allocation10 + $0x168] sm:$0xff] }
 0x661   :  { %2321 = vmatpush1.msra.mxu1 %v2244_v18  ;;  %2392 = vmatpush1.msra.mxu0 %v2246_v21  ;;  %v2523_v18 = vld [vmem:[#allocation10 + $0x178] sm:$0xff]  ;;  %v2520_v21 = vld [vmem:[#allocation10 + $0x160] sm:$0xff] }
 0x662   :  { %2322 = vmatprep.subr.mxu1 %v2241_v22  ;;  %2393 = vmatprep.subr.mxu0 %v2243_v25  ;;  %v2522_v22 = vld [vmem:[#allocation10 + $0x170] sm:$0xff]  ;;  %v2517_v25 = vld [vmem:[#allocation10 + $0x148] sm:$0xff] }
 0x663   :  { %2323 = vmatpush1.msra.mxu1 %v2240_v3  ;;  %2394 = vmatpush1.msra.mxu0 %v2242_v55  ;;  %v2519_v3 = vld [vmem:[#allocation10 + $0x158] sm:$0xff]  ;;  %v2516_v55 = vld [vmem:[#allocation10 + $0x140] sm:$0xff] }
 0x664   :  { %2324 = vmatprep.subr.mxu1 %v2237_v35  ;;  %2395 = vmatprep.subr.mxu0 %v2239_v13  ;;  %v2518_v35 = vld [vmem:[#allocation10 + $0x150] sm:$0xff]  ;;  %v2513_v13 = vld [vmem:[#allocation10 + $0x128] sm:$0xff] }
 0x665   :  { %2325 = vmatpush1.msra.mxu1 %v2236_v12  ;;  %2396 = vmatpush1.msra.mxu0 %v2238_v4  ;;  %v2515_v12 = vld [vmem:[#allocation10 + $0x138] sm:$0xff]  ;;  %v2512_v4 = vld [vmem:[#allocation10 + $0x120] sm:$0xff] }
 0x666   :  { %2326 = vmatprep.subr.mxu1 %v2233_v0  ;;  %2397 = vmatprep.subr.mxu0 %v2235_v31  ;;  %v2514_v0 = vld [vmem:[#allocation10 + $0x130] sm:$0xff]  ;;  %v2509_v31 = vld [vmem:[#allocation10 + $0x108] sm:$0xff] }
 0x667   :  { %2327 = vmatpush1.msra.mxu1 %v2232_v57  ;;  %2398 = vmatpush1.msra.mxu0 %v2234_v39  ;;  %v2511_v57 = vld [vmem:[#allocation10 + $0x118] sm:$0xff]  ;;  %v2508_v39 = vld [vmem:[#allocation10 + $0x100] sm:$0xff] }
 0x668   :  { %2562 = vmatprep.subr.mxu1 %v2537_v9  ;;  %2675 = vmatprep.subr.mxu0 %v2539_v53  ;;  %v2510_v9 = vld [vmem:[#allocation10 + $0x110] sm:$0xff]  ;;  %v2505_v53 = vld [vmem:[#allocation10 + $0xe8] sm:$0xff] }
 0x707   :  { %v2119_v62 = vpop.f32.mrf.mxu1  ;;  %v2190_v60 = vpop.f32.mrf.mxu0 }
 0x708   :  { %v2195_v58 = vadd.f32 %v2119_v62, %v7954_v47  ;;  %v2197_v17 = vadd.f32 %v2190_v60, %v7957_v16  ;;  %v2507_v62 = vld [vmem:[#allocation10 + $0xf8] sm:$0xff]  ;;  %v2504_v47 = vld [vmem:[#allocation10 + $0xe0] sm:$0xff]  ;;  %v2497_v60 = vld [vmem:[#allocation10 + $0xa8] sm:$0xff] }
 0x709   :  { %v2121_v1 = vpop.f32.mrf.mxu1  ;;  %v2192_v33 = vpop.f32.mrf.mxu0  ;;  %v2495_v16 = vld [vmem:[#allocation10 + $0x98] sm:$0xff] }
 0x70a   :  { %v4945_v30 = vmul.f32 -1.442695, %v2195_v58  ;;  %v2196_v14 = vadd.f32 %v2121_v1, %v7955_v6  ;;  %v2198_v10 = vadd.f32 %v2192_v33, %v7956_v8  ;;  %v2506_v58 = vld [vmem:[#allocation10 + $0xf0] sm:$0xff]  ;;  %v2501_v1 = vld [vmem:[#allocation10 + $0xc8] sm:$0xff]  ;;  %v2500_v6 = vld [vmem:[#allocation10 + $0xc0] sm:$0xff] }
 0x70b   :  { %v2496_v33 = vld [vmem:[#allocation10 + $0xa0] sm:$0xff]  ;;  %v2498_v8 = vld [vmem:[#allocation10 + $0xb0] sm:$0xff] }
 0x70c   :  { %5180 = vpow2.f32 %v4945_v30  ;;  %v4946_v28 = vmul.f32 -1.442695, %v2196_v14  ;;  %v4947_v19 = vmul.f32 -1.442695, %v2198_v10  ;;  %v2503_v30 = vld [vmem:[#allocation10 + $0xd8] sm:$0xff]  ;;  %v2502_v14 = vld [vmem:[#allocation10 + $0xd0] sm:$0xff] }
 0x70d   :  { %v2493_v10 = vld [vmem:[#allocation10 + $0x88] sm:$0xff] }
 0x70e   :  { %5182 = vpow2.f32 %v4946_v28  ;;  %v2499_v28 = vld [vmem:[#allocation10 + $0xb8] sm:$0xff] }
 0x70f   :  { %5184 = vtanh.f32 %v2197_v17  ;;  %v2492_v17 = vld [vmem:[#allocation10 + $0x80] sm:$0xff] }
 0x710   :  { %5186 = vpow2.f32 %v4947_v19  ;;  %v2494_v19 = vld [vmem:[#allocation10 + $0x90] sm:$0xff] }
 0x719   :  { %v5181_v20 = vpop.eup %5180 }
 0x71a   :  { %v2202_v23 = vadd.f32 1.0, %v5181_v20  ;;  %v2489_v20 = vld [vmem:[#allocation10 + $0x68] sm:$0xff] }
 0x71b   :  { %v5183_v24 = vpop.eup %5182 }
 0x71c   :  { %5188 = vrcp.f32 %v2202_v23  ;;  %v2208_v26 = vadd.f32 1.0, %v5183_v24  ;;  %v5185_v29 = vpop.eup %5184  ;;  %v2491_v23 = vld [vmem:[#allocation10 + $0x78] sm:$0xff]  ;;  %v2488_v24 = vld [vmem:[#allocation10 + $0x60] sm:$0xff] }
 0x71d   :  { %v5187_v32 = vpop.eup %5186 }
 0x71e   :  { %5190 = vrcp.f32 %v2208_v26  ;;  %v2215_v40 = vadd.f32 1.0, %v5187_v32  ;;  %v2490_v26 = vld [vmem:[#allocation10 + $0x70] sm:$0xff]  ;;  %v2487_v32 = vld [vmem:[#allocation10 + $0x58] sm:$0xff] }
 0x720   :  { %5192 = vrcp.f32 %v2215_v40  ;;  %v2483_v40 = vld [vmem:[#allocation10 + $0x38] sm:$0xff] }
 0x729   :  { %v5189_v34 = vpop.eup %5188 }
 0x72a   :  { %v2219_v36 = vmul.f32 %v5189_v34, %v5185_v29  ;;  %v2485_v29 = vld [vmem:[#allocation10 + $0x48] sm:$0xff]  ;;  %v2484_v34 = vld [vmem:[#allocation10 + $0x40] sm:$0xff] }
 0x72b   :  { %v5191_v37 = vpop.eup %5190 }
 0x72c   :  { %v2218_v42 = vmul.f32 %v5191_v37, %v6561_v48  ;;  %v2529_v48 = vld [vmem:[#allocation10 + $0x1a8] sm:$0xff] }
 0x72d   :  { %v5193_v44 = vpop.eup %5192  ;;  %v2481_v37 = vld [vmem:[#allocation10 + $0x28] sm:$0xff] }
 0x72e   :  { %v6575_v43 = vadd.f32 %v2219_v36, %v2218_v42  ;;  %v2486_v36 = vld [vmem:[#allocation10 + $0x50] sm:$0xff]  ;;  %v2480_v42 = vld [vmem:[#allocation10 + $0x20] sm:$0xff] }
 0x730   :  { %5194 = vtanh.f32 %v6575_v43 }
 0x73d   :  { %v5195_v45 = vpop.eup %5194 }
 0x73e   :  { %v6578_v46 = vmul.f32 %v5195_v45, %v5193_v44  ;;  %v2482_v44 = vld [vmem:[#allocation10 + $0x30] sm:$0xff]  ;;  %v2477_v45 = vld [vmem:[#allocation10 + $0x8] sm:$0xff] }
 0x740   :  { %2361 = vmatmul.mubr.f32.vlgmr.msra.gmra.mxu1 %v6578_v46  ;;  %2432 = vmatmul.mubr.f32.vlgmr.msra.gmra.mxu0 %v6578_v46 }
 0x741   :  { %2563 = vmatpush1.msra.mxu1 %v2536_v49  ;;  %2676 = vmatpush1.msra.mxu0 %v2538_v50  ;;  %v2479_v49 = vld [vmem:[#allocation10 + $0x18] sm:$0xff]  ;;  %v2476_v50 = vld [vmem:[#allocation10] sm:$0xff] }
 0x742   :  { %2564 = vmatprep.subr.mxu1 %v2533_v51  ;;  %2677 = vmatprep.subr.mxu0 %v2535_v52  ;;  %v2478_v51 = vld [vmem:[#allocation10 + $0x10] sm:$0xff]  ;;  %v7958_v52 = vld [vmem:[#allocation72_spill] sm:$0xff] }
 0x743   :  { %2565 = vmatpush1.msra.mxu1 %v2532_v54  ;;  %2678 = vmatpush1.msra.mxu0 %v2534_v56  ;;  %v7959_v54 = vld [vmem:[#allocation19_spill] sm:$0xff]  ;;  %v7960_v56 = vld [vmem:[#allocation40_spill] sm:$0xff] }
 0x744   :  { %2566 = vmatprep.subr.mxu1 %v2529_v48  ;;  %2679 = vmatprep.subr.mxu0 %v2531_v59  ;;  %v7961_v48 = vld [vmem:[#allocation30_spill] sm:$0xff] }
 0x745   :  { %2567 = vmatpush1.msra.mxu1 %v2528_v61  ;;  %2680 = vmatpush1.msra.mxu0 %v2530_v63  ;;  %v6614_v59 = vld [vmem:[#allocation11 + $0x1f8] sm:$0xff]  ;;  %v6620_v61 = vld [vmem:[#allocation11 + $0x1f0] sm:$0xff] }
 0x746   :  { %2568 = vmatprep.subr.mxu1 %v2525_v2  ;;  %2681 = vmatprep.subr.mxu0 %v2527_v5  ;;  %7963 = vst [vmem:[#allocation43_spill] sm:$0xff] %v6614_v59  ;;  %v6626_v63 = vld [vmem:[#allocation11 + $0x1d8] sm:$0xff]  ;;  %v6630_v2 = vld [vmem:[#allocation11 + $0x1c0] sm:$0xff]  ;;  %v6632_v5 = vld [vmem:[#allocation11 + $0x1d0] sm:$0xff] }
 0x747   :  { %2569 = vmatpush1.msra.mxu1 %v2524_v7  ;;  %2682 = vmatpush1.msra.mxu0 %v2526_v11  ;;  %v6636_v7 = vld [vmem:[#allocation11 + $0x1a8] sm:$0xff]  ;;  %v6638_v11 = vld [vmem:[#allocation11 + $0x1b8] sm:$0xff] }
 0x748   :  { %2570 = vmatprep.subr.mxu1 %v2521_v15  ;;  %2683 = vmatprep.subr.mxu0 %v2523_v18  ;;  %v6642_v15 = vld [vmem:[#allocation11 + $0x1a0] sm:$0xff]  ;;  %v6644_v18 = vld [vmem:[#allocation11 + $0x1b0] sm:$0xff] }
 0x749   :  { %2571 = vmatpush1.msra.mxu1 %v2520_v21  ;;  %2684 = vmatpush1.msra.mxu0 %v2522_v22  ;;  %v6648_v21 = vld [vmem:[#allocation11 + $0x188] sm:$0xff]  ;;  %v6650_v22 = vld [vmem:[#allocation11 + $0x198] sm:$0xff] }
 0x74a   :  { %2572 = vmatprep.subr.mxu1 %v2517_v25  ;;  %2685 = vmatprep.subr.mxu0 %v2519_v3  ;;  %v6654_v25 = vld [vmem:[#allocation11 + $0x180] sm:$0xff]  ;;  %v6656_v3 = vld [vmem:[#allocation11 + $0x190] sm:$0xff] }
 0x74b   :  { %2573 = vmatpush1.msra.mxu1 %v2516_v55  ;;  %2686 = vmatpush1.msra.mxu0 %v2518_v35  ;;  %v6660_v55 = vld [vmem:[#allocation11 + $0x168] sm:$0xff]  ;;  %v6662_v35 = vld [vmem:[#allocation11 + $0x178] sm:$0xff] }
 0x74c   :  { %2574 = vmatprep.subr.mxu1 %v2513_v13  ;;  %2687 = vmatprep.subr.mxu0 %v2515_v12  ;;  %v6666_v13 = vld [vmem:[#allocation11 + $0x160] sm:$0xff]  ;;  %v6668_v12 = vld [vmem:[#allocation11 + $0x170] sm:$0xff] }
 0x74d   :  { %2575 = vmatpush1.msra.mxu1 %v2512_v4  ;;  %2688 = vmatpush1.msra.mxu0 %v2514_v0  ;;  %v6672_v4 = vld [vmem:[#allocation11 + $0x148] sm:$0xff]  ;;  %v6674_v0 = vld [vmem:[#allocation11 + $0x158] sm:$0xff] }
 0x74e   :  { %2576 = vmatprep.subr.mxu1 %v2509_v31  ;;  %2689 = vmatprep.subr.mxu0 %v2511_v57  ;;  %v6678_v31 = vld [vmem:[#allocation11 + $0x140] sm:$0xff]  ;;  %v6680_v57 = vld [vmem:[#allocation11 + $0x150] sm:$0xff] }
 0x74f   :  { %2577 = vmatpush1.msra.mxu1 %v2508_v39  ;;  %2690 = vmatpush1.msra.mxu0 %v2510_v9  ;;  %v6684_v39 = vld [vmem:[#allocation11 + $0x128] sm:$0xff]  ;;  %v6686_v9 = vld [vmem:[#allocation11 + $0x138] sm:$0xff] }
 0x750   :  { %2578 = vmatprep.subr.mxu1 %v2505_v53  ;;  %2691 = vmatprep.subr.mxu0 %v2507_v62  ;;  %v6690_v53 = vld [vmem:[#allocation11 + $0x120] sm:$0xff]  ;;  %v6692_v62 = vld [vmem:[#allocation11 + $0x130] sm:$0xff] }
 0x751   :  { %2579 = vmatpush1.msra.mxu1 %v2504_v47  ;;  %2692 = vmatpush1.msra.mxu0 %v2506_v58  ;;  %v6696_v47 = vld [vmem:[#allocation11 + $0x108] sm:$0xff]  ;;  %v6698_v58 = vld [vmem:[#allocation11 + $0x118] sm:$0xff] }
 0x752   :  { %2580 = vmatprep.subr.mxu1 %v2501_v1  ;;  %2693 = vmatprep.subr.mxu0 %v2503_v30  ;;  %v6702_v1 = vld [vmem:[#allocation11 + $0x100] sm:$0xff]  ;;  %v6704_v30 = vld [vmem:[#allocation11 + $0x110] sm:$0xff] }
 0x753   :  { %2581 = vmatpush1.msra.mxu1 %v2500_v6  ;;  %2694 = vmatpush1.msra.mxu0 %v2502_v14  ;;  %v6708_v6 = vld [vmem:[#allocation11 + $0xe8] sm:$0xff]  ;;  %v6710_v14 = vld [vmem:[#allocation11 + $0xf8] sm:$0xff] }
 0x754   :  { %2582 = vmatprep.subr.mxu1 %v2497_v60  ;;  %2695 = vmatprep.subr.mxu0 %v2499_v28  ;;  %v6714_v60 = vld [vmem:[#allocation11 + $0xe0] sm:$0xff]  ;;  %v6716_v28 = vld [vmem:[#allocation11 + $0xf0] sm:$0xff] }
 0x755   :  { %2583 = vmatpush1.msra.mxu1 %v2496_v33  ;;  %2696 = vmatpush1.msra.mxu0 %v2498_v8  ;;  %v6720_v33 = vld [vmem:[#allocation11 + $0xc8] sm:$0xff]  ;;  %v6722_v8 = vld [vmem:[#allocation11 + $0xd8] sm:$0xff] }
 0x756   :  { %2584 = vmatprep.subr.mxu1 %v2493_v10  ;;  %2697 = vmatprep.subr.mxu0 %v2495_v16  ;;  %v6726_v10 = vld [vmem:[#allocation11 + $0xc0] sm:$0xff]  ;;  %v6728_v16 = vld [vmem:[#allocation11 + $0xd0] sm:$0xff] }
 0x757   :  { %2585 = vmatpush1.msra.mxu1 %v2492_v17  ;;  %2698 = vmatpush1.msra.mxu0 %v2494_v19  ;;  %v6732_v17 = vld [vmem:[#allocation11 + $0xa8] sm:$0xff]  ;;  %v6734_v19 = vld [vmem:[#allocation11 + $0xb8] sm:$0xff] }
 0x758   :  { %2586 = vmatprep.subr.mxu1 %v2489_v20  ;;  %2699 = vmatprep.subr.mxu0 %v2491_v23  ;;  %v6738_v20 = vld [vmem:[#allocation11 + $0xa0] sm:$0xff]  ;;  %v6740_v23 = vld [vmem:[#allocation11 + $0xb0] sm:$0xff] }
 0x759   :  { %2587 = vmatpush1.msra.mxu1 %v2488_v24  ;;  %2700 = vmatpush1.msra.mxu0 %v2490_v26  ;;  %v6744_v24 = vld [vmem:[#allocation11 + $0x88] sm:$0xff]  ;;  %v6746_v26 = vld [vmem:[#allocation11 + $0x98] sm:$0xff] }
 0x75a   :  { %2588 = vmatprep.subr.mxu1 %v2485_v29  ;;  %2701 = vmatprep.subr.mxu0 %v2487_v32  ;;  %7964 = vst [vmem:[#allocation44_spill] sm:$0xff] %v6744_v24  ;;  %7965 = vst [vmem:[#allocation53_spill] sm:$0xff] %v6746_v26  ;;  %v6750_v29 = vld [vmem:[#allocation11 + $0x80] sm:$0xff]  ;;  %v6752_v32 = vld [vmem:[#allocation11 + $0x90] sm:$0xff] }
 0x75b   :  { %2589 = vmatpush1.msra.mxu1 %v2484_v34  ;;  %2702 = vmatpush1.msra.mxu0 %v2486_v36  ;;  %7966 = vst [vmem:[#allocation51_spill] sm:$0xff] %v6750_v29  ;;  %7967 = vst [vmem:[#allocation45_spill] sm:$0xff] %v6752_v32  ;;  %v6756_v34 = vld [vmem:[#allocation11 + $0x68] sm:$0xff]  ;;  %v6758_v36 = vld [vmem:[#allocation11 + $0x78] sm:$0xff] }
 0x75c   :  { %2590 = vmatprep.subr.mxu1 %v2481_v37  ;;  %2703 = vmatprep.subr.mxu0 %v2483_v40  ;;  %7968 = vst [vmem:[#allocation46_spill] sm:$0xff] %v6756_v34  ;;  %7969 = vst [vmem:[#allocation57_spill] sm:$0xff] %v6758_v36  ;;  %v6762_v37 = vld [vmem:[#allocation11 + $0x60] sm:$0xff]  ;;  %v6764_v40 = vld [vmem:[#allocation11 + $0x70] sm:$0xff] }
 0x75d   :  { %2591 = vmatpush1.msra.mxu1 %v2480_v42  ;;  %2704 = vmatpush1.msra.mxu0 %v2482_v44  ;;  %7970 = vst [vmem:[#allocation55_spill] sm:$0xff] %v6762_v37  ;;  %7971 = vst [vmem:[#allocation47_spill] sm:$0xff] %v6764_v40  ;;  %v6768_v42 = vld [vmem:[#allocation11 + $0x48] sm:$0xff]  ;;  %v6770_v44 = vld [vmem:[#allocation11 + $0x58] sm:$0xff] }
 0x75e   :  { %2592 = vmatprep.subr.mxu1 %v2477_v45  ;;  %2705 = vmatprep.subr.mxu0 %v2479_v49  ;;  %7972 = vst [vmem:[#allocation48_spill] sm:$0xff] %v6768_v42  ;;  %7973 = vst [vmem:[#allocation61_spill] sm:$0xff] %v6770_v44  ;;  %v6774_v45 = vld [vmem:[#allocation11 + $0x40] sm:$0xff]  ;;  %v6776_v49 = vld [vmem:[#allocation11 + $0x50] sm:$0xff] }
 0x75f   :  { %2593 = vmatpush1.msra.mxu1 %v2476_v50  ;;  %2626 = vmatprep.mubr.f32.mxu1 %v7948_v41  ;;  %7974 = vst [vmem:[#allocation59_spill] sm:$0xff] %v6774_v45  ;;  %7975 = vst [vmem:[#allocation20_spill] sm:$0xff] %v6776_v49  ;;  %v6780_v50 = vld [vmem:[#allocation11 + $0x28] sm:$0xff] }
 0x760   :  { %2706 = vmatpush1.msra.mxu0 %v2478_v51  ;;  %2739 = vmatprep.mubr.f32.mxu0 %v7948_v41  ;;  %7976 = vst [vmem:[#allocation31_spill] sm:$0xff] %v6780_v50  ;;  %v6782_v51 = vld [vmem:[#allocation11 + $0x38] sm:$0xff] }
 0x761   :  { %2627 = vmatmul.mubr.f32.vlgmr.msra.gmra.mxu1 %v7958_v52  ;;  %2740 = vmatmul.mubr.f32.vlgmr.msra.gmra.mxu0 %v7958_v52  ;;  %7977 = vst [vmem:[#allocation49_spill] sm:$0xff] %v6782_v51  ;;  %v6786_v52 = vld [vmem:[#allocation11 + $0x20] sm:$0xff] }
 0x762   :  { %2632 = vmatprep.mubr.f32.mxu1 %v7948_v41  ;;  %2745 = vmatprep.mubr.f32.mxu0 %v7948_v41  ;;  %7978 = vst [vmem:[#allocation50_spill] sm:$0xff] %v6786_v52 }
 0x763   :  { %2959 = vmatprep.subr.mxu0 %v6614_v59 }
 0x764   :  { %2960 = vmatpush1.msra.mxu0 %v6620_v61 }
 0x765   :  { %2633 = vmatmul.mubr.f32.gmra.mxu1 %v7959_v54  ;;  %2746 = vmatmul.mubr.f32.gmra.mxu0 %v7959_v54  ;;  %v6788_v54 = vld [vmem:[#allocation11 + $0x30] sm:$0xff] }
 0x766   :  { %2638 = vmatprep.mubr.f32.mxu1 %v7948_v41  ;;  %2751 = vmatprep.mubr.f32.mxu0 %v7948_v41  ;;  %7979 = vst [vmem:[#allocation64_spill] sm:$0xff] %v6788_v54 }
 0x767   :  { %2961 = vmatprep.subr.mxu0 %v6626_v63 }
 0x768   :  { %2962 = vmatpush1.msra.mxu0 %v6632_v5 }
 0x769   :  { %2639 = vmatmul.mubr.f32.gmra.mxu1 %v7960_v56  ;;  %2752 = vmatmul.mubr.f32.gmra.mxu0 %v7960_v56  ;;  %v6792_v56 = vld [vmem:[#allocation11 + $0x8] sm:$0xff] }
 0x76a   :  { %2644 = vmatprep.mubr.f32.mxu1 %v7948_v41  ;;  %2757 = vmatprep.mubr.f32.mxu0 %v7948_v41  ;;  %7980 = vst [vmem:[#allocation63_spill] sm:$0xff] %v6792_v56 }
 0x76b   :  { %2963 = vmatprep.subr.mxu0 %v6638_v11 }
 0x76c   :  { %2964 = vmatpush1.msra.mxu0 %v6644_v18 }
 0x76d   :  { %2645 = vmatmul.mubr.f32.gmra.mxu1 %v7961_v48  ;;  %2758 = vmatmul.mubr.f32.gmra.mxu0 %v7961_v48  ;;  %v6794_v48 = vld [vmem:[#allocation11 + $0x18] sm:$0xff] }
 0x76e   :  { %2650 = vmatprep.mubr.f32.mxu1 %v7948_v41  ;;  %2763 = vmatprep.mubr.f32.mxu0 %v7948_v41  ;;  %7981 = vst [vmem:[#allocation21_spill] sm:$0xff] %v6794_v48 }
 0x76f   :  { %2965 = vmatprep.subr.mxu0 %v6650_v22 }
 0x770   :  { %2966 = vmatpush1.msra.mxu0 %v6656_v3 }
 0x771   :  { %2651 = vmatmul.mubr.f32.gmra.mxu1 %v6488_v38  ;;  %2764 = vmatmul.mubr.f32.gmra.mxu0 %v6488_v38  ;;  %v6612_v38 = vld [vmem:[#allocation11 + $0x1e8] sm:$0xff] }
 0x772   :  { %2656 = vmatprep.mubr.f32.mxu1 %v7948_v41  ;;  %2769 = vmatprep.mubr.f32.mxu0 %v7948_v41  ;;  %7962 = vst [vmem:[#allocation41_spill] sm:$0xff] %v6612_v38 }
 0x773   :  { %2888 = vmatprep.subr.mxu1 %v6612_v38  ;;  %2967 = vmatprep.subr.mxu0 %v6662_v35 }
 0x774   :  { %2968 = vmatpush1.msra.mxu0 %v6668_v12 }
 0x775   :  { %2657 = vmatmul.mubr.f32.gmra.mxu1 %v6564_v27  ;;  %2770 = vmatmul.mubr.f32.gmra.mxu0 %v6564_v27  ;;  %v6618_v27 = vld [vmem:[#allocation11 + $0x1e0] sm:$0xff] }
 0x776   :  { %2662 = vmatprep.mubr.f32.mxu1 %v7948_v41  ;;  %2775 = vmatprep.mubr.f32.mxu0 %v7948_v41 }
 0x777   :  { %2889 = vmatpush1.msra.mxu1 %v6618_v27  ;;  %2969 = vmatprep.subr.mxu0 %v6674_v0 }
 0x778   :  { %2970 = vmatpush1.msra.mxu0 %v6680_v57 }
 0x779   :  { %2663 = vmatmul.mubr.f32.gmra.mxu1 %v6578_v46  ;;  %2776 = vmatmul.mubr.f32.gmra.mxu0 %v6578_v46  ;;  %v6624_v46 = vld [vmem:[#allocation11 + $0x1c8] sm:$0xff] }
 0x77a   :  { %2668 = vmatprep.mubr.f32.mxu1 %v7948_v41  ;;  %2781 = vmatprep.mubr.f32.mxu0 %v7948_v41 }
 0x77b   :  { %2890 = vmatprep.subr.mxu1 %v6624_v46  ;;  %2971 = vmatprep.subr.mxu0 %v6686_v9 }
 0x77c   :  { %2891 = vmatpush1.msra.mxu1 %v6630_v2  ;;  %2972 = vmatpush1.msra.mxu0 %v6692_v62 }
 0x77d   :  { %2892 = vmatprep.subr.mxu1 %v6636_v7  ;;  %2973 = vmatprep.subr.mxu0 %v6698_v58 }
 0x77e   :  { %2893 = vmatpush1.msra.mxu1 %v6642_v15  ;;  %2974 = vmatpush1.msra.mxu0 %v6704_v30 }
 0x77f   :  { %2894 = vmatprep.subr.mxu1 %v6648_v21  ;;  %2975 = vmatprep.subr.mxu0 %v6710_v14 }
 0x780   :  { %2895 = vmatpush1.msra.mxu1 %v6654_v25  ;;  %2976 = vmatpush1.msra.mxu0 %v6716_v28 }
 0x781   :  { %2896 = vmatprep.subr.mxu1 %v6660_v55  ;;  %2977 = vmatprep.subr.mxu0 %v6722_v8 }
 0x782   :  { %2897 = vmatpush1.msra.mxu1 %v6666_v13  ;;  %2978 = vmatpush1.msra.mxu0 %v6728_v16 }
 0x783   :  { %2898 = vmatprep.subr.mxu1 %v6672_v4  ;;  %2979 = vmatprep.subr.mxu0 %v6734_v19 }
 0x784   :  { %2899 = vmatpush1.msra.mxu1 %v6678_v31  ;;  %2980 = vmatpush1.msra.mxu0 %v6740_v23 }
 0x785   :  { %2900 = vmatprep.subr.mxu1 %v6684_v39  ;;  %2981 = vmatprep.subr.mxu0 %v6746_v26 }
 0x786   :  { %2901 = vmatpush1.msra.mxu1 %v6690_v53  ;;  %2982 = vmatpush1.msra.mxu0 %v6752_v32 }
 0x787   :  { %2902 = vmatprep.subr.mxu1 %v6696_v47  ;;  %2983 = vmatprep.subr.mxu0 %v6758_v36  ;;  %v7986_v36 = vld [vmem:[#allocation70_spill] sm:$0xff] }
 0x788   :  { %2903 = vmatpush1.msra.mxu1 %v6702_v1  ;;  %2984 = vmatpush1.msra.mxu0 %v6764_v40 }
 0x789   :  { %2904 = vmatprep.subr.mxu1 %v6708_v6  ;;  %2985 = vmatprep.subr.mxu0 %v6770_v44 }
 0x78a   :  { %2905 = vmatpush1.msra.mxu1 %v6714_v60  ;;  %2986 = vmatpush1.msra.mxu0 %v6776_v49  ;;  %v6796_v49 = vld [vmem:[#allocation11] sm:$0xff] }
 0x78b   :  { %2906 = vmatprep.subr.mxu1 %v6720_v33  ;;  %2987 = vmatprep.subr.mxu0 %v6782_v51  ;;  %7982 = vst [vmem:[#allocation32_spill] sm:$0xff] %v6796_v49 }
 0x78c   :  { %2907 = vmatpush1.msra.mxu1 %v6726_v10  ;;  %2988 = vmatpush1.msra.mxu0 %v6788_v54 }
 0x78d   :  { %2908 = vmatprep.subr.mxu1 %v6732_v17  ;;  %2989 = vmatprep.subr.mxu0 %v6794_v48 }
 0x78e   :  { %2909 = vmatpush1.msra.mxu1 %v6738_v20 }
 0x78f   :  { %2910 = vmatprep.subr.mxu1 %v6744_v24 }
 0x790   :  { %2911 = vmatpush1.msra.mxu1 %v6750_v29 }
 0x791   :  { %2912 = vmatprep.subr.mxu1 %v6756_v34  ;;  %v7987_v34 = vld [vmem:[#allocation69_spill] sm:$0xff] }
 0x792   :  { %2913 = vmatpush1.msra.mxu1 %v6762_v37 }
 0x793   :  { %2914 = vmatprep.subr.mxu1 %v6768_v42  ;;  %v7985_v42 = vld [vmem:[#allocation62_spill] sm:$0xff] }
 0x794   :  { %2915 = vmatpush1.msra.mxu1 %v6774_v45 }
 0x795   :  { %2916 = vmatprep.subr.mxu1 %v6780_v50  ;;  %v6800_v50 = vld [vmem:[#allocation11 + $0x10] sm:$0xff] }
 0x796   :  { %2917 = vmatpush1.msra.mxu1 %v6786_v52  ;;  %7983 = vst [vmem:[#allocation22_spill] sm:$0xff] %v6800_v50  ;;  %2990 = vmatpush1.msra.mxu0 %v6800_v50  ;;  %v7984_v52 = vld [vmem:[#allocation60_spill] sm:$0xff] }
 0x797   :  { %2918 = vmatprep.subr.mxu1 %v6792_v56  ;;  %3198 = vmatprep.subr.mxu0 %v6614_v59 }
 0x798   :  { %2919 = vmatpush1.msra.mxu1 %v6796_v49 }
 0x799   :  { %3127 = vmatprep.subr.mxu1 %v6612_v38 }
 0x800   :  { %v2362_v54 = vpop.f32.mrf.mxu1  ;;  %v2433_v56 = vpop.f32.mrf.mxu0 }
 0x801   :  { %v2438_v51 = vadd.f32 %v2362_v54, %v7984_v52  ;;  %v2440_v50 = vadd.f32 %v2433_v56, %v7987_v34  ;;  %v7994_v56 = vld [vmem:[#allocation48_spill] sm:$0xff] }
 0x802   :  { %v2364_v45 = vpop.f32.mrf.mxu1  ;;  %v2435_v37 = vpop.f32.mrf.mxu0 }
 0x803   :  { %v4948_v44 = vmul.f32 -1.442695, %v2438_v51  ;;  %v2439_v40 = vadd.f32 %v2364_v45, %v7985_v42  ;;  %v2441_v49 = vadd.f32 %v2435_v37, %v7986_v36 }
 0x805   :  { %5196 = vpow2.f32 %v4948_v44  ;;  %v4949_v48 = vmul.f32 -1.442695, %v2439_v40  ;;  %v4950_v32 = vmul.f32 -1.442695, %v2441_v49  ;;  %v7992_v49 = vld [vmem:[#allocation55_spill] sm:$0xff] }
 0x807   :  { %5198 = vpow2.f32 %v4949_v48 }
 0x808   :  { %5200 = vtanh.f32 %v2440_v50  ;;  %v7993_v50 = vld [vmem:[#allocation47_spill] sm:$0xff] }
 0x809   :  { %5202 = vpow2.f32 %v4950_v32  ;;  %v7991_v32 = vld [vmem:[#allocation57_spill] sm:$0xff] }
 0x812   :  { %v5197_v38 = vpop.eup %5196 }
 0x813   :  { %v2445_v29 = vadd.f32 1.0, %v5197_v38 }
 0x814   :  { %v5199_v59 = vpop.eup %5198 }
 0x815   :  { %5204 = vrcp.f32 %v2445_v29  ;;  %v2451_v52 = vadd.f32 1.0, %v5199_v59  ;;  %v5201_v51 = vpop.eup %5200  ;;  %v7989_v59 = vld [vmem:[#allocation45_spill] sm:$0xff]  ;;  %v7990_v29 = vld [vmem:[#allocation46_spill] sm:$0xff] }
 0x816   :  { %v5203_v42 = vpop.eup %5202 }
 0x817   :  { %5206 = vrcp.f32 %v2451_v52  ;;  %v2458_v54 = vadd.f32 1.0, %v5203_v42  ;;  %v7995_v52 = vld [vmem:[#allocation61_spill] sm:$0xff]  ;;  %v7997_v42 = vld [vmem:[#allocation20_spill] sm:$0xff] }
 0x819   :  { %5208 = vrcp.f32 %v2458_v54  ;;  %v8001_v54 = vld [vmem:[#allocation64_spill] sm:$0xff] }
 0x822   :  { %v5205_v44 = vpop.eup %5204 }
 0x823   :  { %v2462_v45 = vmul.f32 %v5205_v44, %v5201_v51  ;;  %v7996_v51 = vld [vmem:[#allocation59_spill] sm:$0xff] }
 0x824   :  { %v5207_v40 = vpop.eup %5206  ;;  %v7998_v44 = vld [vmem:[#allocation31_spill] sm:$0xff] }
 0x825   :  { %v2461_v48 = vmul.f32 %v5207_v40, %v6575_v43  ;;  %v7988_v43 = vld [vmem:[#allocation51_spill] sm:$0xff]  ;;  %v8000_v40 = vld [vmem:[#allocation50_spill] sm:$0xff] }
 0x826   :  { %v5209_v34 = vpop.eup %5208 }
 0x827   :  { %v2463_v36 = vadd.f32 %v2462_v45, %v2461_v48  ;;  %v7999_v45 = vld [vmem:[#allocation49_spill] sm:$0xff]  ;;  %v8002_v48 = vld [vmem:[#allocation63_spill] sm:$0xff] }
 0x829   :  { %5210 = vtanh.f32 %v2463_v36  ;;  %v8003_v36 = vld [vmem:[#allocation21_spill] sm:$0xff] }
 0x836   :  { %v5211_v37 = vpop.eup %5210 }
 0x837   :  { %v2465_v38 = vmul.f32 %v5211_v37, %v5209_v34  ;;  %v8004_v34 = vld [vmem:[#allocation32_spill] sm:$0xff]  ;;  %v8005_v37 = vld [vmem:[#allocation22_spill] sm:$0xff] }
 0x839   :  { %2669 = vmatmul.mubr.f32.gmra.mxu1 %v2465_v38  ;;  %2782 = vmatmul.mubr.f32.gmra.mxu0 %v2465_v38  ;;  %v8006_v38 = vld [vmem:[#allocation41_spill] sm:$0xff] }
 0x83a   :  { %2952 = vmatprep.mubr.f32.mxu1 %v7948_v41  ;;  %3023 = vmatprep.mubr.f32.mxu0 %v7948_v41 }
 0x83d   :  { %2953 = vmatmul.mubr.f32.vlgmr.msra.gmra.mxu1 %v7948_v41  ;;  %3024 = vmatmul.mubr.f32.vlgmr.msra.gmra.mxu0 %v7948_v41 }
 0x83e   :  { %3128 = vmatpush1.msra.mxu1 %v6618_v27  ;;  %3199 = vmatpush1.msra.mxu0 %v6620_v61 }
 0x83f   :  { %3129 = vmatprep.subr.mxu1 %v6624_v46  ;;  %3200 = vmatprep.subr.mxu0 %v6626_v63 }
 0x840   :  { %3130 = vmatpush1.msra.mxu1 %v6630_v2  ;;  %3201 = vmatpush1.msra.mxu0 %v6632_v5 }
 0x841   :  { %3131 = vmatprep.subr.mxu1 %v6636_v7  ;;  %3202 = vmatprep.subr.mxu0 %v6638_v11 }
 0x842   :  { %3132 = vmatpush1.msra.mxu1 %v6642_v15  ;;  %3203 = vmatpush1.msra.mxu0 %v6644_v18 }
 0x843   :  { %3133 = vmatprep.subr.mxu1 %v6648_v21  ;;  %3204 = vmatprep.subr.mxu0 %v6650_v22 }
 0x844   :  { %3134 = vmatpush1.msra.mxu1 %v6654_v25  ;;  %3205 = vmatpush1.msra.mxu0 %v6656_v3 }
 0x845   :  { %3135 = vmatprep.subr.mxu1 %v6660_v55  ;;  %3206 = vmatprep.subr.mxu0 %v6662_v35 }
 0x846   :  { %3136 = vmatpush1.msra.mxu1 %v6666_v13  ;;  %3207 = vmatpush1.msra.mxu0 %v6668_v12 }
 0x847   :  { %3137 = vmatprep.subr.mxu1 %v6672_v4  ;;  %3208 = vmatprep.subr.mxu0 %v6674_v0 }
 0x848   :  { %3138 = vmatpush1.msra.mxu1 %v6678_v31  ;;  %3209 = vmatpush1.msra.mxu0 %v6680_v57 }
 0x849   :  { %3139 = vmatprep.subr.mxu1 %v6684_v39  ;;  %3210 = vmatprep.subr.mxu0 %v6686_v9 }
 0x84a   :  { %3140 = vmatpush1.msra.mxu1 %v6690_v53  ;;  %3211 = vmatpush1.msra.mxu0 %v6692_v62 }
 0x84b   :  { %3141 = vmatprep.subr.mxu1 %v6696_v47  ;;  %3212 = vmatprep.subr.mxu0 %v6698_v58 }
 0x84c   :  { %3142 = vmatpush1.msra.mxu1 %v6702_v1  ;;  %3213 = vmatpush1.msra.mxu0 %v6704_v30 }
 0x84d   :  { %3143 = vmatprep.subr.mxu1 %v6708_v6  ;;  %3214 = vmatprep.subr.mxu0 %v6710_v14 }
 0x84e   :  { %3144 = vmatpush1.msra.mxu1 %v6714_v60  ;;  %3215 = vmatpush1.msra.mxu0 %v6716_v28 }
 0x84f   :  { %3145 = vmatprep.subr.mxu1 %v6720_v33  ;;  %3216 = vmatprep.subr.mxu0 %v6722_v8 }
 0x850   :  { %3146 = vmatpush1.msra.mxu1 %v6726_v10  ;;  %3217 = vmatpush1.msra.mxu0 %v6728_v16 }
 0x851   :  { %3147 = vmatprep.subr.mxu1 %v6732_v17  ;;  %3218 = vmatprep.subr.mxu0 %v6734_v19 }
 0x852   :  { %3148 = vmatpush1.msra.mxu1 %v6738_v20  ;;  %3219 = vmatpush1.msra.mxu0 %v6740_v23 }
 0x853   :  { %3149 = vmatprep.subr.mxu1 %v6744_v24  ;;  %3220 = vmatprep.subr.mxu0 %v6746_v26 }
 0x854   :  { %3150 = vmatpush1.msra.mxu1 %v7988_v43  ;;  %3221 = vmatpush1.msra.mxu0 %v7989_v59 }
 0x855   :  { %3151 = vmatprep.subr.mxu1 %v7990_v29  ;;  %3222 = vmatprep.subr.mxu0 %v7991_v32 }
 0x856   :  { %3152 = vmatpush1.msra.mxu1 %v7992_v49  ;;  %3223 = vmatpush1.msra.mxu0 %v7993_v50 }
 0x857   :  { %3153 = vmatprep.subr.mxu1 %v7994_v56  ;;  %3224 = vmatprep.subr.mxu0 %v7995_v52 }
 0x858   :  { %3154 = vmatpush1.msra.mxu1 %v7996_v51  ;;  %3225 = vmatpush1.msra.mxu0 %v7997_v42 }
 0x859   :  { %3155 = vmatprep.subr.mxu1 %v7998_v44  ;;  %3226 = vmatprep.subr.mxu0 %v7999_v45  ;;  %v8007_v44 = vld [vmem:[#allocation43_spill] sm:$0xff]  ;;  %v2628_v45 = vpop.f32.mrf.mxu1 }
 0x85a   :  { %3156 = vmatpush1.msra.mxu1 %v8000_v40  ;;  %3227 = vmatpush1.msra.mxu0 %v8001_v54  ;;  %v2741_v40 = vpop.f32.mrf.mxu0 }
 0x85b   :  { %3157 = vmatprep.subr.mxu1 %v8002_v48  ;;  %3228 = vmatprep.subr.mxu0 %v8003_v36  ;;  %v2630_v42 = vpop.f32.mrf.mxu1 }
 0x85c   :  { %3158 = vmatpush1.msra.mxu1 %v8004_v34  ;;  %3191 = vmatprep.mubr.f32.mxu1 %v7948_v41  ;;  %v2743_v54 = vpop.f32.mrf.mxu0 }
 0x85d   :  { %3229 = vmatpush1.msra.mxu0 %v8005_v37  ;;  %3262 = vmatprep.mubr.f32.mxu0 %v7948_v41  ;;  %v6881_v51 = vpop.f32.mrf.mxu1 }
 0x85e   :  { %3367 = vmatprep.subr.mxu1 %v8006_v38  ;;  %3438 = vmatprep.subr.mxu0 %v8007_v44  ;;  %8008 = vst [vmem:[#allocation33_spill] sm:$0xff] %v6881_v51  ;;  %v6883_v48 = vpop.f32.mrf.mxu0 }
 0x85f   :  { %8009 = vst [vmem:[#allocation23_spill] sm:$0xff] %v6883_v48  ;;  %v6885_v36 = vpop.f32.mrf.mxu1 }
 0x860   :  { %8010 = vst [vmem:[#allocation34_spill] sm:$0xff] %v6885_v36  ;;  %v6887_v34 = vpop.f32.mrf.mxu0 }
 0x861   :  { %8011 = vst [vmem:[#allocation24_spill] sm:$0xff] %v6887_v34  ;;  %v6889_v52 = vpop.f32.mrf.mxu1 }
 0x862   :  { %8012 = vst [vmem:[#allocation35_spill] sm:$0xff] %v6889_v52  ;;  %v6891_v37 = vpop.f32.mrf.mxu0 }
 0x863   :  { %8013 = vst [vmem:[#allocation25_spill] sm:$0xff] %v6891_v37  ;;  %v6893_v41 = vpop.f32.mrf.mxu1 }
 0x864   :  { %8014 = vst [vmem:[#allocation36_spill] sm:$0xff] %v6893_v41  ;;  %v6895_v38 = vpop.f32.mrf.mxu0 }
 0x865   :  { %8015 = vst [vmem:[#allocation26_spill] sm:$0xff] %v6895_v38  ;;  %v6897_v44 = vpop.f32.mrf.mxu1 }
 0x866   :  { %8016 = vst [vmem:[#allocation37_spill] sm:$0xff] %v6897_v44  ;;  %v6899_v56 = vpop.f32.mrf.mxu0 }
 0x867   :  { %8017 = vst [vmem:[#allocation27_spill] sm:$0xff] %v6899_v56  ;;  %v6901_v50 = vpop.f32.mrf.mxu1 }
 0x868   :  { %8018 = vst [vmem:[#allocation38_spill] sm:$0xff] %v6901_v50  ;;  %v6903_v51 = vpop.f32.mrf.mxu0 }
 0x869   :  { %8019 = vst [vmem:[#allocation28_spill] sm:$0xff] %v6903_v51  ;;  %v6905_v48 = vpop.f32.mrf.mxu1 }
 0x86a   :  { %8020 = vst [vmem:[#allocation39_spill] sm:$0xff] %v6905_v48  ;;  %v6907_v36 = vpop.f32.mrf.mxu0 }
 0x86b   :  { %8021 = vst [vmem:[#allocation29_spill] sm:$0xff] %v6907_v36  ;;  %v6909_v34 = vpop.f32.mrf.mxu1  ;;  %v2540_v36 = vld [vmem:[%s7583_s9] sm:$0xf] }
 0x86c   :  { %8022 = vst [vmem:[#allocation52_spill] sm:$0xff] %v6909_v34  ;;  %v6911_v52 = vpop.f32.mrf.mxu0  ;;  %v8031_v34 = vld [vmem:[#allocation42_spill] sm:$0xff] }
 0x86d   :  { %8023 = vst [vmem:[#allocation54_spill] sm:$0xff] %v6911_v52  ;;  %v6913_v37 = vpop.f32.mrf.mxu1  ;;  %v8032_v52 = vsub.s32 0, %v8031_v34 }
 0x86e   :  { %8024 = vst [vmem:[#allocation66_spill] sm:$0xff] %v6913_v37  ;;  %v6915_v41 = vpop.f32.mrf.mxu0 }
 0x86f   :  { %8025 = vst [vmem:[#allocation65_spill] sm:$0xff] %v6915_v41  ;;  %v6917_v38 = vpop.f32.mrf.mxu1  ;;  %v6932_v51 = vrot.slane %v2540_v36, %v8032_v52 }
 0x870   :  { %8026 = vst [vmem:[#allocation56_spill] sm:$0xff] %v6917_v38  ;;  %v6919_v44 = vpop.f32.mrf.mxu0 }
 0x871   :  { %8027 = vst [vmem:[#allocation58_spill] sm:$0xff] %v6919_v44  ;;  %v6921_v56 = vpop.f32.mrf.mxu1  ;;  %8033 = vst [vmem:[#allocation19_spill] sm:$0xff] %v6932_v51  ;;  %v8036_v44 = vsub.s32 1, %v8031_v34  ;;  %v2629_v49 = vadd.f32 %v2628_v45, %v6932_v51 }
 0x872   :  { %8028 = vst [vmem:[#allocation68_spill] sm:$0xff] %v6921_v56  ;;  %v6923_v50 = vpop.f32.mrf.mxu0 }
 0x873   :  { %8029 = vst [vmem:[#allocation67_spill] sm:$0xff] %v6923_v50  ;;  %v6928_v48 = vpop.f32.mrf.mxu1  ;;  %v6940_v38 = vrot.slane %v2540_v36, %v8036_v44  ;;  %v8040_v44 = vsub.s32 3, %v8031_v34 }
 0x874   :  { %8030 = vst [vmem:[#allocation72_spill] sm:$0xff] %v6928_v48  ;;  %v6934_v37 = vpop.f32.mrf.mxu0 }
 0x875   :  { %8034 = vst [vmem:[#allocation40_spill] sm:$0xff] %v6934_v37  ;;  %v2631_v48 = vadd.f32 %v2630_v42, %v6940_v38  ;;  %v6952_v24 = vrot.slane %v2540_v36, %v8040_v44 }
 0x877   :  { %8041 = vst [vmem:[#allocation69_spill] sm:$0xff] %v6952_v24  ;;  %v2744_v45 = vadd.f32 %v2743_v54, %v6952_v24 }
 0x8f9   :  { %v6936_v41 = vpop.f32.mrf.mxu1  ;;  %v6942_v56 = vpop.f32.mrf.mxu0 }
 0x8fa   :  { %8035 = vst [vmem:[#allocation30_spill] sm:$0xff] %v6936_v41  ;;  %8037 = vst [vmem:[#allocation60_spill] sm:$0xff] %v6942_v56 }
 0x8fb   :  { %v6944_v50 = vpop.f32.mrf.mxu1  ;;  %v6948_v29 = vpop.f32.mrf.mxu0 }
 0x8fc   :  { %8038 = vst [vmem:[#allocation62_spill] sm:$0xff] %v6944_v50  ;;  %8039 = vst [vmem:[#allocation70_spill] sm:$0xff] %v6948_v29  ;;  %v8042_v50 = vsub.s32 2, %v8031_v34 }
 0x8fd   :  { %v2954_v32 = vpop.f32.mrf.mxu1  ;;  %v3025_v41 = vpop.f32.mrf.mxu0 }
 0x8fe   :  { %v3030_v52 = vadd.f32 %v2954_v32, %v2629_v49  ;;  %v6957_v42 = vrot.slane %v2540_v36, %v8042_v50  ;;  %v8043_v36 = vld [vmem:[#allocation71_spill] sm:$0xff] }
 0x8ff   :  { %v2956_v59 = vpop.f32.mrf.mxu1  ;;  %v3027_v56 = vpop.f32.mrf.mxu0 }
 0x900   :  { %v4951_v37 = vmul.f32 -1.442695, %v3030_v52  ;;  %v3031_v43 = vadd.f32 %v2956_v59, %v2631_v48  ;;  %v3033_v29 = vadd.f32 %v3027_v56, %v2744_v45  ;;  %v2742_v32 = vadd.f32 %v2741_v40, %v6957_v42 }
 0x902   :  { %5212 = vpow2.f32 %v4951_v37  ;;  %v4952_v26 = vmul.f32 -1.442695, %v3031_v43  ;;  %v4953_v49 = vmul.f32 -1.442695, %v3033_v29  ;;  %v3032_v48 = vadd.f32 %v3025_v41, %v2742_v32 }
 0x904   :  { %5214 = vpow2.f32 %v4952_v26 }
 0x905   :  { %5216 = vpow2.f32 %v4953_v49 }
 0x90f   :  { %v5213_v59 = vpop.eup %5212 }
 0x910   :  { %v3037_v37 = vadd.f32 1.0, %v5213_v59  ;;  %v8068_v59 = vld [vmem:[#allocation69_spill] sm:$0xff] }
 0x911   :  { %v5215_v43 = vpop.eup %5214 }
 0x912   :  { %5218 = vrcp.f32 %v3037_v37  ;;  %v3043_v52 = vadd.f32 1.0, %v5215_v43  ;;  %v5217_v26 = vpop.eup %5216 }
 0x913   :  { %5220 = vtanh.f32 %v3032_v48  ;;  %v3050_v34 = vadd.f32 1.0, %v5217_v26  ;;  %v8069_v48 = vld [vmem:[#allocation24_spill] sm:$0xff] }
 0x914   :  { %5222 = vrcp.f32 %v3043_v52  ;;  %v2750_v37 = vadd.f32 %v8069_v48, %v8068_v59  ;;  %v8070_v52 = vld [vmem:[#allocation23_spill] sm:$0xff]  ;;  %v7062_v48 = vld [vmem:[#allocation11 + $0x1c8] sm:$0xff] }
 0x915   :  { %5224 = vrcp.f32 %v3050_v34  ;;  %v2748_v26 = vadd.f32 %v8070_v52, %v6957_v42  ;;  %v7070_v52 = vld [vmem:[#allocation11 + $0x1d0] sm:$0xff] }
 0x91f   :  { %v5219_v44 = vpop.eup %5218 }
 0x920   :  { %v5221_v54 = vpop.eup %5220 }
 0x921   :  { %v5223_v24 = vpop.eup %5222  ;;  %v3054_v50 = vmul.f32 %v5221_v54, %v5219_v44 }
 0x922   :  { %v3053_v56 = vmul.f32 %v5223_v24, %v8043_v36  ;;  %v5225_v41 = vpop.eup %5224 }
 0x924   :  { %v6961_v45 = vadd.f32 %v3054_v50, %v3053_v56 }
 0x926   :  { %5226 = vtanh.f32 %v6961_v45 }
 0x933   :  { %v5227_v29 = vpop.eup %5226 }
 0x934   :  { %v6964_v40 = vmul.f32 %v5227_v29, %v5225_v41 }
 0x936   :  { %8044 = vst [vmem:[#allocation41_spill] sm:$0xff] %v6964_v40  ;;  %3192 = vmatmul.mubr.f32.vlgmr.msra.gmra.mxu1 %v6964_v40  ;;  %3263 = vmatmul.mubr.f32.vlgmr.msra.gmra.mxu0 %v6964_v40  ;;  %v7124_v40 = vld [vmem:[#allocation11 + $0x138] sm:$0xff] }
 0x937   :  { %3368 = vmatpush1.msra.mxu1 %v6618_v27  ;;  %3439 = vmatpush1.msra.mxu0 %v6620_v61  ;;  %v8045_v27 = vld [vmem:[#allocation44_spill] sm:$0xff]  ;;  %v8046_v61 = vld [vmem:[#allocation53_spill] sm:$0xff] }
 0x938   :  { %3369 = vmatprep.subr.mxu1 %v6624_v46  ;;  %3440 = vmatprep.subr.mxu0 %v6626_v63  ;;  %v8047_v46 = vld [vmem:[#allocation51_spill] sm:$0xff]  ;;  %v8048_v63 = vld [vmem:[#allocation45_spill] sm:$0xff] }
 0x939   :  { %3370 = vmatpush1.msra.mxu1 %v6630_v2  ;;  %3441 = vmatpush1.msra.mxu0 %v6632_v5  ;;  %v8049_v2 = vld [vmem:[#allocation46_spill] sm:$0xff]  ;;  %v8050_v5 = vld [vmem:[#allocation57_spill] sm:$0xff] }
 0x93a   :  { %3371 = vmatprep.subr.mxu1 %v6636_v7  ;;  %3442 = vmatprep.subr.mxu0 %v6638_v11  ;;  %v8051_v7 = vld [vmem:[#allocation55_spill] sm:$0xff] }
 0x93b   :  { %3372 = vmatpush1.msra.mxu1 %v6642_v15  ;;  %3443 = vmatpush1.msra.mxu0 %v6644_v18  ;;  %v8052_v11 = vld [vmem:[#allocation47_spill] sm:$0xff]  ;;  %v8053_v15 = vld [vmem:[#allocation48_spill] sm:$0xff]  ;;  %v8054_v18 = vld [vmem:[#allocation61_spill] sm:$0xff] }
 0x93c   :  { %3373 = vmatprep.subr.mxu1 %v6648_v21  ;;  %3444 = vmatprep.subr.mxu0 %v6650_v22  ;;  %v8055_v21 = vld [vmem:[#allocation59_spill] sm:$0xff]  ;;  %v8056_v22 = vld [vmem:[#allocation20_spill] sm:$0xff] }
 0x93d   :  { %3374 = vmatpush1.msra.mxu1 %v6654_v25  ;;  %3445 = vmatpush1.msra.mxu0 %v6656_v3  ;;  %v8057_v25 = vld [vmem:[#allocation31_spill] sm:$0xff]  ;;  %v8058_v3 = vld [vmem:[#allocation49_spill] sm:$0xff] }
 0x93e   :  { %3375 = vmatprep.subr.mxu1 %v6660_v55  ;;  %3446 = vmatprep.subr.mxu0 %v6662_v35  ;;  %v8059_v55 = vld [vmem:[#allocation50_spill] sm:$0xff]  ;;  %v8060_v35 = vld [vmem:[#allocation64_spill] sm:$0xff] }
 0x93f   :  { %3376 = vmatpush1.msra.mxu1 %v6666_v13  ;;  %3447 = vmatpush1.msra.mxu0 %v6668_v12  ;;  %v8061_v13 = vld [vmem:[#allocation63_spill] sm:$0xff]  ;;  %v8062_v12 = vld [vmem:[#allocation21_spill] sm:$0xff] }
 0x940   :  { %3377 = vmatprep.subr.mxu1 %v6672_v4  ;;  %3448 = vmatprep.subr.mxu0 %v6674_v0  ;;  %v8063_v4 = vld [vmem:[#allocation32_spill] sm:$0xff]  ;;  %v8064_v0 = vmov 0.0  }
 0x941   :  { %3378 = vmatpush1.msra.mxu1 %v6678_v31  ;;  %3449 = vmatpush1.msra.mxu0 %v6680_v57  ;;  %v8065_v31 = vld [vmem:[#allocation22_spill] sm:$0xff]  ;;  %v8066_v57 = vld [vmem:[#allocation33_spill] sm:$0xff] }
 0x942   :  { %3379 = vmatprep.subr.mxu1 %v6684_v39  ;;  %3450 = vmatprep.subr.mxu0 %v6686_v9  ;;  %v2635_v39 = vadd.f32 %v8066_v57, %v6932_v51 }
 0x943   :  { %3380 = vmatpush1.msra.mxu1 %v6690_v53  ;;  %3451 = vmatpush1.msra.mxu0 %v6692_v62  ;;  %v8067_v53 = vld [vmem:[#allocation34_spill] sm:$0xff] }
 0x944   :  { %3381 = vmatprep.subr.mxu1 %v6696_v47  ;;  %3452 = vmatprep.subr.mxu0 %v6698_v58  ;;  %v2637_v62 = vadd.f32 %v8067_v53, %v6940_v38 }
 0x945   :  { %3382 = vmatpush1.msra.mxu1 %v6702_v1  ;;  %3453 = vmatpush1.msra.mxu0 %v6704_v30 }
 0x946   :  { %3383 = vmatprep.subr.mxu1 %v6708_v6  ;;  %3454 = vmatprep.subr.mxu0 %v6710_v14 }
 0x947   :  { %3384 = vmatpush1.msra.mxu1 %v6714_v60  ;;  %3455 = vmatpush1.msra.mxu0 %v6716_v28 }
 0x948   :  { %3385 = vmatprep.subr.mxu1 %v6720_v33  ;;  %3456 = vmatprep.subr.mxu0 %v6722_v8 }
 0x949   :  { %3386 = vmatpush1.msra.mxu1 %v6726_v10  ;;  %3457 = vmatpush1.msra.mxu0 %v6728_v16 }
 0x94a   :  { %3387 = vmatprep.subr.mxu1 %v6732_v17  ;;  %3458 = vmatprep.subr.mxu0 %v6734_v19 }
 0x94b   :  { %3388 = vmatpush1.msra.mxu1 %v6738_v20  ;;  %3459 = vmatpush1.msra.mxu0 %v6740_v23 }
 0x94c   :  { %3389 = vmatprep.subr.mxu1 %v8045_v27  ;;  %3460 = vmatprep.subr.mxu0 %v8046_v61 }
 0x94d   :  { %3390 = vmatpush1.msra.mxu1 %v8047_v46  ;;  %3461 = vmatpush1.msra.mxu0 %v8048_v63 }
 0x94e   :  { %3391 = vmatprep.subr.mxu1 %v8049_v2  ;;  %3462 = vmatprep.subr.mxu0 %v8050_v5 }
 0x94f   :  { %3392 = vmatpush1.msra.mxu1 %v8051_v7  ;;  %3463 = vmatpush1.msra.mxu0 %v8052_v11 }
 0x950   :  { %3393 = vmatprep.subr.mxu1 %v8053_v15  ;;  %3464 = vmatprep.subr.mxu0 %v8054_v18 }
 0x951   :  { %3394 = vmatpush1.msra.mxu1 %v8055_v21  ;;  %3465 = vmatpush1.msra.mxu0 %v8056_v22 }
 0x952   :  { %3395 = vmatprep.subr.mxu1 %v8057_v25  ;;  %3466 = vmatprep.subr.mxu0 %v8058_v3 }
 0x953   :  { %3396 = vmatpush1.msra.mxu1 %v8059_v55  ;;  %3467 = vmatpush1.msra.mxu0 %v8060_v35 }
 0x954   :  { %3397 = vmatprep.subr.mxu1 %v8061_v13  ;;  %3468 = vmatprep.subr.mxu0 %v8062_v12 }
 0x955   :  { %3398 = vmatpush1.msra.mxu1 %v8063_v4  ;;  %3431 = vmatprep.mubr.f32.mxu1 %v8064_v0 }
 0x956   :  { %3469 = vmatpush1.msra.mxu0 %v8065_v31  ;;  %3502 = vmatprep.mubr.f32.mxu0 %v8064_v0 }
 0x9f6   :  { %v3193_v9 = vpop.f32.mrf.mxu1  ;;  %v3264_v24 = vpop.f32.mrf.mxu0 }
 0x9f7   :  { %v3269_v47 = vadd.f32 %v3193_v9, %v2635_v39  ;;  %v3271_v44 = vadd.f32 %v3264_v24, %v2748_v26  ;;  %v7050_v24 = vld [vmem:[#allocation11 + $0x1e8] sm:$0xff] }
 0x9f8   :  { %v3195_v58 = vpop.f32.mrf.mxu1  ;;  %v3266_v49 = vpop.f32.mrf.mxu0  ;;  %8072 = vst [vmem:[#allocation42_spill] sm:$0xff] %v7050_v24  ;;  %3607 = vmatprep.subr.mxu1 %v7050_v24  ;;  %v7074_v26 = vld [vmem:[#allocation11 + $0x1a8] sm:$0xff] }
 0x9f9   :  { %v4954_v1 = vmul.f32 -1.442695, %v3269_v47  ;;  %v3270_v30 = vadd.f32 %v3195_v58, %v2637_v62  ;;  %v3272_v43 = vadd.f32 %v3266_v49, %v2750_v37  ;;  %v7058_v49 = vld [vmem:[#allocation11 + $0x1f0] sm:$0xff]  ;;  %v7064_v37 = vld [vmem:[#allocation11 + $0x1d8] sm:$0xff] }
 0x9fb   :  { %5228 = vpow2.f32 %v4954_v1  ;;  %v4955_v32 = vmul.f32 -1.442695, %v3270_v30  ;;  %v4956_v54 = vmul.f32 -1.442695, %v3272_v43  ;;  %v7068_v43 = vld [vmem:[#allocation11 + $0x1c0] sm:$0xff] }
 0x9fd   :  { %5230 = vpow2.f32 %v4955_v32  ;;  %v7056_v32 = vld [vmem:[#allocation11 + $0x1e0] sm:$0xff] }
 0x9fe   :  { %5232 = vtanh.f32 %v3271_v44  ;;  %v7076_v44 = vld [vmem:[#allocation11 + $0x1b8] sm:$0xff] }
 0x9ff   :  { %5234 = vpow2.f32 %v4956_v54  ;;  %v7080_v54 = vld [vmem:[#allocation11 + $0x1a0] sm:$0xff] }
 0xa08   :  { %v5229_v34 = vpop.eup %5228 }
 0xa09   :  { %v3276_v50 = vadd.f32 1.0, %v5229_v34  ;;  %v7082_v34 = vld [vmem:[#allocation11 + $0x1b0] sm:$0xff] }
 0xa0a   :  { %v5231_v36 = vpop.eup %5230 }
 0xa0b   :  { %5236 = vrcp.f32 %v3276_v50  ;;  %v3282_v56 = vadd.f32 1.0, %v5231_v36  ;;  %v5233_v41 = vpop.eup %5232  ;;  %v7086_v50 = vld [vmem:[#allocation11 + $0x188] sm:$0xff]  ;;  %v7088_v36 = vld [vmem:[#allocation11 + $0x198] sm:$0xff] }
 0xa0c   :  { %v5235_v29 = vpop.eup %5234 }
 0xa0d   :  { %5238 = vrcp.f32 %v3282_v56  ;;  %v3289_v53 = vadd.f32 1.0, %v5235_v29  ;;  %v7092_v56 = vld [vmem:[#allocation11 + $0x180] sm:$0xff]  ;;  %v7098_v29 = vld [vmem:[#allocation11 + $0x168] sm:$0xff] }
 0xa0f   :  { %5240 = vrcp.f32 %v3289_v53  ;;  %v7110_v53 = vld [vmem:[#allocation11 + $0x148] sm:$0xff] }
 0xa10   :  { %8075 = vst [vmem:[#allocation53_spill] sm:$0xff] %v7110_v53 }
 0xa18   :  { %v5237_v57 = vpop.eup %5236 }
 0xa19   :  { %v3293_v39 = vmul.f32 %v5237_v57, %v5233_v41  ;;  %v7094_v41 = vld [vmem:[#allocation11 + $0x190] sm:$0xff]  ;;  %v7100_v57 = vld [vmem:[#allocation11 + $0x178] sm:$0xff] }
 0xa1a   :  { %v5239_v9 = vpop.eup %5238 }
 0xa1b   :  { %v3292_v62 = vmul.f32 %v5239_v9, %v6961_v45  ;;  %v7052_v45 = vld [vmem:[#allocation11 + $0x1f8] sm:$0xff]  ;;  %v7106_v9 = vld [vmem:[#allocation11 + $0x170] sm:$0xff] }
 0xa1c   :  { %v5241_v58 = vpop.eup %5240  ;;  %8073 = vst [vmem:[#allocation71_spill] sm:$0xff] %v7052_v45  ;;  %3678 = vmatprep.subr.mxu0 %v7052_v45  ;;  %8074 = vst [vmem:[#allocation44_spill] sm:$0xff] %v7106_v9 }
 0xa1d   :  { %v7041_v47 = vadd.f32 %v3293_v39, %v3292_v62  ;;  %v7104_v39 = vld [vmem:[#allocation11 + $0x160] sm:$0xff]  ;;  %v7112_v62 = vld [vmem:[#allocation11 + $0x158] sm:$0xff] }
 0xa1e   :  { %8076 = vst [vmem:[#allocation51_spill] sm:$0xff] %v7112_v62 }
 0xa1f   :  { %5242 = vtanh.f32 %v7041_v47 }
 0xa2c   :  { %v5243_v1 = vpop.eup %5242 }
 0xa2d   :  { %v7044_v30 = vmul.f32 %v5243_v1, %v5241_v58  ;;  %v7116_v58 = vld [vmem:[#allocation11 + $0x140] sm:$0xff]  ;;  %v7118_v1 = vld [vmem:[#allocation11 + $0x150] sm:$0xff] }
 0xa2e   :  { %8077 = vst [vmem:[#allocation45_spill] sm:$0xff] %v7116_v58  ;;  %8078 = vst [vmem:[#allocation46_spill] sm:$0xff] %v7118_v1 }
 0xa2f   :  { %8071 = vst [vmem:[#allocation43_spill] sm:$0xff] %v7044_v30  ;;  %3432 = vmatmul.mubr.f32.vlgmr.msra.gmra.mxu1 %v7044_v30  ;;  %3503 = vmatmul.mubr.f32.vlgmr.msra.gmra.mxu0 %v7044_v30  ;;  %v7122_v30 = vld [vmem:[#allocation11 + $0x128] sm:$0xff] }
 0xa30   :  { %3671 = vmatprep.mubr.f32.mxu1 %v8064_v0  ;;  %3742 = vmatprep.mubr.f32.mxu0 %v8064_v0  ;;  %v7128_v0 = vld [vmem:[#allocation11 + $0x120] sm:$0xff] }
 0xa31   :  { %3608 = vmatpush1.msra.mxu1 %v7056_v32  ;;  %3679 = vmatpush1.msra.mxu0 %v7058_v49 }
 0xa32   :  { %3609 = vmatprep.subr.mxu1 %v7062_v48  ;;  %3680 = vmatprep.subr.mxu0 %v7064_v37 }
 0xa33   :  { %3610 = vmatpush1.msra.mxu1 %v7068_v43  ;;  %3681 = vmatpush1.msra.mxu0 %v7070_v52 }
 0xa34   :  { %3611 = vmatprep.subr.mxu1 %v7074_v26  ;;  %3682 = vmatprep.subr.mxu0 %v7076_v44 }
 0xa35   :  { %3612 = vmatpush1.msra.mxu1 %v7080_v54  ;;  %3683 = vmatpush1.msra.mxu0 %v7082_v34 }
 0xa36   :  { %3613 = vmatprep.subr.mxu1 %v7086_v50  ;;  %3684 = vmatprep.subr.mxu0 %v7088_v36 }
 0xa37   :  { %3614 = vmatpush1.msra.mxu1 %v7092_v56  ;;  %3685 = vmatpush1.msra.mxu0 %v7094_v41 }
 0xa38   :  { %3615 = vmatprep.subr.mxu1 %v7098_v29  ;;  %3686 = vmatprep.subr.mxu0 %v7100_v57 }
 0xa39   :  { %3616 = vmatpush1.msra.mxu1 %v7104_v39  ;;  %3687 = vmatpush1.msra.mxu0 %v7106_v9  ;;  %v7140_v9 = vld [vmem:[#allocation11 + $0x110] sm:$0xff] }
 0xa3a   :  { %3617 = vmatprep.subr.mxu1 %v7110_v53  ;;  %3688 = vmatprep.subr.mxu0 %v7112_v62  ;;  %v7130_v53 = vld [vmem:[#allocation11 + $0x130] sm:$0xff]  ;;  %v7132_v62 = vld [vmem:[#allocation11 + $0x108] sm:$0xff] }
 0xa3b   :  { %3618 = vmatpush1.msra.mxu1 %v7116_v58  ;;  %3689 = vmatpush1.msra.mxu0 %v7118_v1  ;;  %v7136_v58 = vld [vmem:[#allocation11 + $0x118] sm:$0xff]  ;;  %v7138_v1 = vld [vmem:[#allocation11 + $0x100] sm:$0xff] }
 0xa3c   :  { %3619 = vmatprep.subr.mxu1 %v7122_v30  ;;  %3690 = vmatprep.subr.mxu0 %v7124_v40 }
 0xa3d   :  { %3620 = vmatpush1.msra.mxu1 %v7128_v0  ;;  %3691 = vmatpush1.msra.mxu0 %v7130_v53 }
 0xa3e   :  { %3621 = vmatprep.subr.mxu1 %v7132_v62  ;;  %3692 = vmatprep.subr.mxu0 %v7136_v58 }
 0xa3f   :  { %3622 = vmatpush1.msra.mxu1 %v7138_v1  ;;  %3693 = vmatpush1.msra.mxu0 %v7140_v9 }
 0xa40   :  { %3623 = vmatprep.subr.mxu1 %v6708_v6  ;;  %3694 = vmatprep.subr.mxu0 %v6710_v14  ;;  %v8079_v6 = vld [vmem:[#allocation35_spill] sm:$0xff] }
 0xa41   :  { %3624 = vmatpush1.msra.mxu1 %v6714_v60  ;;  %3695 = vmatpush1.msra.mxu0 %v6716_v28  ;;  %v2641_v14 = vadd.f32 %v8079_v6, %v6932_v51  ;;  %v8080_v28 = vld [vmem:[#allocation36_spill] sm:$0xff] }
 0xa42   :  { %3625 = vmatprep.subr.mxu1 %v6720_v33  ;;  %3696 = vmatprep.subr.mxu0 %v6722_v8  ;;  %v2643_v33 = vadd.f32 %v8080_v28, %v6940_v38  ;;  %v8086_v28 = vld [vmem:[#allocation51_spill] sm:$0xff] }
 0xa43   :  { %3626 = vmatpush1.msra.mxu1 %v6726_v10  ;;  %3697 = vmatpush1.msra.mxu0 %v6728_v16 }
 0xa44   :  { %3627 = vmatprep.subr.mxu1 %v6732_v17  ;;  %3698 = vmatprep.subr.mxu0 %v6734_v19 }
 0xa45   :  { %3628 = vmatpush1.msra.mxu1 %v6738_v20  ;;  %3699 = vmatpush1.msra.mxu0 %v6740_v23 }
 0xa46   :  { %3629 = vmatprep.subr.mxu1 %v8045_v27  ;;  %3700 = vmatprep.subr.mxu0 %v8046_v61  ;;  %v8081_v27 = vld [vmem:[#allocation26_spill] sm:$0xff] }
 0xa47   :  { %3630 = vmatpush1.msra.mxu1 %v8047_v46  ;;  %3701 = vmatpush1.msra.mxu0 %v8048_v63  ;;  %v2756_v61 = vadd.f32 %v8081_v27, %v8068_v59  ;;  %v8082_v63 = vld [vmem:[#allocation25_spill] sm:$0xff]  ;;  %v7240_v27 = vld [vmem:[#allocation11 + $0xd8] sm:$0xff] }
 0xa48   :  { %3631 = vmatprep.subr.mxu1 %v8049_v2  ;;  %3702 = vmatprep.subr.mxu0 %v8050_v5  ;;  %v2754_v2 = vadd.f32 %v8082_v63, %v6957_v42  ;;  %v7248_v63 = vld [vmem:[#allocation11 + $0xa8] sm:$0xff] }
 0xa49   :  { %3632 = vmatpush1.msra.mxu1 %v8051_v7  ;;  %3703 = vmatpush1.msra.mxu0 %v8052_v11 }
 0xa4a   :  { %3633 = vmatprep.subr.mxu1 %v8053_v15  ;;  %3704 = vmatprep.subr.mxu0 %v8054_v18 }
 0xa4b   :  { %3634 = vmatpush1.msra.mxu1 %v8055_v21  ;;  %3705 = vmatpush1.msra.mxu0 %v8056_v22 }
 0xa4c   :  { %3635 = vmatprep.subr.mxu1 %v8057_v25  ;;  %3706 = vmatprep.subr.mxu0 %v8058_v3 }
 0xa4d   :  { %3636 = vmatpush1.msra.mxu1 %v8059_v55  ;;  %3707 = vmatpush1.msra.mxu0 %v8060_v35 }
 0xa4e   :  { %3637 = vmatprep.subr.mxu1 %v8061_v13  ;;  %3708 = vmatprep.subr.mxu0 %v8062_v12 }
 0xa4f   :  { %3638 = vmatpush1.msra.mxu1 %v8063_v4  ;;  %3709 = vmatpush1.msra.mxu0 %v8065_v31 }
 0xa50   :  { %3847 = vmatprep.subr.mxu1 %v7050_v24  ;;  %3918 = vmatprep.subr.mxu0 %v7052_v45 }
 0xaef   :  { %v3433_v60 = vpop.f32.mrf.mxu1  ;;  %v3504_v19 = vpop.f32.mrf.mxu0 }
 0xaf0   :  { %v3509_v8 = vadd.f32 %v3433_v60, %v2641_v14  ;;  %v3511_v5 = vadd.f32 %v3504_v19, %v2754_v2  ;;  %v8085_v60 = vld [vmem:[#allocation53_spill] sm:$0xff]  ;;  %v7232_v19 = vld [vmem:[#allocation11 + $0xe0] sm:$0xff]  ;;  %v7252_v2 = vld [vmem:[#allocation11 + $0xb8] sm:$0xff] }
 0xaf1   :  { %v3435_v10 = vpop.f32.mrf.mxu1  ;;  %v3506_v23 = vpop.f32.mrf.mxu0 }
 0xaf2   :  { %v4957_v16 = vmul.f32 -1.442695, %v3509_v8  ;;  %v3510_v17 = vadd.f32 %v3435_v10, %v2643_v33  ;;  %v3512_v46 = vadd.f32 %v3506_v23, %v2756_v61  ;;  %v8087_v33 = vld [vmem:[#allocation45_spill] sm:$0xff]  ;;  %v8088_v8 = vld [vmem:[#allocation46_spill] sm:$0xff]  ;;  %v8089_v10 = vmov 0.0   ;;  %v7238_v23 = vld [vmem:[#allocation11 + $0xc8] sm:$0xff] }
 0xaf3   :  { %v7244_v61 = vld [vmem:[#allocation11 + $0xc0] sm:$0xff] }
 0xaf4   :  { %5244 = vpow2.f32 %v4957_v16  ;;  %v4958_v20 = vmul.f32 -1.442695, %v3510_v17  ;;  %v4959_v7 = vmul.f32 -1.442695, %v3512_v46  ;;  %v7228_v16 = vld [vmem:[#allocation11 + $0xe8] sm:$0xff]  ;;  %v7230_v17 = vld [vmem:[#allocation11 + $0xf8] sm:$0xff] }
 0xaf5   :  { %v7246_v46 = vld [vmem:[#allocation11 + $0xd0] sm:$0xff] }
 0xaf6   :  { %5246 = vpow2.f32 %v4958_v20  ;;  %v7236_v20 = vld [vmem:[#allocation11 + $0xf0] sm:$0xff] }
 0xaf7   :  { %5248 = vtanh.f32 %v3511_v5  ;;  %v7254_v5 = vld [vmem:[#allocation11 + $0xa0] sm:$0xff] }
 0xaf8   :  { %5250 = vpow2.f32 %v4959_v7  ;;  %v7256_v7 = vld [vmem:[#allocation11 + $0xb0] sm:$0xff] }
 0xaf9   :  { %8090 = vst [vmem:[#allocation55_spill] sm:$0xff] %v7256_v7 }
 0xb01   :  { %v5245_v11 = vpop.eup %5244 }
 0xb02   :  { %v3516_v15 = vadd.f32 1.0, %v5245_v11  ;;  %v7260_v11 = vld [vmem:[#allocation11 + $0x88] sm:$0xff] }
 0xb03   :  { %v5247_v18 = vpop.eup %5246  ;;  %8091 = vst [vmem:[#allocation47_spill] sm:$0xff] %v7260_v11 }
 0xb04   :  { %5252 = vrcp.f32 %v3516_v15  ;;  %v3522_v21 = vadd.f32 1.0, %v5247_v18  ;;  %v5249_v22 = vpop.eup %5248  ;;  %v7262_v15 = vld [vmem:[#allocation11 + $0x98] sm:$0xff]  ;;  %v7266_v18 = vld [vmem:[#allocation11 + $0x80] sm:$0xff] }
 0xb05   :  { %v5251_v25 = vpop.eup %5250  ;;  %8092 = vst [vmem:[#allocation48_spill] sm:$0xff] %v7262_v15  ;;  %8093 = vst [vmem:[#allocation61_spill] sm:$0xff] %v7266_v18 }
 0xb06   :  { %5254 = vrcp.f32 %v3522_v21  ;;  %v3529_v13 = vadd.f32 1.0, %v5251_v25  ;;  %v7268_v21 = vld [vmem:[#allocation11 + $0x90] sm:$0xff]  ;;  %v7274_v25 = vld [vmem:[#allocation11 + $0x78] sm:$0xff] }
 0xb07   :  { %8094 = vst [vmem:[#allocation59_spill] sm:$0xff] %v7268_v21  ;;  %8096 = vst [vmem:[#allocation31_spill] sm:$0xff] %v7274_v25 }
 0xb08   :  { %5256 = vrcp.f32 %v3529_v13  ;;  %v7286_v13 = vld [vmem:[#allocation11 + $0x58] sm:$0xff] }
 0xb09   :  { %8100 = vst [vmem:[#allocation63_spill] sm:$0xff] %v7286_v13 }
 0xb11   :  { %v5253_v3 = vpop.eup %5252 }
 0xb12   :  { %v3533_v55 = vmul.f32 %v5253_v3, %v5249_v22  ;;  %v7272_v22 = vld [vmem:[#allocation11 + $0x68] sm:$0xff]  ;;  %v7278_v3 = vld [vmem:[#allocation11 + $0x60] sm:$0xff] }
 0xb13   :  { %v5255_v35 = vpop.eup %5254  ;;  %8095 = vst [vmem:[#allocation20_spill] sm:$0xff] %v7272_v22  ;;  %8097 = vst [vmem:[#allocation49_spill] sm:$0xff] %v7278_v3 }
 0xb14   :  { %v3532_v12 = vmul.f32 %v5255_v35, %v7041_v47  ;;  %v8084_v47 = vld [vmem:[#allocation44_spill] sm:$0xff] }
 0xb15   :  { %v5257_v31 = vpop.eup %5256  ;;  %v7284_v35 = vld [vmem:[#allocation11 + $0x48] sm:$0xff] }
 0xb16   :  { %v7189_v4 = vadd.f32 %v3533_v55, %v3532_v12  ;;  %v7280_v55 = vld [vmem:[#allocation11 + $0x70] sm:$0xff]  ;;  %8099 = vst [vmem:[#allocation64_spill] sm:$0xff] %v7284_v35  ;;  %v7290_v12 = vld [vmem:[#allocation11 + $0x40] sm:$0xff] }
 0xb17   :  { %8098 = vst [vmem:[#allocation50_spill] sm:$0xff] %v7280_v55  ;;  %8101 = vst [vmem:[#allocation21_spill] sm:$0xff] %v7290_v12 }
 0xb18   :  { %5258 = vtanh.f32 %v7189_v4 }
 0xb25   :  { %v5259_v6 = vpop.eup %5258 }
 0xb26   :  { %v7192_v14 = vmul.f32 %v5259_v6, %v5257_v31  ;;  %v7292_v31 = vld [vmem:[#allocation11 + $0x50] sm:$0xff]  ;;  %v7296_v6 = vld [vmem:[#allocation11 + $0x28] sm:$0xff] }
 0xb27   :  { %8102 = vst [vmem:[#allocation32_spill] sm:$0xff] %v7292_v31  ;;  %8103 = vst [vmem:[#allocation22_spill] sm:$0xff] %v7296_v6 }
 0xb28   :  { %8083 = vst [vmem:[#allocation57_spill] sm:$0xff] %v7192_v14  ;;  %3672 = vmatmul.mubr.f32.vlgmr.msra.gmra.mxu1 %v7192_v14  ;;  %3743 = vmatmul.mubr.f32.vlgmr.msra.gmra.mxu0 %v7192_v14  ;;  %v7298_v14 = vld [vmem:[#allocation11 + $0x38] sm:$0xff] }
 0xb29   :  { %3848 = vmatpush1.msra.mxu1 %v7056_v32  ;;  %3919 = vmatpush1.msra.mxu0 %v7058_v49  ;;  %8104 = vst [vmem:[#allocation33_spill] sm:$0xff] %v7298_v14 }
 0xb2a   :  { %3849 = vmatprep.subr.mxu1 %v7062_v48  ;;  %3920 = vmatprep.subr.mxu0 %v7064_v37 }
 0xb2b   :  { %3850 = vmatpush1.msra.mxu1 %v7068_v43  ;;  %3921 = vmatpush1.msra.mxu0 %v7070_v52 }
 0xb2c   :  { %3851 = vmatprep.subr.mxu1 %v7074_v26  ;;  %3922 = vmatprep.subr.mxu0 %v7076_v44 }
 0xb2d   :  { %3852 = vmatpush1.msra.mxu1 %v7080_v54  ;;  %3923 = vmatpush1.msra.mxu0 %v7082_v34 }
 0xb2e   :  { %3853 = vmatprep.subr.mxu1 %v7086_v50  ;;  %3924 = vmatprep.subr.mxu0 %v7088_v36 }
 0xb2f   :  { %3854 = vmatpush1.msra.mxu1 %v7092_v56  ;;  %3925 = vmatpush1.msra.mxu0 %v7094_v41 }
 0xb30   :  { %3855 = vmatprep.subr.mxu1 %v7098_v29  ;;  %3926 = vmatprep.subr.mxu0 %v7100_v57 }
 0xb31   :  { %3856 = vmatpush1.msra.mxu1 %v7104_v39  ;;  %3927 = vmatpush1.msra.mxu0 %v8084_v47 }
 0xb32   :  { %3857 = vmatprep.subr.mxu1 %v8085_v60  ;;  %3928 = vmatprep.subr.mxu0 %v8086_v28 }
 0xb33   :  { %3858 = vmatpush1.msra.mxu1 %v8087_v33  ;;  %3929 = vmatpush1.msra.mxu0 %v8088_v8 }
 0xb34   :  { %3859 = vmatprep.subr.mxu1 %v7122_v30  ;;  %3930 = vmatprep.subr.mxu0 %v7124_v40 }
 0xb35   :  { %3860 = vmatpush1.msra.mxu1 %v7128_v0  ;;  %3931 = vmatpush1.msra.mxu0 %v7130_v53 }
 0xb36   :  { %3861 = vmatprep.subr.mxu1 %v7132_v62  ;;  %3932 = vmatprep.subr.mxu0 %v7136_v58 }
 0xb37   :  { %3862 = vmatpush1.msra.mxu1 %v7138_v1  ;;  %3933 = vmatpush1.msra.mxu0 %v7140_v9 }
 0xb38   :  { %3911 = vmatprep.mubr.f32.mxu1 %v8089_v10  ;;  %3982 = vmatprep.mubr.f32.mxu0 %v8089_v10  ;;  %v7302_v10 = vld [vmem:[#allocation11 + $0x20] sm:$0xff] }
 0xb39   :  { %3863 = vmatprep.subr.mxu1 %v7228_v16  ;;  %3934 = vmatprep.subr.mxu0 %v7230_v17  ;;  %8105 = vst [vmem:[#allocation34_spill] sm:$0xff] %v7302_v10 }
 0xb3a   :  { %3864 = vmatpush1.msra.mxu1 %v7232_v19  ;;  %3935 = vmatpush1.msra.mxu0 %v7236_v20 }
 0xb3b   :  { %3865 = vmatprep.subr.mxu1 %v7238_v23  ;;  %3936 = vmatprep.subr.mxu0 %v7240_v27 }
 0xb3c   :  { %3866 = vmatpush1.msra.mxu1 %v7244_v61  ;;  %3937 = vmatpush1.msra.mxu0 %v7246_v46 }
 0xb3d   :  { %3867 = vmatprep.subr.mxu1 %v7248_v63  ;;  %3938 = vmatprep.subr.mxu0 %v7252_v2 }
 0xb3e   :  { %3868 = vmatpush1.msra.mxu1 %v7254_v5  ;;  %3939 = vmatpush1.msra.mxu0 %v7256_v7 }
 0xb3f   :  { %3869 = vmatprep.subr.mxu1 %v7260_v11  ;;  %3940 = vmatprep.subr.mxu0 %v7262_v15  ;;  %v8114_v15 = vld [vmem:[#allocation27_spill] sm:$0xff] }
 0xb40   :  { %3870 = vmatpush1.msra.mxu1 %v7266_v18  ;;  %3941 = vmatpush1.msra.mxu0 %v7268_v21 }
 0xb41   :  { %3871 = vmatprep.subr.mxu1 %v7272_v22  ;;  %3942 = vmatprep.subr.mxu0 %v7274_v25  ;;  %v7304_v22 = vld [vmem:[#allocation11 + $0x30] sm:$0xff]  ;;  %v7308_v25 = vld [vmem:[#allocation11 + $0x8] sm:$0xff] }
 0xb42   :  { %3872 = vmatpush1.msra.mxu1 %v7278_v3  ;;  %3943 = vmatpush1.msra.mxu0 %v7280_v55  ;;  %8106 = vst [vmem:[#allocation69_spill] sm:$0xff] %v7304_v22  ;;  %8107 = vst [vmem:[#allocation24_spill] sm:$0xff] %v7308_v25  ;;  %v7310_v3 = vld [vmem:[#allocation11 + $0x18] sm:$0xff]  ;;  %v7314_v55 = vld [vmem:[#allocation11] sm:$0xff] }
 0xb43   :  { %3873 = vmatprep.subr.mxu1 %v7284_v35  ;;  %3944 = vmatprep.subr.mxu0 %v7286_v13  ;;  %8108 = vst [vmem:[#allocation23_spill] sm:$0xff] %v7310_v3  ;;  %8109 = vst [vmem:[#allocation35_spill] sm:$0xff] %v7314_v55  ;;  %v7316_v35 = vld [vmem:[#allocation11 + $0x10] sm:$0xff] }
 0xb44   :  { %3874 = vmatpush1.msra.mxu1 %v7290_v12  ;;  %3945 = vmatpush1.msra.mxu0 %v7292_v31  ;;  %8110 = vst [vmem:[#allocation36_spill] sm:$0xff] %v7316_v35 }
 0xb45   :  { %3875 = vmatprep.subr.mxu1 %v7296_v6  ;;  %3946 = vmatprep.subr.mxu0 %v7298_v14  ;;  %v8111_v14 = vld [vmem:[#allocation37_spill] sm:$0xff] }
 0xb46   :  { %3876 = vmatpush1.msra.mxu1 %v7302_v10  ;;  %3947 = vmatpush1.msra.mxu0 %v7304_v22  ;;  %v2647_v6 = vadd.f32 %v8111_v14, %v6932_v51  ;;  %v8112_v10 = vld [vmem:[#allocation38_spill] sm:$0xff]  ;;  %v2760_v14 = vadd.f32 %v8114_v15, %v6957_v42  ;;  %v8118_v15 = vld [vmem:[#allocation48_spill] sm:$0xff] }
 0xb47   :  { %3877 = vmatprep.subr.mxu1 %v7308_v25  ;;  %3948 = vmatprep.subr.mxu0 %v7310_v3  ;;  %v2649_v12 = vadd.f32 %v8112_v10, %v6940_v38 }
 0xb48   :  { %3878 = vmatpush1.msra.mxu1 %v7314_v55  ;;  %3949 = vmatpush1.msra.mxu0 %v7316_v35 }
 0xb49   :  { %4087 = vmatprep.subr.mxu1 %v7050_v24  ;;  %4158 = vmatprep.subr.mxu0 %v7052_v45  ;;  %v8113_v24 = vld [vmem:[#allocation28_spill] sm:$0xff] }
 0xb4a   :  { %v2762_v18 = vadd.f32 %v8113_v24, %v8068_v59 }
 0xbe8   :  { %v3673_v31 = vpop.f32.mrf.mxu1  ;;  %v3744_v3 = vpop.f32.mrf.mxu0 }
 0xbe9   :  { %v3749_v22 = vadd.f32 %v3673_v31, %v2647_v6  ;;  %v3751_v51 = vadd.f32 %v3744_v3, %v2760_v14  ;;  %v8119_v3 = vld [vmem:[#allocation61_spill] sm:$0xff]  ;;  %v8120_v6 = vld [vmem:[#allocation59_spill] sm:$0xff]  ;;  %v8121_v14 = vld [vmem:[#allocation20_spill] sm:$0xff] }
 0xbea   :  { %v3675_v13 = vpop.f32.mrf.mxu1  ;;  %v3746_v35 = vpop.f32.mrf.mxu0 }
 0xbeb   :  { %v4960_v25 = vmul.f32 -1.442695, %v3749_v22  ;;  %v3750_v21 = vadd.f32 %v3675_v13, %v2649_v12  ;;  %v3752_v45 = vadd.f32 %v3746_v35, %v2762_v18 }
 0xbed   :  { %5260 = vpow2.f32 %v4960_v25  ;;  %v4961_v55 = vmul.f32 -1.442695, %v3750_v21  ;;  %v4962_v11 = vmul.f32 -1.442695, %v3752_v45 }
 0xbef   :  { %5262 = vpow2.f32 %v4961_v55 }
 0xbf0   :  { %5264 = vtanh.f32 %v3751_v51 }
 0xbf1   :  { %5266 = vpow2.f32 %v4962_v11  ;;  %v8117_v11 = vld [vmem:[#allocation47_spill] sm:$0xff] }
 0xbfa   :  { %v5261_v7 = vpop.eup %5260 }
 0xbfb   :  { %v3756_v10 = vadd.f32 1.0, %v5261_v7 }
 0xbfc   :  { %v5263_v31 = vpop.eup %5262 }
 0xbfd   :  { %5268 = vrcp.f32 %v3756_v10  ;;  %v3762_v22 = vadd.f32 1.0, %v5263_v31  ;;  %v5265_v21 = vpop.eup %5264  ;;  %v8122_v10 = vld [vmem:[#allocation31_spill] sm:$0xff]  ;;  %v8123_v31 = vld [vmem:[#allocation49_spill] sm:$0xff] }
 0xbfe   :  { %v5267_v25 = vpop.eup %5266 }
 0xbff   :  { %5270 = vrcp.f32 %v3762_v22  ;;  %v3769_v24 = vadd.f32 1.0, %v5267_v25  ;;  %v8124_v22 = vld [vmem:[#allocation50_spill] sm:$0xff]  ;;  %v8126_v25 = vld [vmem:[#allocation63_spill] sm:$0xff] }
 0xc01   :  { %5272 = vrcp.f32 %v3769_v24  ;;  %v8130_v24 = vld [vmem:[#allocation33_spill] sm:$0xff] }
 0xc0a   :  { %v5269_v55 = vpop.eup %5268 }
 0xc0b   :  { %v3773_v13 = vmul.f32 %v5269_v55, %v5265_v21  ;;  %v8125_v21 = vld [vmem:[#allocation64_spill] sm:$0xff]  ;;  %v8127_v55 = vld [vmem:[#allocation21_spill] sm:$0xff] }
 0xc0c   :  { %v5271_v12 = vpop.eup %5270 }
 0xc0d   :  { %v3772_v18 = vmul.f32 %v5271_v12, %v7189_v4  ;;  %v8116_v4 = vld [vmem:[#allocation55_spill] sm:$0xff]  ;;  %v8129_v12 = vld [vmem:[#allocation22_spill] sm:$0xff] }
 0xc0e   :  { %v5273_v45 = vpop.eup %5272 }
 0xc0f   :  { %v7335_v35 = vadd.f32 %v3773_v13, %v3772_v18  ;;  %v8128_v13 = vld [vmem:[#allocation32_spill] sm:$0xff]  ;;  %v8131_v18 = vld [vmem:[#allocation34_spill] sm:$0xff] }
 0xc11   :  { %5274 = vtanh.f32 %v7335_v35 }
 0xc1e   :  { %v5275_v51 = vpop.eup %5274 }
 0xc1f   :  { %v7338_v7 = vmul.f32 %v5275_v51, %v5273_v45  ;;  %v8132_v45 = vld [vmem:[#allocation69_spill] sm:$0xff]  ;;  %v8133_v51 = vld [vmem:[#allocation24_spill] sm:$0xff] }
 0xc21   :  { %8115 = vst [vmem:[#allocation26_spill] sm:$0xff] %v7338_v7  ;;  %3912 = vmatmul.mubr.f32.vlgmr.msra.gmra.mxu1 %v7338_v7  ;;  %3983 = vmatmul.mubr.f32.vlgmr.msra.gmra.mxu0 %v7338_v7  ;;  %v8134_v7 = vld [vmem:[#allocation23_spill] sm:$0xff] }
 0xc22   :  { %4088 = vmatpush1.msra.mxu1 %v7056_v32  ;;  %4159 = vmatpush1.msra.mxu0 %v7058_v49 }
 0xc23   :  { %4089 = vmatprep.subr.mxu1 %v7062_v48  ;;  %4160 = vmatprep.subr.mxu0 %v7064_v37 }
 0xc24   :  { %4090 = vmatpush1.msra.mxu1 %v7068_v43  ;;  %4161 = vmatpush1.msra.mxu0 %v7070_v52 }
 0xc25   :  { %4091 = vmatprep.subr.mxu1 %v7074_v26  ;;  %4162 = vmatprep.subr.mxu0 %v7076_v44 }
 0xc26   :  { %4092 = vmatpush1.msra.mxu1 %v7080_v54  ;;  %4163 = vmatpush1.msra.mxu0 %v7082_v34 }
 0xc27   :  { %4093 = vmatprep.subr.mxu1 %v7086_v50  ;;  %4164 = vmatprep.subr.mxu0 %v7088_v36 }
 0xc28   :  { %4094 = vmatpush1.msra.mxu1 %v7092_v56  ;;  %4165 = vmatpush1.msra.mxu0 %v7094_v41 }
 0xc29   :  { %4095 = vmatprep.subr.mxu1 %v7098_v29  ;;  %4166 = vmatprep.subr.mxu0 %v7100_v57 }
 0xc2a   :  { %4096 = vmatpush1.msra.mxu1 %v7104_v39  ;;  %4167 = vmatpush1.msra.mxu0 %v8084_v47 }
 0xc2b   :  { %4097 = vmatprep.subr.mxu1 %v8085_v60  ;;  %4168 = vmatprep.subr.mxu0 %v8086_v28 }
 0xc2c   :  { %4098 = vmatpush1.msra.mxu1 %v8087_v33  ;;  %4169 = vmatpush1.msra.mxu0 %v8088_v8 }
 0xc2d   :  { %4099 = vmatprep.subr.mxu1 %v7122_v30  ;;  %4170 = vmatprep.subr.mxu0 %v7124_v40 }
 0xc2e   :  { %4100 = vmatpush1.msra.mxu1 %v7128_v0  ;;  %4171 = vmatpush1.msra.mxu0 %v7130_v53 }
 0xc2f   :  { %4101 = vmatprep.subr.mxu1 %v7132_v62  ;;  %4172 = vmatprep.subr.mxu0 %v7136_v58 }
 0xc30   :  { %4102 = vmatpush1.msra.mxu1 %v7138_v1  ;;  %4173 = vmatpush1.msra.mxu0 %v7140_v9 }
 0xc31   :  { %4103 = vmatprep.subr.mxu1 %v7228_v16  ;;  %4174 = vmatprep.subr.mxu0 %v7230_v17 }
 0xc32   :  { %4104 = vmatpush1.msra.mxu1 %v7232_v19  ;;  %4175 = vmatpush1.msra.mxu0 %v7236_v20 }
 0xc33   :  { %4105 = vmatprep.subr.mxu1 %v7238_v23  ;;  %4176 = vmatprep.subr.mxu0 %v7240_v27 }
 0xc34   :  { %4106 = vmatpush1.msra.mxu1 %v7244_v61  ;;  %4177 = vmatpush1.msra.mxu0 %v7246_v46 }
 0xc35   :  { %4107 = vmatprep.subr.mxu1 %v7248_v63  ;;  %4178 = vmatprep.subr.mxu0 %v7252_v2 }
 0xc36   :  { %4108 = vmatpush1.msra.mxu1 %v7254_v5  ;;  %4179 = vmatpush1.msra.mxu0 %v8116_v4 }
 0xc37   :  { %4109 = vmatprep.subr.mxu1 %v8117_v11  ;;  %4180 = vmatprep.subr.mxu0 %v8118_v15  ;;  %v8144_v15 = vld [vmem:[#allocation29_spill] sm:$0xff] }
 0xc38   :  { %4110 = vmatpush1.msra.mxu1 %v8119_v3  ;;  %4181 = vmatpush1.msra.mxu0 %v8120_v6 }
 0xc39   :  { %4111 = vmatprep.subr.mxu1 %v8121_v14  ;;  %4182 = vmatprep.subr.mxu0 %v8122_v10 }
 0xc3a   :  { %4112 = vmatpush1.msra.mxu1 %v8123_v31  ;;  %4183 = vmatpush1.msra.mxu0 %v8124_v22  ;;  %v8135_v22 = vld [vmem:[#allocation35_spill] sm:$0xff] }
 0xc3b   :  { %4113 = vmatprep.subr.mxu1 %v8125_v21  ;;  %4184 = vmatprep.subr.mxu0 %v8126_v25  ;;  %v8136_v21 = vmov 0.0   ;;  %v8137_v25 = vld [vmem:[#allocation36_spill] sm:$0xff] }
 0xc3c   :  { %4114 = vmatpush1.msra.mxu1 %v8127_v55  ;;  %4185 = vmatpush1.msra.mxu0 %v8128_v13  ;;  %v8138_v13 = vld [vmem:[#allocation42_spill] sm:$0xff] }
 0xc3d   :  { %4115 = vmatprep.subr.mxu1 %v8129_v12  ;;  %4186 = vmatprep.subr.mxu0 %v8130_v24  ;;  %v8139_v12 = vld [vmem:[#allocation71_spill] sm:$0xff] }
 0xc3e   :  { %4116 = vmatpush1.msra.mxu1 %v8131_v18  ;;  %4187 = vmatpush1.msra.mxu0 %v8132_v45  ;;  %v8140_v24 = vld [vmem:[#allocation19_spill] sm:$0xff] }
 0xc3f   :  { %4117 = vmatprep.subr.mxu1 %v8133_v51  ;;  %4188 = vmatprep.subr.mxu0 %v8134_v7  ;;  %v8141_v18 = vld [vmem:[#allocation39_spill] sm:$0xff]  ;;  %v8142_v51 = vld [vmem:[#allocation52_spill] sm:$0xff] }
 0xc40   :  { %4118 = vmatpush1.msra.mxu1 %v8135_v22  ;;  %4151 = vmatprep.mubr.f32.mxu1 %v8136_v21  ;;  %v2653_v55 = vadd.f32 %v8141_v18, %v8140_v24  ;;  %v2655_v31 = vadd.f32 %v8142_v51, %v6940_v38  ;;  %v2766_v18 = vadd.f32 %v8144_v15, %v6957_v42 }
 0xc41   :  { %4189 = vmatpush1.msra.mxu0 %v8137_v25  ;;  %4222 = vmatprep.mubr.f32.mxu0 %v8136_v21 }
 0xc42   :  { %4327 = vmatprep.subr.mxu1 %v8138_v13  ;;  %4398 = vmatprep.subr.mxu0 %v8139_v12  ;;  %v8143_v13 = vld [vmem:[#allocation54_spill] sm:$0xff] }
 0xc43   :  { %v2768_v3 = vadd.f32 %v8143_v13, %v8068_v59 }
 0xce1   :  { %v3913_v45 = vpop.f32.mrf.mxu1  ;;  %v3984_v6 = vpop.f32.mrf.mxu0 }
 0xce2   :  { %v3989_v7 = vadd.f32 %v3913_v45, %v2653_v55  ;;  %v3991_v24 = vadd.f32 %v3984_v6, %v2766_v18  ;;  %v8170_v18 = vld [vmem:[#allocation58_spill] sm:$0xff] }
 0xce3   :  { %v3915_v10 = vpop.f32.mrf.mxu1  ;;  %v3986_v21 = vpop.f32.mrf.mxu0 }
 0xce4   :  { %v4963_v22 = vmul.f32 -1.442695, %v3989_v7  ;;  %v3990_v14 = vadd.f32 %v3915_v10, %v2655_v31  ;;  %v3992_v12 = vadd.f32 %v3986_v21, %v2768_v3 }
 0xce6   :  { %5276 = vpow2.f32 %v4963_v22  ;;  %v4964_v25 = vmul.f32 -1.442695, %v3990_v14  ;;  %v4965_v11 = vmul.f32 -1.442695, %v3992_v12 }
 0xce8   :  { %5278 = vpow2.f32 %v4964_v25 }
 0xce9   :  { %5280 = vtanh.f32 %v3991_v24 }
 0xcea   :  { %5282 = vpow2.f32 %v4965_v11 }
 0xcf3   :  { %v5277_v4 = vpop.eup %5276 }
 0xcf4   :  { %v3996_v51 = vadd.f32 1.0, %v5277_v4 }
 0xcf5   :  { %v5279_v55 = vpop.eup %5278 }
 0xcf6   :  { %5284 = vrcp.f32 %v3996_v51  ;;  %v4002_v7 = vadd.f32 1.0, %v5279_v55  ;;  %v5281_v14 = vpop.eup %5280  ;;  %v2774_v51 = vadd.f32 %v8170_v18, %v8068_v59  ;;  %v4565_v18 = vld [vmem:[#allocation11 + $0x1f0] sm:$0xff] }
 0xcf7   :  { %v5283_v10 = vpop.eup %5282 }
 0xcf8   :  { %5286 = vrcp.f32 %v4002_v7  ;;  %v4009_v45 = vadd.f32 1.0, %v5283_v10  ;;  %v8171_v7 = vld [vmem:[#allocation65_spill] sm:$0xff] }
 0xcfa   :  { %5288 = vrcp.f32 %v4009_v45 }
 0xd03   :  { %v5285_v31 = vpop.eup %5284 }
 0xd04   :  { %v4013_v22 = vmul.f32 %v5285_v31, %v5281_v14  ;;  %v2772_v14 = vadd.f32 %v8171_v7, %v6957_v42  ;;  %v4556_v7 = vld [vmem:[#allocation11 + $0x1a8] sm:$0xff] }
 0xd05   :  { %v5287_v25 = vpop.eup %5286 }
 0xd06   :  { %v4012_v3 = vmul.f32 %v5287_v25, %v7335_v35 }
 0xd07   :  { %v5289_v4 = vpop.eup %5288 }
 0xd08   :  { %v7417_v21 = vadd.f32 %v4013_v22, %v4012_v3 }
 0xd0a   :  { %5290 = vtanh.f32 %v7417_v21 }
 0xd17   :  { %v5291_v15 = vpop.eup %5290 }
 0xd18   :  { %v7420_v6 = vmul.f32 %v5291_v15, %v5289_v4 }
 0xd1a   :  { %4152 = vmatmul.mubr.f32.vlgmr.msra.gmra.mxu1 %v7420_v6  ;;  %4223 = vmatmul.mubr.f32.vlgmr.msra.gmra.mxu0 %v7420_v6 }
 0xd1b   :  { %4328 = vmatpush1.msra.mxu1 %v7056_v32  ;;  %4399 = vmatpush1.msra.mxu0 %v7058_v49  ;;  %v8148_v32 = vld [vmem:[#allocation61_spill] sm:$0xff]  ;;  %v8149_v49 = vld [vmem:[#allocation59_spill] sm:$0xff] }
 0xd1c   :  { %4329 = vmatprep.subr.mxu1 %v7062_v48  ;;  %4400 = vmatprep.subr.mxu0 %v7064_v37  ;;  %v8150_v48 = vld [vmem:[#allocation20_spill] sm:$0xff]  ;;  %v8151_v37 = vld [vmem:[#allocation31_spill] sm:$0xff] }
 0xd1d   :  { %4330 = vmatpush1.msra.mxu1 %v7068_v43  ;;  %4401 = vmatpush1.msra.mxu0 %v7070_v52  ;;  %v8152_v43 = vld [vmem:[#allocation49_spill] sm:$0xff]  ;;  %v8153_v52 = vld [vmem:[#allocation50_spill] sm:$0xff] }
 0xd1e   :  { %4331 = vmatprep.subr.mxu1 %v7074_v26  ;;  %4402 = vmatprep.subr.mxu0 %v7076_v44  ;;  %v8154_v26 = vld [vmem:[#allocation64_spill] sm:$0xff]  ;;  %v8155_v44 = vld [vmem:[#allocation63_spill] sm:$0xff] }
 0xd1f   :  { %4332 = vmatpush1.msra.mxu1 %v7080_v54  ;;  %4403 = vmatpush1.msra.mxu0 %v7082_v34  ;;  %v8156_v54 = vld [vmem:[#allocation21_spill] sm:$0xff]  ;;  %v8157_v34 = vld [vmem:[#allocation32_spill] sm:$0xff] }
 0xd20   :  { %4333 = vmatprep.subr.mxu1 %v7086_v50  ;;  %4404 = vmatprep.subr.mxu0 %v7088_v36  ;;  %v8158_v50 = vld [vmem:[#allocation22_spill] sm:$0xff]  ;;  %v8159_v36 = vld [vmem:[#allocation33_spill] sm:$0xff] }
 0xd21   :  { %4334 = vmatpush1.msra.mxu1 %v7092_v56  ;;  %4405 = vmatpush1.msra.mxu0 %v7094_v41  ;;  %v8160_v56 = vld [vmem:[#allocation34_spill] sm:$0xff]  ;;  %v8161_v41 = vld [vmem:[#allocation69_spill] sm:$0xff] }
 0xd22   :  { %4335 = vmatprep.subr.mxu1 %v7098_v29  ;;  %4406 = vmatprep.subr.mxu0 %v7100_v57  ;;  %v8162_v29 = vld [vmem:[#allocation24_spill] sm:$0xff]  ;;  %v8163_v57 = vld [vmem:[#allocation23_spill] sm:$0xff] }
 0xd23   :  { %4336 = vmatpush1.msra.mxu1 %v7104_v39  ;;  %4407 = vmatpush1.msra.mxu0 %v8084_v47  ;;  %v8164_v39 = vld [vmem:[#allocation35_spill] sm:$0xff] }
 0xd24   :  { %4337 = vmatprep.subr.mxu1 %v8085_v60  ;;  %4408 = vmatprep.subr.mxu0 %v8086_v28  ;;  %v8169_v60 = vld [vmem:[#allocation56_spill] sm:$0xff] }
 0xd25   :  { %4338 = vmatpush1.msra.mxu1 %v8087_v33  ;;  %4409 = vmatpush1.msra.mxu0 %v8088_v8  ;;  %v2661_v28 = vadd.f32 %v8169_v60, %v6940_v38 }
 0xd26   :  { %4339 = vmatprep.subr.mxu1 %v7122_v30  ;;  %4410 = vmatprep.subr.mxu0 %v7124_v40  ;;  %v8145_v40 = vld [vmem:[#allocation55_spill] sm:$0xff]  ;;  %v8147_v30 = vld [vmem:[#allocation48_spill] sm:$0xff] }
 0xd27   :  { %4340 = vmatpush1.msra.mxu1 %v7128_v0  ;;  %4411 = vmatpush1.msra.mxu0 %v7130_v53  ;;  %v8146_v0 = vld [vmem:[#allocation47_spill] sm:$0xff]  ;;  %v8166_v53 = vld [vmem:[#allocation36_spill] sm:$0xff] }
 0xd28   :  { %4341 = vmatprep.subr.mxu1 %v7132_v62  ;;  %4412 = vmatprep.subr.mxu0 %v7136_v58  ;;  %v8167_v62 = vld [vmem:[#allocation19_spill] sm:$0xff]  ;;  %v8168_v58 = vld [vmem:[#allocation66_spill] sm:$0xff] }
 0xd29   :  { %4342 = vmatpush1.msra.mxu1 %v7138_v1  ;;  %4413 = vmatpush1.msra.mxu0 %v7140_v9  ;;  %v8165_v9 = vmov 0.0   ;;  %v2659_v1 = vadd.f32 %v8168_v58, %v8167_v62 }
 0xd2a   :  { %4343 = vmatprep.subr.mxu1 %v7228_v16  ;;  %4414 = vmatprep.subr.mxu0 %v7230_v17 }
 0xd2b   :  { %4344 = vmatpush1.msra.mxu1 %v7232_v19  ;;  %4415 = vmatpush1.msra.mxu0 %v7236_v20 }
 0xd2c   :  { %4345 = vmatprep.subr.mxu1 %v7238_v23  ;;  %4416 = vmatprep.subr.mxu0 %v7240_v27 }
 0xd2d   :  { %4346 = vmatpush1.msra.mxu1 %v7244_v61  ;;  %4417 = vmatpush1.msra.mxu0 %v7246_v46 }
 0xd2e   :  { %4347 = vmatprep.subr.mxu1 %v7248_v63  ;;  %4418 = vmatprep.subr.mxu0 %v7252_v2 }
 0xd2f   :  { %4348 = vmatpush1.msra.mxu1 %v7254_v5  ;;  %4419 = vmatpush1.msra.mxu0 %v8145_v40 }
 0xd30   :  { %4349 = vmatprep.subr.mxu1 %v8146_v0  ;;  %4420 = vmatprep.subr.mxu0 %v8147_v30 }
 0xd31   :  { %4350 = vmatpush1.msra.mxu1 %v8148_v32  ;;  %4421 = vmatpush1.msra.mxu0 %v8149_v49 }
 0xd32   :  { %4351 = vmatprep.subr.mxu1 %v8150_v48  ;;  %4422 = vmatprep.subr.mxu0 %v8151_v37 }
 0xd33   :  { %4352 = vmatpush1.msra.mxu1 %v8152_v43  ;;  %4423 = vmatpush1.msra.mxu0 %v8153_v52 }
 0xd34   :  { %4353 = vmatprep.subr.mxu1 %v8154_v26  ;;  %4424 = vmatprep.subr.mxu0 %v8155_v44 }
 0xd35   :  { %4354 = vmatpush1.msra.mxu1 %v8156_v54  ;;  %4425 = vmatpush1.msra.mxu0 %v8157_v34 }
 0xd36   :  { %4355 = vmatprep.subr.mxu1 %v8158_v50  ;;  %4426 = vmatprep.subr.mxu0 %v8159_v36 }
 0xd37   :  { %4356 = vmatpush1.msra.mxu1 %v8160_v56  ;;  %4427 = vmatpush1.msra.mxu0 %v8161_v41 }
 0xd38   :  { %4357 = vmatprep.subr.mxu1 %v8162_v29  ;;  %4428 = vmatprep.subr.mxu0 %v8163_v57 }
 0xd39   :  { %4358 = vmatpush1.msra.mxu1 %v8164_v39  ;;  %4391 = vmatprep.mubr.f32.mxu1 %v8165_v9 }
 0xd3a   :  { %4429 = vmatpush1.msra.mxu0 %v8166_v53  ;;  %4462 = vmatprep.mubr.f32.mxu0 %v8165_v9 }
 0xdda   :  { %v4153_v47 = vpop.f32.mrf.mxu1  ;;  %v4224_v24 = vpop.f32.mrf.mxu0 }
 0xddb   :  { %v4229_v33 = vadd.f32 %v4153_v47, %v2659_v1  ;;  %v4231_v10 = vadd.f32 %v4224_v24, %v2772_v14  ;;  %v4564_v24 = vld [vmem:[#allocation11 + $0x1e8] sm:$0xff]  ;;  %v4561_v14 = vld [vmem:[#allocation11 + $0x1d0] sm:$0xff] }
 0xddc   :  { %v4155_v8 = vpop.f32.mrf.mxu1  ;;  %v4226_v12 = vpop.f32.mrf.mxu0  ;;  %4567 = vmatprep.subr.mxu1 %v4564_v24  ;;  %v4539_v24 = vld [vmem:[#allocation11 + $0x120] sm:$0xff] }
 0xddd   :  { %v4966_v35 = vmul.f32 -1.442695, %v4229_v33  ;;  %v4230_v11 = vadd.f32 %v4155_v8, %v2661_v28  ;;  %v4232_v55 = vadd.f32 %v4226_v12, %v2774_v51  ;;  %v4560_v12 = vld [vmem:[#allocation11 + $0x1c8] sm:$0xff]  ;;  %v4559_v51 = vld [vmem:[#allocation11 + $0x1c0] sm:$0xff] }
 0xddf   :  { %5292 = vpow2.f32 %v4966_v35  ;;  %v4967_v13 = vmul.f32 -1.442695, %v4230_v11  ;;  %v4968_v31 = vmul.f32 -1.442695, %v4232_v55  ;;  %v4562_v55 = vld [vmem:[#allocation11 + $0x1d8] sm:$0xff] }
 0xde1   :  { %5294 = vpow2.f32 %v4967_v13  ;;  %v4566_v13 = vld [vmem:[#allocation11 + $0x1f8] sm:$0xff] }
 0xde2   :  { %5296 = vtanh.f32 %v4231_v10  ;;  %4638 = vmatprep.subr.mxu0 %v4566_v13  ;;  %v4555_v10 = vld [vmem:[#allocation11 + $0x1a0] sm:$0xff]  ;;  %v4536_v13 = vld [vmem:[#allocation11 + $0x108] sm:$0xff] }
 0xde3   :  { %5298 = vpow2.f32 %v4968_v31  ;;  %v4552_v31 = vld [vmem:[#allocation11 + $0x188] sm:$0xff] }
 0xdec   :  { %v5293_v22 = vpop.eup %5292 }
 0xded   :  { %v4236_v25 = vadd.f32 1.0, %v5293_v22  ;;  %v4557_v22 = vld [vmem:[#allocation11 + $0x1b0] sm:$0xff] }
 0xdee   :  { %v5295_v45 = vpop.eup %5294 }
 0xdef   :  { %5300 = vrcp.f32 %v4236_v25  ;;  %v4242_v3 = vadd.f32 1.0, %v5295_v45  ;;  %v5297_v4 = vpop.eup %5296  ;;  %v4551_v25 = vld [vmem:[#allocation11 + $0x180] sm:$0xff]  ;;  %v4554_v45 = vld [vmem:[#allocation11 + $0x198] sm:$0xff] }
 0xdf0   :  { %v5299_v15 = vpop.eup %5298 }
 0xdf1   :  { %5302 = vrcp.f32 %v4242_v3  ;;  %v4249_v60 = vadd.f32 1.0, %v5299_v15  ;;  %v4548_v3 = vld [vmem:[#allocation11 + $0x168] sm:$0xff]  ;;  %v4547_v15 = vld [vmem:[#allocation11 + $0x160] sm:$0xff] }
 0xdf3   :  { %5304 = vrcp.f32 %v4249_v60  ;;  %v4543_v60 = vld [vmem:[#allocation11 + $0x140] sm:$0xff] }
 0xdfc   :  { %v5301_v58 = vpop.eup %5300 }
 0xdfd   :  { %v4253_v1 = vmul.f32 %v5301_v58, %v5297_v4  ;;  %v4553_v4 = vld [vmem:[#allocation11 + $0x190] sm:$0xff]  ;;  %v4550_v58 = vld [vmem:[#allocation11 + $0x178] sm:$0xff] }
 0xdfe   :  { %v5303_v47 = vpop.eup %5302 }
 0xdff   :  { %v4252_v28 = vmul.f32 %v5303_v47, %v7417_v21  ;;  %v4563_v21 = vld [vmem:[#allocation11 + $0x1e0] sm:$0xff]  ;;  %v4549_v47 = vld [vmem:[#allocation11 + $0x170] sm:$0xff] }
 0xe00   :  { %v5305_v8 = vpop.eup %5304 }
 0xe01   :  { %v7497_v33 = vadd.f32 %v4253_v1, %v4252_v28  ;;  %v4544_v1 = vld [vmem:[#allocation11 + $0x148] sm:$0xff]  ;;  %v4546_v28 = vld [vmem:[#allocation11 + $0x158] sm:$0xff] }
 0xe03   :  { %5306 = vtanh.f32 %v7497_v33 }
 0xe10   :  { %v5307_v35 = vpop.eup %5306 }
 0xe11   :  { %v7500_v11 = vmul.f32 %v5307_v35, %v5305_v8  ;;  %v4540_v8 = vld [vmem:[#allocation11 + $0x128] sm:$0xff]  ;;  %v4545_v35 = vld [vmem:[#allocation11 + $0x150] sm:$0xff] }
 0xe13   :  { %4392 = vmatmul.mubr.f32.vlgmr.msra.gmra.mxu1 %v7500_v11  ;;  %4463 = vmatmul.mubr.f32.vlgmr.msra.gmra.mxu0 %v7500_v11 }
 0xe14   :  { %4631 = vmatprep.mubr.f32.mxu1 %v8165_v9  ;;  %4702 = vmatprep.mubr.f32.mxu0 %v8165_v9  ;;  %v4558_v9 = vld [vmem:[#allocation11 + $0x1b8] sm:$0xff] }
 0xe15   :  { %4568 = vmatpush1.msra.mxu1 %v4563_v21  ;;  %4639 = vmatpush1.msra.mxu0 %v4565_v18  ;;  %v4542_v21 = vld [vmem:[#allocation11 + $0x138] sm:$0xff]  ;;  %v4535_v18 = vld [vmem:[#allocation11 + $0x100] sm:$0xff] }
 0xe16   :  { %4569 = vmatprep.subr.mxu1 %v4560_v12  ;;  %4640 = vmatprep.subr.mxu0 %v4562_v55  ;;  %v4541_v12 = vld [vmem:[#allocation11 + $0x130] sm:$0xff] }
 0xe17   :  { %4570 = vmatpush1.msra.mxu1 %v4559_v51  ;;  %4641 = vmatpush1.msra.mxu0 %v4561_v14  ;;  %v4538_v51 = vld [vmem:[#allocation11 + $0x118] sm:$0xff]  ;;  %v4537_v55 = vld [vmem:[#allocation11 + $0x110] sm:$0xff] }
 0xe18   :  { %4571 = vmatprep.subr.mxu1 %v4556_v7  ;;  %4642 = vmatprep.subr.mxu0 %v4558_v9  ;;  %v4761_v9 = vld [vmem:[#allocation13 + $0x70] sm:$0xff] }
 0xe19   :  { %4572 = vmatpush1.msra.mxu1 %v4555_v10  ;;  %4643 = vmatpush1.msra.mxu0 %v4557_v22  ;;  %v4760_v22 = vld [vmem:[#allocation13 + $0x68] sm:$0xff] }
 0xe1a   :  { %4573 = vmatprep.subr.mxu1 %v4552_v31  ;;  %4644 = vmatprep.subr.mxu0 %v4554_v45  ;;  %v8176_v31 = vld [vmem:[#allocation41_spill] sm:$0xff] }
 0xe1b   :  { %4574 = vmatpush1.msra.mxu1 %v4551_v25  ;;  %4645 = vmatpush1.msra.mxu0 %v4553_v4  ;;  %v4759_v25 = vld [vmem:[#allocation13 + $0x60] sm:$0xff]  ;;  %v4757_v45 = vld [vmem:[#allocation13 + $0x50] sm:$0xff] }
 0xe1c   :  { %4575 = vmatprep.subr.mxu1 %v4548_v3  ;;  %4646 = vmatprep.subr.mxu0 %v4550_v58  ;;  %v4756_v3 = vld [vmem:[#allocation13 + $0x48] sm:$0xff]  ;;  %v4755_v4 = vld [vmem:[#allocation13 + $0x40] sm:$0xff]  ;;  %v4753_v58 = vld [vmem:[#allocation13 + $0x30] sm:$0xff] }
 0xe1d   :  { %4576 = vmatpush1.msra.mxu1 %v4547_v15  ;;  %4647 = vmatpush1.msra.mxu0 %v4549_v47  ;;  %v4754_v15 = vld [vmem:[#allocation13 + $0x38] sm:$0xff]  ;;  %v4751_v47 = vld [vmem:[#allocation13 + $0x20] sm:$0xff] }
 0xe1e   :  { %4577 = vmatprep.subr.mxu1 %v4544_v1  ;;  %4648 = vmatprep.subr.mxu0 %v4546_v28  ;;  %v4752_v1 = vld [vmem:[#allocation13 + $0x28] sm:$0xff]  ;;  %v4749_v28 = vld [vmem:[#allocation13 + $0x10] sm:$0xff] }
 0xe1f   :  { %4578 = vmatpush1.msra.mxu1 %v4543_v60  ;;  %4649 = vmatpush1.msra.mxu0 %v4545_v35  ;;  %v4750_v60 = vld [vmem:[#allocation13 + $0x18] sm:$0xff]  ;;  %v4747_v35 = vld [vmem:[#allocation13] sm:$0xff] }
 0xe20   :  { %4579 = vmatprep.subr.mxu1 %v4540_v8  ;;  %4650 = vmatprep.subr.mxu0 %v4542_v21  ;;  %v4748_v8 = vld [vmem:[#allocation13 + $0x8] sm:$0xff]  ;;  %v8178_v21 = vld [vmem:[#allocation57_spill] sm:$0xff] }
 0xe21   :  { %4580 = vmatpush1.msra.mxu1 %v4539_v24  ;;  %4651 = vmatpush1.msra.mxu0 %v4541_v12  ;;  %v8177_v24 = vld [vmem:[#allocation43_spill] sm:$0xff]  ;;  %v8180_v12 = vld [vmem:[#allocation30_spill] sm:$0xff] }
 0xe22   :  { %4581 = vmatprep.subr.mxu1 %v4536_v13  ;;  %4652 = vmatprep.subr.mxu0 %v4538_v51  ;;  %v8179_v13 = vld [vmem:[#allocation26_spill] sm:$0xff] }
 0xe23   :  { %4582 = vmatpush1.msra.mxu1 %v4535_v18  ;;  %4653 = vmatpush1.msra.mxu0 %v4537_v55  ;;  %v2671_v18 = vadd.f32 %v8180_v12, %v8167_v62  ;;  %v8181_v55 = vld [vmem:[#allocation62_spill] sm:$0xff] }
 0xe24   :  { %4583 = vmatprep.subr.mxu1 %v7228_v16  ;;  %4654 = vmatprep.subr.mxu0 %v7230_v17  ;;  %v4762_v16 = vld [vmem:[#allocation13 + $0x78] sm:$0xff]  ;;  %v8172_v17 = vld [vmem:[#allocation68_spill] sm:$0xff] }
 0xe25   :  { %4584 = vmatpush1.msra.mxu1 %v7232_v19  ;;  %4655 = vmatpush1.msra.mxu0 %v7236_v20  ;;  %v2665_v19 = vadd.f32 %v8172_v17, %v8167_v62 }
 0xe26   :  { %4585 = vmatprep.subr.mxu1 %v7238_v23  ;;  %4656 = vmatprep.subr.mxu0 %v7240_v27  ;;  %v8173_v23 = vld [vmem:[#allocation72_spill] sm:$0xff] }
 0xe27   :  { %4586 = vmatpush1.msra.mxu1 %v7244_v61  ;;  %4657 = vmatpush1.msra.mxu0 %v7246_v46  ;;  %v2667_v27 = vadd.f32 %v8173_v23, %v6940_v38 }
 0xe28   :  { %4587 = vmatprep.subr.mxu1 %v7248_v63  ;;  %4658 = vmatprep.subr.mxu0 %v7252_v2 }
 0xe29   :  { %4588 = vmatpush1.msra.mxu1 %v7254_v5  ;;  %4659 = vmatpush1.msra.mxu0 %v8145_v40 }
 0xe2a   :  { %4589 = vmatprep.subr.mxu1 %v8146_v0  ;;  %4660 = vmatprep.subr.mxu0 %v8147_v30  ;;  %v8174_v30 = vld [vmem:[#allocation40_spill] sm:$0xff] }
 0xe2b   :  { %4590 = vmatpush1.msra.mxu1 %v8148_v32  ;;  %4661 = vmatpush1.msra.mxu0 %v8149_v49  ;;  %v2780_v32 = vadd.f32 %v8174_v30, %v8068_v59 }
 0xe2c   :  { %4591 = vmatprep.subr.mxu1 %v8150_v48  ;;  %4662 = vmatprep.subr.mxu0 %v8151_v37  ;;  %v8175_v48 = vld [vmem:[#allocation67_spill] sm:$0xff] }
 0xe2d   :  { %4592 = vmatpush1.msra.mxu1 %v8152_v43  ;;  %4663 = vmatpush1.msra.mxu0 %v8153_v52  ;;  %v2778_v37 = vadd.f32 %v8175_v48, %v6957_v42 }
 0xe2e   :  { %4593 = vmatprep.subr.mxu1 %v8154_v26  ;;  %4664 = vmatprep.subr.mxu0 %v8155_v44 }
 0xe2f   :  { %4594 = vmatpush1.msra.mxu1 %v8156_v54  ;;  %4665 = vmatpush1.msra.mxu0 %v8157_v34 }
 0xe30   :  { %4595 = vmatprep.subr.mxu1 %v8158_v50  ;;  %4666 = vmatprep.subr.mxu0 %v8159_v36 }
 0xe31   :  { %4596 = vmatpush1.msra.mxu1 %v8160_v56  ;;  %4667 = vmatpush1.msra.mxu0 %v8161_v41 }
 0xe32   :  { %4597 = vmatprep.subr.mxu1 %v8162_v29  ;;  %4668 = vmatprep.subr.mxu0 %v8163_v57 }
 0xe33   :  { %4598 = vmatpush1.msra.mxu1 %v8164_v39  ;;  %4669 = vmatpush1.msra.mxu0 %v8166_v53 }
 0xe34   :  { %5028 = vmatprep.subr.mxu1 %v4762_v16 }
 0xed3   :  { %v4393_v20 = vpop.f32.mrf.mxu1  ;;  %v4464_v5 = vpop.f32.mrf.mxu0 }
 0xed4   :  { %v4469_v61 = vadd.f32 %v4393_v20, %v2665_v19  ;;  %v4471_v43 = vadd.f32 %v4464_v5, %v2778_v37 }
 0xed5   :  { %v4395_v46 = vpop.f32.mrf.mxu1  ;;  %v4466_v0 = vpop.f32.mrf.mxu0 }
 0xed6   :  { %v4969_v63 = vmul.f32 -1.442695, %v4469_v61  ;;  %v4470_v2 = vadd.f32 %v4395_v46, %v2667_v27  ;;  %v4472_v49 = vadd.f32 %v4466_v0, %v2780_v32 }
 0xed8   :  { %5308 = vpow2.f32 %v4969_v63  ;;  %v4970_v40 = vmul.f32 -1.442695, %v4470_v2  ;;  %v4971_v52 = vmul.f32 -1.442695, %v4472_v49  ;;  %v8183_v2 = vld [vmem:[#allocation60_spill] sm:$0xff] }
 0xed9   :  { %v2784_v62 = vadd.f32 %v8183_v2, %v6957_v42  ;;  %v4975_v49 = vld [vmem:[%s7585_s11] ss:$0 sm:$0xff]  ;;  %s5479_s11 = smov [#allocation14]  }
 0xeda   :  { %5310 = vpow2.f32 %v4970_v40  ;;  %s4888_s22 = sshll.u32 %s5479_s11, 4  ;;  %s4889_s22 = int_to_ptr.vmem [resolvable:$true] %s4888_s22 }
 0xedb   :  { %5312 = vtanh.f32 %v4471_v43  ;;  %s5440_s23 = scalar_lea.vmem %s4889_s22, 1024  ;;  %p5445_p12 = scmp.lt.s32.totalorder %s4889_s22, %s4889_s22 }
 0xedc   :  { %5314 = vpow2.f32 %v4971_v52  ;;  %p5441_p11 = scmp.ne.s32.totalorder %s4889_s22, %s5440_s23  ;;  %p5446_p13 = scmp.lt.s32.totalorder %s5440_s23, %s5440_s23 }
 0xede   :  { %p5447_p0 = por %p5446_p13, %p5445_p12 }
 0xee0   :  { %p5448_p1 = pnand %p5447_p0, %p5441_p11 }
 0xee5   :  { %v5309_v26 = vpop.eup %5308 }
 0xee6   :  { %v4476_v44 = vadd.f32 1.0, %v5309_v26 }
 0xee7   :  { %v5311_v54 = vpop.eup %5310 }
 0xee8   :  { %5316 = vrcp.f32 %v4476_v44  ;;  %v4482_v34 = vadd.f32 1.0, %v5311_v54  ;;  %v5313_v50 = vpop.eup %5312 }
 0xee9   :  { %v5315_v36 = vpop.eup %5314 }
 0xeea   :  { %5318 = vrcp.f32 %v4482_v34  ;;  %v4489_v57 = vadd.f32 1.0, %v5315_v36 }
 0xeec   :  { %5320 = vrcp.f32 %v4489_v57 }
 0xef5   :  { %v5317_v56 = vpop.eup %5316 }
 0xef6   :  { %v4493_v41 = vmul.f32 %v5317_v56, %v5313_v50 }
 0xef7   :  { %v5319_v29 = vpop.eup %5318 }
 0xef8   :  { %v4492_v39 = vmul.f32 %v5319_v29, %v7497_v33  ;;  %v4758_v33 = vld [vmem:[#allocation13 + $0x58] sm:$0xff] }
 0xef9   :  { %v5321_v7 = vpop.eup %5320 }
 0xefa   :  { %v7547_v53 = vadd.f32 %v4493_v41, %v4492_v39 }
 0xefc   :  { %5322 = vtanh.f32 %v7547_v53 }
 0xf09   :  { %v5323_v14 = vpop.eup %5322 }
 0xf0a   :  { %v4496_v10 = vmul.f32 %v5323_v14, %v5321_v7 }
 0xf0c   :  { %4632 = vmatmul.mubr.f32.vlgmr.msra.gmra.mxu1 %v4496_v10  ;;  %4703 = vmatmul.mubr.f32.vlgmr.msra.gmra.mxu0 %v4496_v10 }
 0xf0d   :  { %5029 = vmatpush3.msra.mxu1 %v4762_v16  ;;  %5060 = vmatprep.mubr.f32.mxu1 %v8176_v31  ;;  %v2673_v16 = vadd.f32 %v8181_v55, %v6940_v38 }
 0xf0e   :  { %5030 = vmatprep.subr.mxu1 %v4761_v9 }
 0xf0f   :  { %5031 = vmatpush3.msra.mxu1 %v4761_v9 }
 0xf10   :  { %5032 = vmatprep.subr.mxu1 %v4760_v22 }
 0xf11   :  { %5033 = vmatpush3.msra.mxu1 %v4760_v22 }
 0xf12   :  { %5034 = vmatprep.subr.mxu1 %v4759_v25 }
 0xf13   :  { %5035 = vmatpush3.msra.mxu1 %v4759_v25 }
 0xf14   :  { %5036 = vmatprep.subr.mxu1 %v4758_v33 }
 0xf15   :  { %5037 = vmatpush3.msra.mxu1 %v4758_v33 }
 0xf16   :  { %5038 = vmatprep.subr.mxu1 %v4757_v45 }
 0xf17   :  { %5039 = vmatpush3.msra.mxu1 %v4757_v45 }
 0xf18   :  { %5040 = vmatprep.subr.mxu1 %v4756_v3 }
 0xf19   :  { %5041 = vmatpush3.msra.mxu1 %v4756_v3 }
 0xf1a   :  { %5042 = vmatprep.subr.mxu1 %v4755_v4 }
 0xf1b   :  { %5043 = vmatpush3.msra.mxu1 %v4755_v4 }
 0xf1c   :  { %5044 = vmatprep.subr.mxu1 %v4754_v15 }
 0xf1d   :  { %5045 = vmatpush3.msra.mxu1 %v4754_v15 }
 0xf1e   :  { %5046 = vmatprep.subr.mxu1 %v4753_v58 }
 0xf1f   :  { %5047 = vmatpush3.msra.mxu1 %v4753_v58 }
 0xf20   :  { %5048 = vmatprep.subr.mxu1 %v4752_v1 }
 0xf21   :  { %5049 = vmatpush3.msra.mxu1 %v4752_v1 }
 0xf22   :  { %5050 = vmatprep.subr.mxu1 %v4751_v47 }
 0xf23   :  { %5051 = vmatpush3.msra.mxu1 %v4751_v47 }
 0xf24   :  { %5052 = vmatprep.subr.mxu1 %v4750_v60 }
 0xf25   :  { %5053 = vmatpush3.msra.mxu1 %v4750_v60 }
 0xf26   :  { %5054 = vmatprep.subr.mxu1 %v4749_v28 }
 0xf27   :  { %5055 = vmatpush3.msra.mxu1 %v4749_v28 }
 0xf28   :  { %5056 = vmatprep.subr.mxu1 %v4748_v8 }
 0xf29   :  { %5057 = vmatpush3.msra.mxu1 %v4748_v8 }
 0xf2a   :  { %5058 = vmatprep.subr.mxu1 %v4747_v35 }
 0xf2b   :  { %5059 = vmatpush3.msra.mxu1 %v4747_v35 }
 0xf2c   :  { %5061 = vmatmul.mubr.f32.vlgmr.msra.gmra.mxu1 %v8177_v24 }
 0xf2d   :  { %5063 = vmatprep.mubr.f32.mxu1 %v8178_v21 }
 0xf30   :  { %5064 = vmatmul.mubr.f32.gmra.mxu1 %v8179_v13 }
 0xf31   :  { %5066 = vmatprep.mubr.f32.mxu1 %v7420_v6  ;;  %v8182_v6 = vld [vmem:[#allocation70_spill] sm:$0xff] }
 0xf34   :  { %5067 = vmatmul.mubr.f32.gmra.mxu1 %v7500_v11  ;;  %v2786_v11 = vadd.f32 %v8182_v6, %v8068_v59 }
 0xf35   :  { %5069 = vmatprep.mubr.f32.mxu1 %v4496_v10 }
 0xfcc   :  { %v4633_v51 = vpop.f32.mrf.mxu1  ;;  %v4704_v27 = vpop.f32.mrf.mxu0 }
 0xfcd   :  { %v4709_v17 = vadd.f32 %v4633_v51, %v2671_v18  ;;  %v4711_v5 = vadd.f32 %v4704_v27, %v2784_v62 }
 0xfce   :  { %v4635_v19 = vpop.f32.mrf.mxu1  ;;  %v4706_v46 = vpop.f32.mrf.mxu0 }
 0xfcf   :  { %v4972_v20 = vmul.f32 -1.442695, %v4709_v17  ;;  %v4710_v23 = vadd.f32 %v4635_v19, %v2673_v16  ;;  %v4712_v63 = vadd.f32 %v4706_v46, %v2786_v11 }
 0xfd1   :  { %5324 = vpow2.f32 %v4972_v20  ;;  %v4973_v61 = vmul.f32 -1.442695, %v4710_v23  ;;  %v4974_v40 = vmul.f32 -1.442695, %v4712_v63 }
 0xfd3   :  { %5326 = vpow2.f32 %v4973_v61 }
 0xfd4   :  { %5328 = vtanh.f32 %v4711_v5 }
 0xfd5   :  { %5330 = vpow2.f32 %v4974_v40 }
 0xfde   :  { %v5325_v0 = vpop.eup %5324 }
 0xfdf   :  { %v4716_v38 = vadd.f32 1.0, %v5325_v0 }
 0xfe0   :  { %v5327_v30 = vpop.eup %5326 }
 0xfe1   :  { %5332 = vrcp.f32 %v4716_v38  ;;  %v4722_v32 = vadd.f32 1.0, %v5327_v30  ;;  %v5329_v48 = vpop.eup %5328 }
 0xfe2   :  { %v5331_v37 = vpop.eup %5330 }
 0xfe3   :  { %5334 = vrcp.f32 %v4722_v32  ;;  %v4729_v34 = vadd.f32 1.0, %v5331_v37 }
 0xfe5   :  { %5336 = vrcp.f32 %v4729_v34 }
 0xfec   :  { %v5062_v59 = vpop.f32.mrf.mxu1 }
 0xfed   :  { %v4842_v43 = vadd.f32 %v5062_v59, %v4975_v49 }
 0xfee   :  { %v5333_v52 = vpop.eup %5332  ;;  %v4836_v42 = vpop.f32.mrf.mxu1 }
 0xfef   :  { %v4733_v26 = vmul.f32 %v5333_v52, %v5329_v48  ;;  %4876 = vst [vmem:[#allocation14 + $0x8] sm:$0xff] %v4842_v43  ;;  %v4837_v44 = vadd.f32 %v4975_v49, %v4836_v42 }
 0xff0   :  { %v5335_v54 = vpop.eup %5334  ;;  %v5065_v50 = vpop.f32.mrf.mxu1 }
 0xff1   :  { %v4732_v36 = vmul.f32 %v5335_v54, %v7547_v53  ;;  %4875 = vst [vmem:[#allocation14] sm:$0xff] %v4837_v44  ;;  %v4852_v56 = vadd.f32 %v5065_v50, %v4975_v49 }
 0xff2   :  { %v4846_v41 = vpop.f32.mrf.mxu1  ;;  %v5337_v9 = vpop.eup %5336 }
 0xff3   :  { %4878 = vst [vmem:[#allocation14 + $0x18] sm:$0xff] %v4852_v56  ;;  %v4847_v29 = vadd.f32 %v4975_v49, %v4846_v41  ;;  %v4734_v57 = vadd.f32 %v4733_v26, %v4732_v36 }
 0xff4   :  { %v5068_v39 = vpop.f32.mrf.mxu1 }
 0xff5   :  { %4877 = vst [vmem:[#allocation14 + $0x10] sm:$0xff] %v4847_v29  ;;  %v4862_v7 = vadd.f32 %v5068_v39, %v4975_v49  ;;  %5338 = vtanh.f32 %v4734_v57 }
 0xff6   :  { %v4856_v14 = vpop.f32.mrf.mxu1 }
 0xff7   :  { %4880 = vst [vmem:[#allocation14 + $0x28] sm:$0xff] %v4862_v7  ;;  %v4857_v10 = vadd.f32 %v4975_v49, %v4856_v14 }
 0xff9   :  { %4879 = vst [vmem:[#allocation14 + $0x20] sm:$0xff] %v4857_v10 }
0x1002   :  { %v5339_v31 = vpop.eup %5338 }
0x1003   :  { %v4736_v22 = vmul.f32 %v5339_v31, %v5337_v9 }
0x1005   :  { %5070 = vmatmul.mubr.f32.gmra.mxu1 %v4736_v22 }
0x10c5   :  { %v5071_v53 = vpop.f32.mrf.mxu1 }
0x10c6   :  { %v4872_v25 = vadd.f32 %v5071_v53, %v4975_v49 }
0x10c7   :  { %v4866_v33 = vpop.f32.mrf.mxu1 }
0x10c8   :  { %4882 = vst [vmem:[#allocation14 + $0x38] sm:$0xff] %v4872_v25  ;;  %v4867_v45 = vadd.f32 %v4975_v49, %v4866_v33 }
0x10ca   :  { %4881 = vst [vmem:[#allocation14 + $0x30] sm:$0xff] %v4867_v45 }
0x10cb   :  { %5451 = shalt.err (!%p5448_p1)
}
0x10cc   :  { %4894 = dma.vmem_to_hbm [thread:$0]  %s4889_s22, 1024, %s7586_s12, [#allocation7], %s5475_s4, %s5475_s4, %s5476_s28  }
0x10cd   :  { %5466 = dma.done.wait [#allocation7], 1024  }
0x10ce   :  { %5467 = vsyncadd [#allocation7], 4294966272 }
0x10cf   :  { %4898 = vsyncpa [#allocation6], 1 }
0x10d0   :  { %4899 = vsyncpa [#allocation9], 1 }
0x10d1   :  { %4900 = vsyncpa [#allocation12], 1 }
0x10d2   :  { %4901 = vsyncpa [#allocation7], 1 }

</bundles_post_ra>
